<compile_context>
chip_gen: v6e
topology: v6e:2x2x1
jax: 0.10.0
libtpu: 0.0.40
codegen_flags: <defaults>
</compile_context>

<pallas_src>
import jax
import jax.numpy as jnp
from jax.experimental import pallas as pl
from jax.experimental.pallas import tpu as pltpu


# ---------------------------------------------------------------------------
# Fused encoder kernel factory.
#   x_ref     : (T*B, Hd)   f32   layer-0 input, time-major flattened,
#                                 padded to Hd = D*H lanes (pad lanes are zero)
#   h0_ref    : (L, B, Hd)  f32   initial hidden == cell per layer (dirs on lanes)
#   wih_ref   : (L, Hd, Gd) bf16  input-projection weights, direction-major cols,
#                                 gate order (i|f|o|g) within each direction
#   whh_ref   : (L*D, H, G) bf16  recurrent weights per (layer, direction)
#   b_ref     : (L, 1, Gd)  f32   combined bias (b_ih + b_hh), same packing
#   whead_ref : (H, 2*Lz)   bf16  [hidden2mean | hidden2logv]
#   bhead_ref : (1, 2*Lz)   f32
#   eps_ref   : (L*D*B, Lz) f32   pre-sampled gaussian noise
# outputs:
#   z_ref     : (L*D*B, Lz) f32
#   kld_ref   : (1, 1)      f32
# scratch:
#   seq0/seq1 : (T*B, Hd)   f32   ping-pong inter-layer activations (VMEM only)
# ---------------------------------------------------------------------------
def _build_encoder_kernel(T, B, H, L, D, Lz):
    Hd = D * H          # fused hidden width  ([fwd_H | bwd_H] lanes)
    G = 4 * H           # per-direction gate width, (i|f|o|g) packed
    Gd = D * G          # fused gate width (direction-major columns)

    def kernel(x_ref, h0_ref, wih_ref, whh_ref, b_ref,
               whead_ref, bhead_ref, eps_ref,
               z_ref, kld_ref, seq0, seq1):
        seq_bufs = (seq0, seq1)
        whead = whead_ref[...]                       # (H, 2*Lz) bf16
        bhead = bhead_ref[...]                       # (1, 2*Lz) f32
        eps_all = eps_ref[...]                       # (L*D*B, Lz) f32

        kld_sum = jnp.zeros((1, 1), jnp.float32)

        def cell_step(g, c):
            # g: (B, 4H) pre-activations in (i|f|o|g) order; c: (B, H) f32
            sfo = jax.nn.sigmoid(g[:, 0:3 * H])      # i, f, o in one EUP slice
            gg = jnp.tanh(g[:, 3 * H:4 * H])         # tanh only on the g slice
            i_g = sfo[:, 0:H]
            f_g = sfo[:, H:2 * H]
            o_g = sfo[:, 2 * H:3 * H]
            c_new = f_g * c + i_g * gg
            h_new = o_g * jnp.tanh(c_new)
            return h_new, c_new

        in_ref = x_ref
        for l in range(L):
            wih = wih_ref[l]                         # (Hd, Gd) bf16
            bias = b_ref[l]                          # (1, Gd)  f32
            xin = in_ref[...].astype(jnp.bfloat16)   # (T*B, Hd)
            # hoisted input projection: all timesteps x both directions at once
            gx = jnp.dot(xin, wih,
                         preferred_element_type=jnp.float32) + bias   # (T*B, Gd)

            whh = [whh_ref[l * D + d] for d in range(D)]               # (H, G) bf16
            h0_l = h0_ref[l]                                           # (B, Hd) f32
            h = [h0_l[:, d * H:(d + 1) * H] for d in range(D)]
            c = list(h)                       # c0 == h0 (encoder_lstm(x, (hidden, hidden)))

            is_last = (l == L - 1)
            out_ref = seq_bufs[l % 2]

            for s in range(T):
                t_of_dir = (s, T - 1 - s)     # fwd walks 0..T-1, bwd walks T-1..0
                for d in range(D):
                    t = t_of_dir[d]
                    g = (gx[t * B:(t + 1) * B, d * G:(d + 1) * G]
                         + jnp.dot(h[d].astype(jnp.bfloat16), whh[d],
                                   preferred_element_type=jnp.float32))
                    h[d], c[d] = cell_step(g, c[d])
                    if not is_last:
                        # next layer's input at time t: [fwd_H | bwd_H] lanes
                        out_ref[t * B:(t + 1) * B, d * H:(d + 1) * H] = h[d]

            # ---- VAE head epilogue on this layer's final hidden states ----
            for d in range(D):
                grp = l * D + d               # PyTorch h_n ordering: layer-major, dir-minor
                proj = (jnp.dot(h[d].astype(jnp.bfloat16), whead,
                                preferred_element_type=jnp.float32) + bhead)
                mean = proj[:, 0:Lz]
                logv = proj[:, Lz:2 * Lz]
                std = jnp.exp(0.5 * logv)
                eps = eps_all[grp * B:(grp + 1) * B, :]
                z_ref[grp * B:(grp + 1) * B, :] = mean + std * eps
                terms = 1.0 + logv - mean * mean - jnp.exp(logv)
                part = jnp.sum(jnp.sum(terms, axis=1, keepdims=True),
                               axis=0, keepdims=True)
                kld_sum = kld_sum + part

            if not is_last:
                in_ref = out_ref

        # torch.mean over all (L*D, B, Lz) elements
        kld_ref[...] = (-0.5 / float(L * D * B * Lz)) * kld_sum

    return kernel, Hd


# ---------------------------------------------------------------------------
# Parameter construction (deterministic, synthetic) in the fused/packed layout.
# ---------------------------------------------------------------------------
def init_params(key, hidden_size, num_layers, latent_size, bidirection):
    D = 2 if bidirection else 1
    H = hidden_size
    Hd = D * H
    G = 4 * H
    params = {"hidden_size": H, "num_layers": num_layers, "num_dirs": D,
              "latent": latent_size}
    k = key

    def nxt():
        nonlocal k
        k, sub = jax.random.split(k)
        return sub

    # Token-embedding table padded with zero lanes [H:Hd] so layer-0 input has
    # the same (T*B, Hd) shape as later layers (zero lanes hit zero weight rows).
    emb_i = jax.random.normal(nxt(), (29, H), jnp.float32)
    params["emb_i_pad"] = jnp.pad(emb_i, ((0, 0), (0, Hd - H)))
    params["emb_c"] = jax.random.normal(nxt(), (4, 8), jnp.float32)

    bound = 1.0 / (H ** 0.5)
    wih_layers, b_layers, whh_dirs = [], [], []
    for l in range(num_layers):
        in_dim = H if l == 0 else Hd
        # Per-direction weights; gate order (i|f|o|g).
        # TODO(synk): real nn.LSTM weights use gate order (i|f|g|o) and separate
        # b_ih/b_hh; permute gate blocks and sum the biases when importing them.
        wih = jax.random.uniform(nxt(), (D, in_dim, G), jnp.float32, -bound, bound)
        whh = jax.random.uniform(nxt(), (D, H, G), jnp.float32, -bound, bound)
        b = (jax.random.uniform(nxt(), (D, G), jnp.float32, -bound, bound)
             + jax.random.uniform(nxt(), (D, G), jnp.float32, -bound, bound))
        if in_dim < Hd:
            wih = jnp.pad(wih, ((0, 0), (0, Hd - in_dim), (0, 0)))   # zero rows
        wih_layers.append(jnp.concatenate([wih[d] for d in range(D)], axis=1))
        b_layers.append(jnp.concatenate([b[d] for d in range(D)], axis=0)[None, :])
        for d in range(D):
            whh_dirs.append(whh[d])

    params["wih"] = jnp.stack(wih_layers).astype(jnp.bfloat16)   # (L, Hd, D*G)
    params["whh"] = jnp.stack(whh_dirs).astype(jnp.bfloat16)     # (L*D, H, G)
    params["bias"] = jnp.stack(b_layers)                          # (L, 1, D*G) f32

    wm = jax.random.uniform(nxt(), (H, latent_size), jnp.float32, -bound, bound)
    bm = jax.random.uniform(nxt(), (1, latent_size), jnp.float32, -bound, bound)
    wv = jax.random.uniform(nxt(), (H, latent_size), jnp.float32, -bound, bound)
    bv = jax.random.uniform(nxt(), (1, latent_size), jnp.float32, -bound, bound)
    params["w_head"] = jnp.concatenate([wm, wv], axis=1).astype(jnp.bfloat16)  # (H, 2Lz)
    params["b_head"] = jnp.concatenate([bm, bv], axis=1)                        # (1, 2Lz)
    return params


# ---------------------------------------------------------------------------
# Forward pass (mirrors LSTM_ENCODER.forward).
# ---------------------------------------------------------------------------
def encoder_forward(params, input_, condition, eps_key):
    B, T = input_.shape
    H = params["hidden_size"]
    L = params["num_layers"]
    D = params["num_dirs"]
    Lz = params["latent"]

    kernel, Hd = _build_encoder_kernel(T, B, H, L, D, Lz)

    # Embedding gathers stay in XLA (tiny); everything downstream is one kernel.
    emb_i = jnp.take(params["emb_i_pad"], input_, axis=0)          # (B, T, Hd)
    x_flat = jnp.transpose(emb_i, (1, 0, 2)).reshape(T * B, Hd).astype(jnp.float32)

    # Condition embedding -> initial h == c : [zeros(H-8) | emb_c], dirs fused on lanes.
    emb_c = jnp.take(params["emb_c"], condition[:, 0], axis=0)     # (B, 8)
    h0_base = jnp.concatenate(
        [jnp.zeros((B, H - 8), jnp.float32), emb_c.astype(jnp.float32)], axis=1)
    h0_layer = jnp.tile(h0_base, (1, D))                           # (B, Hd)
    h0 = jnp.tile(h0_layer[None, :, :], (L, 1, 1))                 # (L, B, Hd)

    eps = jax.random.normal(eps_key, (L * D * B, Lz), jnp.float32)

    z_flat, kld = pl.pallas_call(
        kernel,
        out_shape=(jax.ShapeDtypeStruct((L * D * B, Lz), jnp.float32),
                   jax.ShapeDtypeStruct((1, 1), jnp.float32)),
        scratch_shapes=[pltpu.VMEM((T * B, Hd), jnp.float32),
                        pltpu.VMEM((T * B, Hd), jnp.float32)],
    )(x_flat, h0, params["wih"], params["whh"], params["bias"],
      params["w_head"], params["b_head"], eps)

    z = z_flat.reshape(L * D, B, Lz)
    return z, kld[0, 0]


if __name__ == "__main__":
    key = jax.random.PRNGKey(0)
    k_params, k_in, k_cond, k_eps = jax.random.split(key, 4)

    # small shapes consistent with the module
    batch, seq_len = 2, 8
    input_size, hidden_size, num_layers, latent_size = 29, 32, 2, 16
    bidirection = True

    params = init_params(k_params, hidden_size, num_layers, latent_size, bidirection)

    input_ = jax.random.randint(k_in, (batch, seq_len), 0, 29)      # token ids
    condition = jax.random.randint(k_cond, (batch, 1), 0, 4)        # condition ids

    z, kld = encoder_forward(params, input_, condition, k_eps)
    jax.block_until_ready((z, kld))

    assert z.shape == (num_layers * 2, batch, latent_size)
    assert kld.shape == ()
    print("KERNEL_OK")
</pallas_src>

<mosaic_0001>
module attributes {stable_mosaic.version = 11 : i64} {
  func.func @kernel(%arg0: memref<16x64xf32, #tpu.memory_space<vmem>>, %arg1: memref<2x2x64xf32, #tpu.memory_space<vmem>>, %arg2: memref<2x64x256xbf16, #tpu.memory_space<vmem>>, %arg3: memref<4x32x128xbf16, #tpu.memory_space<vmem>>, %arg4: memref<2x1x256xf32, #tpu.memory_space<vmem>>, %arg5: memref<32x32xbf16, #tpu.memory_space<vmem>>, %arg6: memref<1x32xf32, #tpu.memory_space<vmem>>, %arg7: memref<8x16xf32, #tpu.memory_space<vmem>>, %arg8: memref<8x16xf32, #tpu.memory_space<vmem>>, %arg9: memref<1x1xf32, #tpu.memory_space<vmem>>, %arg10: memref<16x64xf32, #tpu.memory_space<vmem>>, %arg11: memref<16x64xf32, #tpu.memory_space<vmem>>) attributes {dimension_semantics = [], scalar_prefetch = 0 : i64, scratch_operands = 2 : i64, tpu.core_type = #tpu.core_type<tc>} {
    %c0 = arith.constant 0 : index
    %c0_0 = arith.constant 0 : index
    %0 = vector.load %arg5[%c0, %c0_0] : memref<32x32xbf16, #tpu.memory_space<vmem>>, vector<32x32xbf16>
    %c0_1 = arith.constant 0 : index
    %c0_2 = arith.constant 0 : index
    %1 = vector.load %arg6[%c0_1, %c0_2] : memref<1x32xf32, #tpu.memory_space<vmem>>, vector<1x32xf32>
    %c0_3 = arith.constant 0 : index
    %c0_4 = arith.constant 0 : index
    %2 = vector.load %arg7[%c0_3, %c0_4] : memref<8x16xf32, #tpu.memory_space<vmem>>, vector<8x16xf32>
    %cst = arith.constant 0.000000e+00 : f32
    %3 = vector.broadcast %cst : f32 to vector<1x1xf32>
    %c0_5 = arith.constant 0 : index
    %c0_6 = arith.constant 0 : index
    %c0_7 = arith.constant 0 : index
    %4 = vector.load %arg2[%c0_5, %c0_6, %c0_7] : memref<2x64x256xbf16, #tpu.memory_space<vmem>>, vector<1x64x256xbf16>
    %5 = vector.shape_cast %4 : vector<1x64x256xbf16> to vector<64x256xbf16>
    %c0_8 = arith.constant 0 : index
    %c0_9 = arith.constant 0 : index
    %c0_10 = arith.constant 0 : index
    %6 = vector.load %arg4[%c0_8, %c0_9, %c0_10] : memref<2x1x256xf32, #tpu.memory_space<vmem>>, vector<1x1x256xf32>
    %7 = vector.shape_cast %6 : vector<1x1x256xf32> to vector<1x256xf32>
    %c0_11 = arith.constant 0 : index
    %c0_12 = arith.constant 0 : index
    %8 = vector.load %arg0[%c0_11, %c0_12] : memref<16x64xf32, #tpu.memory_space<vmem>>, vector<16x64xf32>
    %9 = arith.truncf %8 : vector<16x64xf32> to vector<16x64xbf16>
    %cst_13 = arith.constant dense<0.000000e+00> : vector<16x256xf32>
    %10 = tpu.matmul %9, %5, %cst_13 {dimension_numbers = #tpu.dot_dimension_numbers<[1], [0], [0], [1], [0, 0, 1, 1], [], []>} : vector<16x64xbf16>, vector<64x256xbf16>, vector<16x256xf32> -> vector<16x256xf32>
    %11 = vector.broadcast %7 : vector<1x256xf32> to vector<16x256xf32>
    %12 = arith.addf %10, %11 : vector<16x256xf32>
    %c0_14 = arith.constant 0 : index
    %c0_15 = arith.constant 0 : index
    %c0_16 = arith.constant 0 : index
    %13 = vector.load %arg3[%c0_14, %c0_15, %c0_16] : memref<4x32x128xbf16, #tpu.memory_space<vmem>>, vector<1x32x128xbf16>
    %14 = vector.shape_cast %13 : vector<1x32x128xbf16> to vector<32x128xbf16>
    %c1 = arith.constant 1 : index
    %c0_17 = arith.constant 0 : index
    %c0_18 = arith.constant 0 : index
    %15 = vector.load %arg3[%c1, %c0_17, %c0_18] : memref<4x32x128xbf16, #tpu.memory_space<vmem>>, vector<1x32x128xbf16>
    %16 = vector.shape_cast %15 : vector<1x32x128xbf16> to vector<32x128xbf16>
    %c0_19 = arith.constant 0 : index
    %c0_20 = arith.constant 0 : index
    %c0_21 = arith.constant 0 : index
    %17 = vector.load %arg1[%c0_19, %c0_20, %c0_21] : memref<2x2x64xf32, #tpu.memory_space<vmem>>, vector<1x2x64xf32>
    %18 = vector.shape_cast %17 : vector<1x2x64xf32> to vector<2x64xf32>
    %19 = vector.extract_strided_slice %18 {offsets = [0, 0], sizes = [2, 32], strides = [1, 1]} : vector<2x64xf32> to vector<2x32xf32>
    %20 = vector.extract_strided_slice %18 {offsets = [0, 32], sizes = [2, 32], strides = [1, 1]} : vector<2x64xf32> to vector<2x32xf32>
    %21 = vector.extract_strided_slice %12 {offsets = [0, 0], sizes = [2, 128], strides = [1, 1]} : vector<16x256xf32> to vector<2x128xf32>
    %22 = arith.truncf %19 : vector<2x32xf32> to vector<2x32xbf16>
    %cst_22 = arith.constant dense<0.000000e+00> : vector<2x128xf32>
    %23 = tpu.matmul %22, %14, %cst_22 {dimension_numbers = #tpu.dot_dimension_numbers<[1], [0], [0], [1], [0, 0, 1, 1], [], []>} : vector<2x32xbf16>, vector<32x128xbf16>, vector<2x128xf32> -> vector<2x128xf32>
    %24 = arith.addf %21, %23 : vector<2x128xf32>
    %25 = vector.extract_strided_slice %24 {offsets = [0, 0], sizes = [2, 96], strides = [1, 1]} : vector<2x128xf32> to vector<2x96xf32>
    %26 = arith.negf %25 : vector<2x96xf32>
    %27 = math.exp %26 : vector<2x96xf32>
    %cst_23 = arith.constant 1.000000e+00 : f32
    %28 = vector.broadcast %cst_23 : f32 to vector<2x96xf32>
    %29 = arith.addf %28, %27 : vector<2x96xf32>
    %30 = arith.divf %28, %29 : vector<2x96xf32>
    %31 = vector.extract_strided_slice %24 {offsets = [0, 96], sizes = [2, 32], strides = [1, 1]} : vector<2x128xf32> to vector<2x32xf32>
    %32 = math.tanh %31 : vector<2x32xf32>
    %33 = vector.extract_strided_slice %30 {offsets = [0, 0], sizes = [2, 32], strides = [1, 1]} : vector<2x96xf32> to vector<2x32xf32>
    %34 = vector.extract_strided_slice %30 {offsets = [0, 32], sizes = [2, 32], strides = [1, 1]} : vector<2x96xf32> to vector<2x32xf32>
    %35 = vector.extract_strided_slice %30 {offsets = [0, 64], sizes = [2, 32], strides = [1, 1]} : vector<2x96xf32> to vector<2x32xf32>
    %36 = arith.mulf %34, %19 : vector<2x32xf32>
    %37 = arith.mulf %33, %32 : vector<2x32xf32>
    %38 = arith.addf %36, %37 : vector<2x32xf32>
    %39 = math.tanh %38 : vector<2x32xf32>
    %40 = arith.mulf %35, %39 : vector<2x32xf32>
    %c0_24 = arith.constant 0 : index
    %c0_25 = arith.constant 0 : index
    %41 = vector.load %arg10[%c0_24, %c0_25] : memref<16x64xf32, #tpu.memory_space<vmem>>, vector<2x32xf32>
    tpu.vector_store %arg10[%c0_24, %c0_25], %40 {strides = array<i32>} : memref<16x64xf32, #tpu.memory_space<vmem>>, vector<2x32xf32>,
    %42 = vector.extract_strided_slice %12 {offsets = [14, 128], sizes = [2, 128], strides = [1, 1]} : vector<16x256xf32> to vector<2x128xf32>
    %43 = arith.truncf %20 : vector<2x32xf32> to vector<2x32xbf16>
    %cst_26 = arith.constant dense<0.000000e+00> : vector<2x128xf32>
    %44 = tpu.matmul %43, %16, %cst_26 {dimension_numbers = #tpu.dot_dimension_numbers<[1], [0], [0], [1], [0, 0, 1, 1], [], []>} : vector<2x32xbf16>, vector<32x128xbf16>, vector<2x128xf32> -> vector<2x128xf32>
    %45 = arith.addf %42, %44 : vector<2x128xf32>
    %46 = vector.extract_strided_slice %45 {offsets = [0, 0], sizes = [2, 96], strides = [1, 1]} : vector<2x128xf32> to vector<2x96xf32>
    %47 = arith.negf %46 : vector<2x96xf32>
    %48 = math.exp %47 : vector<2x96xf32>
    %cst_27 = arith.constant 1.000000e+00 : f32
    %49 = vector.broadcast %cst_27 : f32 to vector<2x96xf32>
    %50 = arith.addf %49, %48 : vector<2x96xf32>
    %51 = arith.divf %49, %50 : vector<2x96xf32>
    %52 = vector.extract_strided_slice %45 {offsets = [0, 96], sizes = [2, 32], strides = [1, 1]} : vector<2x128xf32> to vector<2x32xf32>
    %53 = math.tanh %52 : vector<2x32xf32>
    %54 = vector.extract_strided_slice %51 {offsets = [0, 0], sizes = [2, 32], strides = [1, 1]} : vector<2x96xf32> to vector<2x32xf32>
    %55 = vector.extract_strided_slice %51 {offsets = [0, 32], sizes = [2, 32], strides = [1, 1]} : vector<2x96xf32> to vector<2x32xf32>
    %56 = vector.extract_strided_slice %51 {offsets = [0, 64], sizes = [2, 32], strides = [1, 1]} : vector<2x96xf32> to vector<2x32xf32>
    %57 = arith.mulf %55, %20 : vector<2x32xf32>
    %58 = arith.mulf %54, %53 : vector<2x32xf32>
    %59 = arith.addf %57, %58 : vector<2x32xf32>
    %60 = math.tanh %59 : vector<2x32xf32>
    %61 = arith.mulf %56, %60 : vector<2x32xf32>
    %c14 = arith.constant 14 : index
    %c32 = arith.constant 32 : index
    %62 = vector.load %arg10[%c14, %c32] : memref<16x64xf32, #tpu.memory_space<vmem>>, vector<2x32xf32>
    tpu.vector_store %arg10[%c14, %c32], %61 {strides = array<i32>} : memref<16x64xf32, #tpu.memory_space<vmem>>, vector<2x32xf32>,
    %63 = vector.extract_strided_slice %12 {offsets = [2, 0], sizes = [2, 128], strides = [1, 1]} : vector<16x256xf32> to vector<2x128xf32>
    %64 = arith.truncf %40 : vector<2x32xf32> to vector<2x32xbf16>
    %cst_28 = arith.constant dense<0.000000e+00> : vector<2x128xf32>
    %65 = tpu.matmul %64, %14, %cst_28 {dimension_numbers = #tpu.dot_dimension_numbers<[1], [0], [0], [1], [0, 0, 1, 1], [], []>} : vector<2x32xbf16>, vector<32x128xbf16>, vector<2x128xf32> -> vector<2x128xf32>
    %66 = arith.addf %63, %65 : vector<2x128xf32>
    %67 = vector.extract_strided_slice %66 {offsets = [0, 0], sizes = [2, 96], strides = [1, 1]} : vector<2x128xf32> to vector<2x96xf32>
    %68 = arith.negf %67 : vector<2x96xf32>
    %69 = math.exp %68 : vector<2x96xf32>
    %cst_29 = arith.constant 1.000000e+00 : f32
    %70 = vector.broadcast %cst_29 : f32 to vector<2x96xf32>
    %71 = arith.addf %70, %69 : vector<2x96xf32>
    %72 = arith.divf %70, %71 : vector<2x96xf32>
    %73 = vector.extract_strided_slice %66 {offsets = [0, 96], sizes = [2, 32], strides = [1, 1]} : vector<2x128xf32> to vector<2x32xf32>
    %74 = math.tanh %73 : vector<2x32xf32>
    %75 = vector.extract_strided_slice %72 {offsets = [0, 0], sizes = [2, 32], strides = [1, 1]} : vector<2x96xf32> to vector<2x32xf32>
    %76 = vector.extract_strided_slice %72 {offsets = [0, 32], sizes = [2, 32], strides = [1, 1]} : vector<2x96xf32> to vector<2x32xf32>
    %77 = vector.extract_strided_slice %72 {offsets = [0, 64], sizes = [2, 32], strides = [1, 1]} : vector<2x96xf32> to vector<2x32xf32>
    %78 = arith.mulf %76, %38 : vector<2x32xf32>
    %79 = arith.mulf %75, %74 : vector<2x32xf32>
    %80 = arith.addf %78, %79 : vector<2x32xf32>
    %81 = math.tanh %80 : vector<2x32xf32>
    %82 = arith.mulf %77, %81 : vector<2x32xf32>
    %c2 = arith.constant 2 : index
    %c0_30 = arith.constant 0 : index
    %83 = vector.load %arg10[%c2, %c0_30] : memref<16x64xf32, #tpu.memory_space<vmem>>, vector<2x32xf32>
    tpu.vector_store %arg10[%c2, %c0_30], %82 {strides = array<i32>} : memref<16x64xf32, #tpu.memory_space<vmem>>, vector<2x32xf32>,
    %84 = vector.extract_strided_slice %12 {offsets = [12, 128], sizes = [2, 128], strides = [1, 1]} : vector<16x256xf32> to vector<2x128xf32>
    %85 = arith.truncf %61 : vector<2x32xf32> to vector<2x32xbf16>
    %cst_31 = arith.constant dense<0.000000e+00> : vector<2x128xf32>
    %86 = tpu.matmul %85, %16, %cst_31 {dimension_numbers = #tpu.dot_dimension_numbers<[1], [0], [0], [1], [0, 0, 1, 1], [], []>} : vector<2x32xbf16>, vector<32x128xbf16>, vector<2x128xf32> -> vector<2x128xf32>
    %87 = arith.addf %84, %86 : vector<2x128xf32>
    %88 = vector.extract_strided_slice %87 {offsets = [0, 0], sizes = [2, 96], strides = [1, 1]} : vector<2x128xf32> to vector<2x96xf32>
    %89 = arith.negf %88 : vector<2x96xf32>
    %90 = math.exp %89 : vector<2x96xf32>
    %cst_32 = arith.constant 1.000000e+00 : f32
    %91 = vector.broadcast %cst_32 : f32 to vector<2x96xf32>
    %92 = arith.addf %91, %90 : vector<2x96xf32>
    %93 = arith.divf %91, %92 : vector<2x96xf32>
    %94 = vector.extract_strided_slice %87 {offsets = [0, 96], sizes = [2, 32], strides = [1, 1]} : vector<2x128xf32> to vector<2x32xf32>
    %95 = math.tanh %94 : vector<2x32xf32>
    %96 = vector.extract_strided_slice %93 {offsets = [0, 0], sizes = [2, 32], strides = [1, 1]} : vector<2x96xf32> to vector<2x32xf32>
    %97 = vector.extract_strided_slice %93 {offsets = [0, 32], sizes = [2, 32], strides = [1, 1]} : vector<2x96xf32> to vector<2x32xf32>
    %98 = vector.extract_strided_slice %93 {offsets = [0, 64], sizes = [2, 32], strides = [1, 1]} : vector<2x96xf32> to vector<2x32xf32>
    %99 = arith.mulf %97, %59 : vector<2x32xf32>
    %100 = arith.mulf %96, %95 : vector<2x32xf32>
    %101 = arith.addf %99, %100 : vector<2x32xf32>
    %102 = math.tanh %101 : vector<2x32xf32>
    %103 = arith.mulf %98, %102 : vector<2x32xf32>
    %c12 = arith.constant 12 : index
    %c32_33 = arith.constant 32 : index
    %104 = vector.load %arg10[%c12, %c32_33] : memref<16x64xf32, #tpu.memory_space<vmem>>, vector<2x32xf32>
    tpu.vector_store %arg10[%c12, %c32_33], %103 {strides = array<i32>} : memref<16x64xf32, #tpu.memory_space<vmem>>, vector<2x32xf32>,
    %105 = vector.extract_strided_slice %12 {offsets = [4, 0], sizes = [2, 128], strides = [1, 1]} : vector<16x256xf32> to vector<2x128xf32>
    %106 = arith.truncf %82 : vector<2x32xf32> to vector<2x32xbf16>
    %cst_34 = arith.constant dense<0.000000e+00> : vector<2x128xf32>
    %107 = tpu.matmul %106, %14, %cst_34 {dimension_numbers = #tpu.dot_dimension_numbers<[1], [0], [0], [1], [0, 0, 1, 1], [], []>} : vector<2x32xbf16>, vector<32x128xbf16>, vector<2x128xf32> -> vector<2x128xf32>
    %108 = arith.addf %105, %107 : vector<2x128xf32>
    %109 = vector.extract_strided_slice %108 {offsets = [0, 0], sizes = [2, 96], strides = [1, 1]} : vector<2x128xf32> to vector<2x96xf32>
    %110 = arith.negf %109 : vector<2x96xf32>
    %111 = math.exp %110 : vector<2x96xf32>
    %cst_35 = arith.constant 1.000000e+00 : f32
    %112 = vector.broadcast %cst_35 : f32 to vector<2x96xf32>
    %113 = arith.addf %112, %111 : vector<2x96xf32>
    %114 = arith.divf %112, %113 : vector<2x96xf32>
    %115 = vector.extract_strided_slice %108 {offsets = [0, 96], sizes = [2, 32], strides = [1, 1]} : vector<2x128xf32> to vector<2x32xf32>
    %116 = math.tanh %115 : vector<2x32xf32>
    %117 = vector.extract_strided_slice %114 {offsets = [0, 0], sizes = [2, 32], strides = [1, 1]} : vector<2x96xf32> to vector<2x32xf32>
    %118 = vector.extract_strided_slice %114 {offsets = [0, 32], sizes = [2, 32], strides = [1, 1]} : vector<2x96xf32> to vector<2x32xf32>
    %119 = vector.extract_strided_slice %114 {offsets = [0, 64], sizes = [2, 32], strides = [1, 1]} : vector<2x96xf32> to vector<2x32xf32>
    %120 = arith.mulf %118, %80 : vector<2x32xf32>
    %121 = arith.mulf %117, %116 : vector<2x32xf32>
    %122 = arith.addf %120, %121 : vector<2x32xf32>
    %123 = math.tanh %122 : vector<2x32xf32>
    %124 = arith.mulf %119, %123 : vector<2x32xf32>
    %c4 = arith.constant 4 : index
    %c0_36 = arith.constant 0 : index
    %125 = vector.load %arg10[%c4, %c0_36] : memref<16x64xf32, #tpu.memory_space<vmem>>, vector<2x32xf32>
    tpu.vector_store %arg10[%c4, %c0_36], %124 {strides = array<i32>} : memref<16x64xf32, #tpu.memory_space<vmem>>, vector<2x32xf32>,
    %126 = vector.extract_strided_slice %12 {offsets = [10, 128], sizes = [2, 128], strides = [1, 1]} : vector<16x256xf32> to vector<2x128xf32>
    %127 = arith.truncf %103 : vector<2x32xf32> to vector<2x32xbf16>
    %cst_37 = arith.constant dense<0.000000e+00> : vector<2x128xf32>
    %128 = tpu.matmul %127, %16, %cst_37 {dimension_numbers = #tpu.dot_dimension_numbers<[1], [0], [0], [1], [0, 0, 1, 1], [], []>} : vector<2x32xbf16>, vector<32x128xbf16>, vector<2x128xf32> -> vector<2x128xf32>
    %129 = arith.addf %126, %128 : vector<2x128xf32>
    %130 = vector.extract_strided_slice %129 {offsets = [0, 0], sizes = [2, 96], strides = [1, 1]} : vector<2x128xf32> to vector<2x96xf32>
    %131 = arith.negf %130 : vector<2x96xf32>
    %132 = math.exp %131 : vector<2x96xf32>
    %cst_38 = arith.constant 1.000000e+00 : f32
    %133 = vector.broadcast %cst_38 : f32 to vector<2x96xf32>
    %134 = arith.addf %133, %132 : vector<2x96xf32>
    %135 = arith.divf %133, %134 : vector<2x96xf32>
    %136 = vector.extract_strided_slice %129 {offsets = [0, 96], sizes = [2, 32], strides = [1, 1]} : vector<2x128xf32> to vector<2x32xf32>
    %137 = math.tanh %136 : vector<2x32xf32>
    %138 = vector.extract_strided_slice %135 {offsets = [0, 0], sizes = [2, 32], strides = [1, 1]} : vector<2x96xf32> to vector<2x32xf32>
    %139 = vector.extract_strided_slice %135 {offsets = [0, 32], sizes = [2, 32], strides = [1, 1]} : vector<2x96xf32> to vector<2x32xf32>
    %140 = vector.extract_strided_slice %135 {offsets = [0, 64], sizes = [2, 32], strides = [1, 1]} : vector<2x96xf32> to vector<2x32xf32>
    %141 = arith.mulf %139, %101 : vector<2x32xf32>
    %142 = arith.mulf %138, %137 : vector<2x32xf32>
    %143 = arith.addf %141, %142 : vector<2x32xf32>
    %144 = math.tanh %143 : vector<2x32xf32>
    %145 = arith.mulf %140, %144 : vector<2x32xf32>
    %c10 = arith.constant 10 : index
    %c32_39 = arith.constant 32 : index
    %146 = vector.load %arg10[%c10, %c32_39] : memref<16x64xf32, #tpu.memory_space<vmem>>, vector<2x32xf32>
    tpu.vector_store %arg10[%c10, %c32_39], %145 {strides = array<i32>} : memref<16x64xf32, #tpu.memory_space<vmem>>, vector<2x32xf32>,
    %147 = vector.extract_strided_slice %12 {offsets = [6, 0], sizes = [2, 128], strides = [1, 1]} : vector<16x256xf32> to vector<2x128xf32>
    %148 = arith.truncf %124 : vector<2x32xf32> to vector<2x32xbf16>
    %cst_40 = arith.constant dense<0.000000e+00> : vector<2x128xf32>
    %149 = tpu.matmul %148, %14, %cst_40 {dimension_numbers = #tpu.dot_dimension_numbers<[1], [0], [0], [1], [0, 0, 1, 1], [], []>} : vector<2x32xbf16>, vector<32x128xbf16>, vector<2x128xf32> -> vector<2x128xf32>
    %150 = arith.addf %147, %149 : vector<2x128xf32>
    %151 = vector.extract_strided_slice %150 {offsets = [0, 0], sizes = [2, 96], strides = [1, 1]} : vector<2x128xf32> to vector<2x96xf32>
    %152 = arith.negf %151 : vector<2x96xf32>
    %153 = math.exp %152 : vector<2x96xf32>
    %cst_41 = arith.constant 1.000000e+00 : f32
    %154 = vector.broadcast %cst_41 : f32 to vector<2x96xf32>
    %155 = arith.addf %154, %153 : vector<2x96xf32>
    %156 = arith.divf %154, %155 : vector<2x96xf32>
    %157 = vector.extract_strided_slice %150 {offsets = [0, 96], sizes = [2, 32], strides = [1, 1]} : vector<2x128xf32> to vector<2x32xf32>
    %158 = math.tanh %157 : vector<2x32xf32>
    %159 = vector.extract_strided_slice %156 {offsets = [0, 0], sizes = [2, 32], strides = [1, 1]} : vector<2x96xf32> to vector<2x32xf32>
    %160 = vector.extract_strided_slice %156 {offsets = [0, 32], sizes = [2, 32], strides = [1, 1]} : vector<2x96xf32> to vector<2x32xf32>
    %161 = vector.extract_strided_slice %156 {offsets = [0, 64], sizes = [2, 32], strides = [1, 1]} : vector<2x96xf32> to vector<2x32xf32>
    %162 = arith.mulf %160, %122 : vector<2x32xf32>
    %163 = arith.mulf %159, %158 : vector<2x32xf32>
    %164 = arith.addf %162, %163 : vector<2x32xf32>
    %165 = math.tanh %164 : vector<2x32xf32>
    %166 = arith.mulf %161, %165 : vector<2x32xf32>
    %c6 = arith.constant 6 : index
    %c0_42 = arith.constant 0 : index
    %167 = vector.load %arg10[%c6, %c0_42] : memref<16x64xf32, #tpu.memory_space<vmem>>, vector<2x32xf32>
    tpu.vector_store %arg10[%c6, %c0_42], %166 {strides = array<i32>} : memref<16x64xf32, #tpu.memory_space<vmem>>, vector<2x32xf32>,
    %168 = vector.extract_strided_slice %12 {offsets = [8, 128], sizes = [2, 128], strides = [1, 1]} : vector<16x256xf32> to vector<2x128xf32>
    %169 = arith.truncf %145 : vector<2x32xf32> to vector<2x32xbf16>
    %cst_43 = arith.constant dense<0.000000e+00> : vector<2x128xf32>
    %170 = tpu.matmul %169, %16, %cst_43 {dimension_numbers = #tpu.dot_dimension_numbers<[1], [0], [0], [1], [0, 0, 1, 1], [], []>} : vector<2x32xbf16>, vector<32x128xbf16>, vector<2x128xf32> -> vector<2x128xf32>
    %171 = arith.addf %168, %170 : vector<2x128xf32>
    %172 = vector.extract_strided_slice %171 {offsets = [0, 0], sizes = [2, 96], strides = [1, 1]} : vector<2x128xf32> to vector<2x96xf32>
    %173 = arith.negf %172 : vector<2x96xf32>
    %174 = math.exp %173 : vector<2x96xf32>
    %cst_44 = arith.constant 1.000000e+00 : f32
    %175 = vector.broadcast %cst_44 : f32 to vector<2x96xf32>
    %176 = arith.addf %175, %174 : vector<2x96xf32>
    %177 = arith.divf %175, %176 : vector<2x96xf32>
    %178 = vector.extract_strided_slice %171 {offsets = [0, 96], sizes = [2, 32], strides = [1, 1]} : vector<2x128xf32> to vector<2x32xf32>
    %179 = math.tanh %178 : vector<2x32xf32>
    %180 = vector.extract_strided_slice %177 {offsets = [0, 0], sizes = [2, 32], strides = [1, 1]} : vector<2x96xf32> to vector<2x32xf32>
    %181 = vector.extract_strided_slice %177 {offsets = [0, 32], sizes = [2, 32], strides = [1, 1]} : vector<2x96xf32> to vector<2x32xf32>
    %182 = vector.extract_strided_slice %177 {offsets = [0, 64], sizes = [2, 32], strides = [1, 1]} : vector<2x96xf32> to vector<2x32xf32>
    %183 = arith.mulf %181, %143 : vector<2x32xf32>
    %184 = arith.mulf %180, %179 : vector<2x32xf32>
    %185 = arith.addf %183, %184 : vector<2x32xf32>
    %186 = math.tanh %185 : vector<2x32xf32>
    %187 = arith.mulf %182, %186 : vector<2x32xf32>
    %c8 = arith.constant 8 : index
    %c32_45 = arith.constant 32 : index
    %188 = vector.load %arg10[%c8, %c32_45] : memref<16x64xf32, #tpu.memory_space<vmem>>, vector<2x32xf32>
    tpu.vector_store %arg10[%c8, %c32_45], %187 {strides = array<i32>} : memref<16x64xf32, #tpu.memory_space<vmem>>, vector<2x32xf32>,
    %189 = vector.extract_strided_slice %12 {offsets = [8, 0], sizes = [2, 128], strides = [1, 1]} : vector<16x256xf32> to vector<2x128xf32>
    %190 = arith.truncf %166 : vector<2x32xf32> to vector<2x32xbf16>
    %cst_46 = arith.constant dense<0.000000e+00> : vector<2x128xf32>
    %191 = tpu.matmul %190, %14, %cst_46 {dimension_numbers = #tpu.dot_dimension_numbers<[1], [0], [0], [1], [0, 0, 1, 1], [], []>} : vector<2x32xbf16>, vector<32x128xbf16>, vector<2x128xf32> -> vector<2x128xf32>
    %192 = arith.addf %189, %191 : vector<2x128xf32>
    %193 = vector.extract_strided_slice %192 {offsets = [0, 0], sizes = [2, 96], strides = [1, 1]} : vector<2x128xf32> to vector<2x96xf32>
    %194 = arith.negf %193 : vector<2x96xf32>
    %195 = math.exp %194 : vector<2x96xf32>
    %cst_47 = arith.constant 1.000000e+00 : f32
    %196 = vector.broadcast %cst_47 : f32 to vector<2x96xf32>
    %197 = arith.addf %196, %195 : vector<2x96xf32>
    %198 = arith.divf %196, %197 : vector<2x96xf32>
    %199 = vector.extract_strided_slice %192 {offsets = [0, 96], sizes = [2, 32], strides = [1, 1]} : vector<2x128xf32> to vector<2x32xf32>
    %200 = math.tanh %199 : vector<2x32xf32>
    %201 = vector.extract_strided_slice %198 {offsets = [0, 0], sizes = [2, 32], strides = [1, 1]} : vector<2x96xf32> to vector<2x32xf32>
    %202 = vector.extract_strided_slice %198 {offsets = [0, 32], sizes = [2, 32], strides = [1, 1]} : vector<2x96xf32> to vector<2x32xf32>
    %203 = vector.extract_strided_slice %198 {offsets = [0, 64], sizes = [2, 32], strides = [1, 1]} : vector<2x96xf32> to vector<2x32xf32>
    %204 = arith.mulf %202, %164 : vector<2x32xf32>
    %205 = arith.mulf %201, %200 : vector<2x32xf32>
    %206 = arith.addf %204, %205 : vector<2x32xf32>
    %207 = math.tanh %206 : vector<2x32xf32>
    %208 = arith.mulf %203, %207 : vector<2x32xf32>
    %c8_48 = arith.constant 8 : index
    %c0_49 = arith.constant 0 : index
    %209 = vector.load %arg10[%c8_48, %c0_49] : memref<16x64xf32, #tpu.memory_space<vmem>>, vector<2x32xf32>
    tpu.vector_store %arg10[%c8_48, %c0_49], %208 {strides = array<i32>} : memref<16x64xf32, #tpu.memory_space<vmem>>, vector<2x32xf32>,
    %210 = vector.extract_strided_slice %12 {offsets = [6, 128], sizes = [2, 128], strides = [1, 1]} : vector<16x256xf32> to vector<2x128xf32>
    %211 = arith.truncf %187 : vector<2x32xf32> to vector<2x32xbf16>
    %cst_50 = arith.constant dense<0.000000e+00> : vector<2x128xf32>
    %212 = tpu.matmul %211, %16, %cst_50 {dimension_numbers = #tpu.dot_dimension_numbers<[1], [0], [0], [1], [0, 0, 1, 1], [], []>} : vector<2x32xbf16>, vector<32x128xbf16>, vector<2x128xf32> -> vector<2x128xf32>
    %213 = arith.addf %210, %212 : vector<2x128xf32>
    %214 = vector.extract_strided_slice %213 {offsets = [0, 0], sizes = [2, 96], strides = [1, 1]} : vector<2x128xf32> to vector<2x96xf32>
    %215 = arith.negf %214 : vector<2x96xf32>
    %216 = math.exp %215 : vector<2x96xf32>
    %cst_51 = arith.constant 1.000000e+00 : f32
    %217 = vector.broadcast %cst_51 : f32 to vector<2x96xf32>
    %218 = arith.addf %217, %216 : vector<2x96xf32>
    %219 = arith.divf %217, %218 : vector<2x96xf32>
    %220 = vector.extract_strided_slice %213 {offsets = [0, 96], sizes = [2, 32], strides = [1, 1]} : vector<2x128xf32> to vector<2x32xf32>
    %221 = math.tanh %220 : vector<2x32xf32>
    %222 = vector.extract_strided_slice %219 {offsets = [0, 0], sizes = [2, 32], strides = [1, 1]} : vector<2x96xf32> to vector<2x32xf32>
    %223 = vector.extract_strided_slice %219 {offsets = [0, 32], sizes = [2, 32], strides = [1, 1]} : vector<2x96xf32> to vector<2x32xf32>
    %224 = vector.extract_strided_slice %219 {offsets = [0, 64], sizes = [2, 32], strides = [1, 1]} : vector<2x96xf32> to vector<2x32xf32>
    %225 = arith.mulf %223, %185 : vector<2x32xf32>
    %226 = arith.mulf %222, %221 : vector<2x32xf32>
    %227 = arith.addf %225, %226 : vector<2x32xf32>
    %228 = math.tanh %227 : vector<2x32xf32>
    %229 = arith.mulf %224, %228 : vector<2x32xf32>
    %c6_52 = arith.constant 6 : index
    %c32_53 = arith.constant 32 : index
    %230 = vector.load %arg10[%c6_52, %c32_53] : memref<16x64xf32, #tpu.memory_space<vmem>>, vector<2x32xf32>
    tpu.vector_store %arg10[%c6_52, %c32_53], %229 {strides = array<i32>} : memref<16x64xf32, #tpu.memory_space<vmem>>, vector<2x32xf32>,
    %231 = vector.extract_strided_slice %12 {offsets = [10, 0], sizes = [2, 128], strides = [1, 1]} : vector<16x256xf32> to vector<2x128xf32>
    %232 = arith.truncf %208 : vector<2x32xf32> to vector<2x32xbf16>
    %cst_54 = arith.constant dense<0.000000e+00> : vector<2x128xf32>
    %233 = tpu.matmul %232, %14, %cst_54 {dimension_numbers = #tpu.dot_dimension_numbers<[1], [0], [0], [1], [0, 0, 1, 1], [], []>} : vector<2x32xbf16>, vector<32x128xbf16>, vector<2x128xf32> -> vector<2x128xf32>
    %234 = arith.addf %231, %233 : vector<2x128xf32>
    %235 = vector.extract_strided_slice %234 {offsets = [0, 0], sizes = [2, 96], strides = [1, 1]} : vector<2x128xf32> to vector<2x96xf32>
    %236 = arith.negf %235 : vector<2x96xf32>
    %237 = math.exp %236 : vector<2x96xf32>
    %cst_55 = arith.constant 1.000000e+00 : f32
    %238 = vector.broadcast %cst_55 : f32 to vector<2x96xf32>
    %239 = arith.addf %238, %237 : vector<2x96xf32>
    %240 = arith.divf %238, %239 : vector<2x96xf32>
    %241 = vector.extract_strided_slice %234 {offsets = [0, 96], sizes = [2, 32], strides = [1, 1]} : vector<2x128xf32> to vector<2x32xf32>
    %242 = math.tanh %241 : vector<2x32xf32>
    %243 = vector.extract_strided_slice %240 {offsets = [0, 0], sizes = [2, 32], strides = [1, 1]} : vector<2x96xf32> to vector<2x32xf32>
    %244 = vector.extract_strided_slice %240 {offsets = [0, 32], sizes = [2, 32], strides = [1, 1]} : vector<2x96xf32> to vector<2x32xf32>
    %245 = vector.extract_strided_slice %240 {offsets = [0, 64], sizes = [2, 32], strides = [1, 1]} : vector<2x96xf32> to vector<2x32xf32>
    %246 = arith.mulf %244, %206 : vector<2x32xf32>
    %247 = arith.mulf %243, %242 : vector<2x32xf32>
    %248 = arith.addf %246, %247 : vector<2x32xf32>
    %249 = math.tanh %248 : vector<2x32xf32>
    %250 = arith.mulf %245, %249 : vector<2x32xf32>
    %c10_56 = arith.constant 10 : index
    %c0_57 = arith.constant 0 : index
    %251 = vector.load %arg10[%c10_56, %c0_57] : memref<16x64xf32, #tpu.memory_space<vmem>>, vector<2x32xf32>
    tpu.vector_store %arg10[%c10_56, %c0_57], %250 {strides = array<i32>} : memref<16x64xf32, #tpu.memory_space<vmem>>, vector<2x32xf32>,
    %252 = vector.extract_strided_slice %12 {offsets = [4, 128], sizes = [2, 128], strides = [1, 1]} : vector<16x256xf32> to vector<2x128xf32>
    %253 = arith.truncf %229 : vector<2x32xf32> to vector<2x32xbf16>
    %cst_58 = arith.constant dense<0.000000e+00> : vector<2x128xf32>
    %254 = tpu.matmul %253, %16, %cst_58 {dimension_numbers = #tpu.dot_dimension_numbers<[1], [0], [0], [1], [0, 0, 1, 1], [], []>} : vector<2x32xbf16>, vector<32x128xbf16>, vector<2x128xf32> -> vector<2x128xf32>
    %255 = arith.addf %252, %254 : vector<2x128xf32>
    %256 = vector.extract_strided_slice %255 {offsets = [0, 0], sizes = [2, 96], strides = [1, 1]} : vector<2x128xf32> to vector<2x96xf32>
    %257 = arith.negf %256 : vector<2x96xf32>
    %258 = math.exp %257 : vector<2x96xf32>
    %cst_59 = arith.constant 1.000000e+00 : f32
    %259 = vector.broadcast %cst_59 : f32 to vector<2x96xf32>
    %260 = arith.addf %259, %258 : vector<2x96xf32>
    %261 = arith.divf %259, %260 : vector<2x96xf32>
    %262 = vector.extract_strided_slice %255 {offsets = [0, 96], sizes = [2, 32], strides = [1, 1]} : vector<2x128xf32> to vector<2x32xf32>
    %263 = math.tanh %262 : vector<2x32xf32>
    %264 = vector.extract_strided_slice %261 {offsets = [0, 0], sizes = [2, 32], strides = [1, 1]} : vector<2x96xf32> to vector<2x32xf32>
    %265 = vector.extract_strided_slice %261 {offsets = [0, 32], sizes = [2, 32], strides = [1, 1]} : vector<2x96xf32> to vector<2x32xf32>
    %266 = vector.extract_strided_slice %261 {offsets = [0, 64], sizes = [2, 32], strides = [1, 1]} : vector<2x96xf32> to vector<2x32xf32>
    %267 = arith.mulf %265, %227 : vector<2x32xf32>
    %268 = arith.mulf %264, %263 : vector<2x32xf32>
    %269 = arith.addf %267, %268 : vector<2x32xf32>
    %270 = math.tanh %269 : vector<2x32xf32>
    %271 = arith.mulf %266, %270 : vector<2x32xf32>
    %c4_60 = arith.constant 4 : index
    %c32_61 = arith.constant 32 : index
    %272 = vector.load %arg10[%c4_60, %c32_61] : memref<16x64xf32, #tpu.memory_space<vmem>>, vector<2x32xf32>
    tpu.vector_store %arg10[%c4_60, %c32_61], %271 {strides = array<i32>} : memref<16x64xf32, #tpu.memory_space<vmem>>, vector<2x32xf32>,
    %273 = vector.extract_strided_slice %12 {offsets = [12, 0], sizes = [2, 128], strides = [1, 1]} : vector<16x256xf32> to vector<2x128xf32>
    %274 = arith.truncf %250 : vector<2x32xf32> to vector<2x32xbf16>
    %cst_62 = arith.constant dense<0.000000e+00> : vector<2x128xf32>
    %275 = tpu.matmul %274, %14, %cst_62 {dimension_numbers = #tpu.dot_dimension_numbers<[1], [0], [0], [1], [0, 0, 1, 1], [], []>} : vector<2x32xbf16>, vector<32x128xbf16>, vector<2x128xf32> -> vector<2x128xf32>
    %276 = arith.addf %273, %275 : vector<2x128xf32>
    %277 = vector.extract_strided_slice %276 {offsets = [0, 0], sizes = [2, 96], strides = [1, 1]} : vector<2x128xf32> to vector<2x96xf32>
    %278 = arith.negf %277 : vector<2x96xf32>
    %279 = math.exp %278 : vector<2x96xf32>
    %cst_63 = arith.constant 1.000000e+00 : f32
    %280 = vector.broadcast %cst_63 : f32 to vector<2x96xf32>
    %281 = arith.addf %280, %279 : vector<2x96xf32>
    %282 = arith.divf %280, %281 : vector<2x96xf32>
    %283 = vector.extract_strided_slice %276 {offsets = [0, 96], sizes = [2, 32], strides = [1, 1]} : vector<2x128xf32> to vector<2x32xf32>
    %284 = math.tanh %283 : vector<2x32xf32>
    %285 = vector.extract_strided_slice %282 {offsets = [0, 0], sizes = [2, 32], strides = [1, 1]} : vector<2x96xf32> to vector<2x32xf32>
    %286 = vector.extract_strided_slice %282 {offsets = [0, 32], sizes = [2, 32], strides = [1, 1]} : vector<2x96xf32> to vector<2x32xf32>
    %287 = vector.extract_strided_slice %282 {offsets = [0, 64], sizes = [2, 32], strides = [1, 1]} : vector<2x96xf32> to vector<2x32xf32>
    %288 = arith.mulf %286, %248 : vector<2x32xf32>
    %289 = arith.mulf %285, %284 : vector<2x32xf32>
    %290 = arith.addf %288, %289 : vector<2x32xf32>
    %291 = math.tanh %290 : vector<2x32xf32>
    %292 = arith.mulf %287, %291 : vector<2x32xf32>
    %c12_64 = arith.constant 12 : index
    %c0_65 = arith.constant 0 : index
    %293 = vector.load %arg10[%c12_64, %c0_65] : memref<16x64xf32, #tpu.memory_space<vmem>>, vector<2x32xf32>
    tpu.vector_store %arg10[%c12_64, %c0_65], %292 {strides = array<i32>} : memref<16x64xf32, #tpu.memory_space<vmem>>, vector<2x32xf32>,
    %294 = vector.extract_strided_slice %12 {offsets = [2, 128], sizes = [2, 128], strides = [1, 1]} : vector<16x256xf32> to vector<2x128xf32>
    %295 = arith.truncf %271 : vector<2x32xf32> to vector<2x32xbf16>
    %cst_66 = arith.constant dense<0.000000e+00> : vector<2x128xf32>
    %296 = tpu.matmul %295, %16, %cst_66 {dimension_numbers = #tpu.dot_dimension_numbers<[1], [0], [0], [1], [0, 0, 1, 1], [], []>} : vector<2x32xbf16>, vector<32x128xbf16>, vector<2x128xf32> -> vector<2x128xf32>
    %297 = arith.addf %294, %296 : vector<2x128xf32>
    %298 = vector.extract_strided_slice %297 {offsets = [0, 0], sizes = [2, 96], strides = [1, 1]} : vector<2x128xf32> to vector<2x96xf32>
    %299 = arith.negf %298 : vector<2x96xf32>
    %300 = math.exp %299 : vector<2x96xf32>
    %cst_67 = arith.constant 1.000000e+00 : f32
    %301 = vector.broadcast %cst_67 : f32 to vector<2x96xf32>
    %302 = arith.addf %301, %300 : vector<2x96xf32>
    %303 = arith.divf %301, %302 : vector<2x96xf32>
    %304 = vector.extract_strided_slice %297 {offsets = [0, 96], sizes = [2, 32], strides = [1, 1]} : vector<2x128xf32> to vector<2x32xf32>
    %305 = math.tanh %304 : vector<2x32xf32>
    %306 = vector.extract_strided_slice %303 {offsets = [0, 0], sizes = [2, 32], strides = [1, 1]} : vector<2x96xf32> to vector<2x32xf32>
    %307 = vector.extract_strided_slice %303 {offsets = [0, 32], sizes = [2, 32], strides = [1, 1]} : vector<2x96xf32> to vector<2x32xf32>
    %308 = vector.extract_strided_slice %303 {offsets = [0, 64], sizes = [2, 32], strides = [1, 1]} : vector<2x96xf32> to vector<2x32xf32>
    %309 = arith.mulf %307, %269 : vector<2x32xf32>
    %310 = arith.mulf %306, %305 : vector<2x32xf32>
    %311 = arith.addf %309, %310 : vector<2x32xf32>
    %312 = math.tanh %311 : vector<2x32xf32>
    %313 = arith.mulf %308, %312 : vector<2x32xf32>
    %c2_68 = arith.constant 2 : index
    %c32_69 = arith.constant 32 : index
    %314 = vector.load %arg10[%c2_68, %c32_69] : memref<16x64xf32, #tpu.memory_space<vmem>>, vector<2x32xf32>
    tpu.vector_store %arg10[%c2_68, %c32_69], %313 {strides = array<i32>} : memref<16x64xf32, #tpu.memory_space<vmem>>, vector<2x32xf32>,
    %315 = vector.extract_strided_slice %12 {offsets = [14, 0], sizes = [2, 128], strides = [1, 1]} : vector<16x256xf32> to vector<2x128xf32>
    %316 = arith.truncf %292 : vector<2x32xf32> to vector<2x32xbf16>
    %cst_70 = arith.constant dense<0.000000e+00> : vector<2x128xf32>
    %317 = tpu.matmul %316, %14, %cst_70 {dimension_numbers = #tpu.dot_dimension_numbers<[1], [0], [0], [1], [0, 0, 1, 1], [], []>} : vector<2x32xbf16>, vector<32x128xbf16>, vector<2x128xf32> -> vector<2x128xf32>
    %318 = arith.addf %315, %317 : vector<2x128xf32>
    %319 = vector.extract_strided_slice %318 {offsets = [0, 0], sizes = [2, 96], strides = [1, 1]} : vector<2x128xf32> to vector<2x96xf32>
    %320 = arith.negf %319 : vector<2x96xf32>
    %321 = math.exp %320 : vector<2x96xf32>
    %cst_71 = arith.constant 1.000000e+00 : f32
    %322 = vector.broadcast %cst_71 : f32 to vector<2x96xf32>
    %323 = arith.addf %322, %321 : vector<2x96xf32>
    %324 = arith.divf %322, %323 : vector<2x96xf32>
    %325 = vector.extract_strided_slice %318 {offsets = [0, 96], sizes = [2, 32], strides = [1, 1]} : vector<2x128xf32> to vector<2x32xf32>
    %326 = math.tanh %325 : vector<2x32xf32>
    %327 = vector.extract_strided_slice %324 {offsets = [0, 0], sizes = [2, 32], strides = [1, 1]} : vector<2x96xf32> to vector<2x32xf32>
    %328 = vector.extract_strided_slice %324 {offsets = [0, 32], sizes = [2, 32], strides = [1, 1]} : vector<2x96xf32> to vector<2x32xf32>
    %329 = vector.extract_strided_slice %324 {offsets = [0, 64], sizes = [2, 32], strides = [1, 1]} : vector<2x96xf32> to vector<2x32xf32>
    %330 = arith.mulf %328, %290 : vector<2x32xf32>
    %331 = arith.mulf %327, %326 : vector<2x32xf32>
    %332 = arith.addf %330, %331 : vector<2x32xf32>
    %333 = math.tanh %332 : vector<2x32xf32>
    %334 = arith.mulf %329, %333 : vector<2x32xf32>
    %c14_72 = arith.constant 14 : index
    %c0_73 = arith.constant 0 : index
    %335 = vector.load %arg10[%c14_72, %c0_73] : memref<16x64xf32, #tpu.memory_space<vmem>>, vector<2x32xf32>
    tpu.vector_store %arg10[%c14_72, %c0_73], %334 {strides = array<i32>} : memref<16x64xf32, #tpu.memory_space<vmem>>, vector<2x32xf32>,
    %336 = vector.extract_strided_slice %12 {offsets = [0, 128], sizes = [2, 128], strides = [1, 1]} : vector<16x256xf32> to vector<2x128xf32>
    %337 = arith.truncf %313 : vector<2x32xf32> to vector<2x32xbf16>
    %cst_74 = arith.constant dense<0.000000e+00> : vector<2x128xf32>
    %338 = tpu.matmul %337, %16, %cst_74 {dimension_numbers = #tpu.dot_dimension_numbers<[1], [0], [0], [1], [0, 0, 1, 1], [], []>} : vector<2x32xbf16>, vector<32x128xbf16>, vector<2x128xf32> -> vector<2x128xf32>
    %339 = arith.addf %336, %338 : vector<2x128xf32>
    %340 = vector.extract_strided_slice %339 {offsets = [0, 0], sizes = [2, 96], strides = [1, 1]} : vector<2x128xf32> to vector<2x96xf32>
    %341 = arith.negf %340 : vector<2x96xf32>
    %342 = math.exp %341 : vector<2x96xf32>
    %cst_75 = arith.constant 1.000000e+00 : f32
    %343 = vector.broadcast %cst_75 : f32 to vector<2x96xf32>
    %344 = arith.addf %343, %342 : vector<2x96xf32>
    %345 = arith.divf %343, %344 : vector<2x96xf32>
    %346 = vector.extract_strided_slice %339 {offsets = [0, 96], sizes = [2, 32], strides = [1, 1]} : vector<2x128xf32> to vector<2x32xf32>
    %347 = math.tanh %346 : vector<2x32xf32>
    %348 = vector.extract_strided_slice %345 {offsets = [0, 0], sizes = [2, 32], strides = [1, 1]} : vector<2x96xf32> to vector<2x32xf32>
    %349 = vector.extract_strided_slice %345 {offsets = [0, 32], sizes = [2, 32], strides = [1, 1]} : vector<2x96xf32> to vector<2x32xf32>
    %350 = vector.extract_strided_slice %345 {offsets = [0, 64], sizes = [2, 32], strides = [1, 1]} : vector<2x96xf32> to vector<2x32xf32>
    %351 = arith.mulf %349, %311 : vector<2x32xf32>
    %352 = arith.mulf %348, %347 : vector<2x32xf32>
    %353 = arith.addf %351, %352 : vector<2x32xf32>
    %354 = math.tanh %353 : vector<2x32xf32>
    %355 = arith.mulf %350, %354 : vector<2x32xf32>
    %c0_76 = arith.constant 0 : index
    %c32_77 = arith.constant 32 : index
    %356 = vector.load %arg10[%c0_76, %c32_77] : memref<16x64xf32, #tpu.memory_space<vmem>>, vector<2x32xf32>
    tpu.vector_store %arg10[%c0_76, %c32_77], %355 {strides = array<i32>} : memref<16x64xf32, #tpu.memory_space<vmem>>, vector<2x32xf32>,
    %357 = arith.truncf %334 : vector<2x32xf32> to vector<2x32xbf16>
    %cst_78 = arith.constant dense<0.000000e+00> : vector<2x32xf32>
    %358 = tpu.matmul %357, %0, %cst_78 {dimension_numbers = #tpu.dot_dimension_numbers<[1], [0], [0], [1], [0, 0, 1, 1], [], []>} : vector<2x32xbf16>, vector<32x32xbf16>, vector<2x32xf32> -> vector<2x32xf32>
    %359 = vector.broadcast %1 : vector<1x32xf32> to vector<2x32xf32>
    %360 = arith.addf %358, %359 : vector<2x32xf32>
    %361 = vector.extract_strided_slice %360 {offsets = [0, 0], sizes = [2, 16], strides = [1, 1]} : vector<2x32xf32> to vector<2x16xf32>
    %362 = vector.extract_strided_slice %360 {offsets = [0, 16], sizes = [2, 16], strides = [1, 1]} : vector<2x32xf32> to vector<2x16xf32>
    %cst_79 = arith.constant 5.000000e-01 : f32
    %363 = vector.broadcast %cst_79 : f32 to vector<2x16xf32>
    %364 = arith.mulf %363, %362 : vector<2x16xf32>
    %365 = math.exp %364 : vector<2x16xf32>
    %366 = vector.extract_strided_slice %2 {offsets = [0, 0], sizes = [2, 16], strides = [1, 1]} : vector<8x16xf32> to vector<2x16xf32>
    %367 = arith.mulf %365, %366 : vector<2x16xf32>
    %368 = arith.addf %361, %367 : vector<2x16xf32>
    %c0_80 = arith.constant 0 : index
    %c0_81 = arith.constant 0 : index
    %369 = vector.load %arg8[%c0_80, %c0_81] : memref<8x16xf32, #tpu.memory_space<vmem>>, vector<2x16xf32>
    tpu.vector_store %arg8[%c0_80, %c0_81], %368 {strides = array<i32>} : memref<8x16xf32, #tpu.memory_space<vmem>>, vector<2x16xf32>,
    %cst_82 = arith.constant 1.000000e+00 : f32
    %370 = vector.broadcast %cst_82 : f32 to vector<2x16xf32>
    %371 = arith.addf %370, %362 : vector<2x16xf32>
    %372 = arith.mulf %361, %361 : vector<2x16xf32>
    %373 = arith.subf %371, %372 : vector<2x16xf32>
    %374 = math.exp %362 : vector<2x16xf32>
    %375 = arith.subf %373, %374 : vector<2x16xf32>
    %cst_83 = arith.constant dense<0.000000e+00> : vector<2xf32>
    %376 = vector.multi_reduction <add>, %375, %cst_83 [1] : vector<2x16xf32> to vector<2xf32>
    %377 = vector.shape_cast %376 : vector<2xf32> to vector<2x1xf32>
    %cst_84 = arith.constant dense<0.000000e+00> : vector<1xf32>
    %378 = vector.multi_reduction <add>, %377, %cst_84 [0] : vector<2x1xf32> to vector<1xf32>
    %379 = vector.shape_cast %378 : vector<1xf32> to vector<1x1xf32>
    %380 = arith.addf %3, %379 : vector<1x1xf32>
    %381 = arith.truncf %355 : vector<2x32xf32> to vector<2x32xbf16>
    %cst_85 = arith.constant dense<0.000000e+00> : vector<2x32xf32>
    %382 = tpu.matmul %381, %0, %cst_85 {dimension_numbers = #tpu.dot_dimension_numbers<[1], [0], [0], [1], [0, 0, 1, 1], [], []>} : vector<2x32xbf16>, vector<32x32xbf16>, vector<2x32xf32> -> vector<2x32xf32>
    %383 = vector.broadcast %1 : vector<1x32xf32> to vector<2x32xf32>
    %384 = arith.addf %382, %383 : vector<2x32xf32>
    %385 = vector.extract_strided_slice %384 {offsets = [0, 0], sizes = [2, 16], strides = [1, 1]} : vector<2x32xf32> to vector<2x16xf32>
    %386 = vector.extract_strided_slice %384 {offsets = [0, 16], sizes = [2, 16], strides = [1, 1]} : vector<2x32xf32> to vector<2x16xf32>
    %cst_86 = arith.constant 5.000000e-01 : f32
    %387 = vector.broadcast %cst_86 : f32 to vector<2x16xf32>
    %388 = arith.mulf %387, %386 : vector<2x16xf32>
    %389 = math.exp %388 : vector<2x16xf32>
    %390 = vector.extract_strided_slice %2 {offsets = [2, 0], sizes = [2, 16], strides = [1, 1]} : vector<8x16xf32> to vector<2x16xf32>
    %391 = arith.mulf %389, %390 : vector<2x16xf32>
    %392 = arith.addf %385, %391 : vector<2x16xf32>
    %c2_87 = arith.constant 2 : index
    %c0_88 = arith.constant 0 : index
    %393 = vector.load %arg8[%c2_87, %c0_88] : memref<8x16xf32, #tpu.memory_space<vmem>>, vector<2x16xf32>
    tpu.vector_store %arg8[%c2_87, %c0_88], %392 {strides = array<i32>} : memref<8x16xf32, #tpu.memory_space<vmem>>, vector<2x16xf32>,
    %cst_89 = arith.constant 1.000000e+00 : f32
    %394 = vector.broadcast %cst_89 : f32 to vector<2x16xf32>
    %395 = arith.addf %394, %386 : vector<2x16xf32>
    %396 = arith.mulf %385, %385 : vector<2x16xf32>
    %397 = arith.subf %395, %396 : vector<2x16xf32>
    %398 = math.exp %386 : vector<2x16xf32>
    %399 = arith.subf %397, %398 : vector<2x16xf32>
    %cst_90 = arith.constant dense<0.000000e+00> : vector<2xf32>
    %400 = vector.multi_reduction <add>, %399, %cst_90 [1] : vector<2x16xf32> to vector<2xf32>
    %401 = vector.shape_cast %400 : vector<2xf32> to vector<2x1xf32>
    %cst_91 = arith.constant dense<0.000000e+00> : vector<1xf32>
    %402 = vector.multi_reduction <add>, %401, %cst_91 [0] : vector<2x1xf32> to vector<1xf32>
    %403 = vector.shape_cast %402 : vector<1xf32> to vector<1x1xf32>
    %404 = arith.addf %380, %403 : vector<1x1xf32>
    %c1_92 = arith.constant 1 : index
    %c0_93 = arith.constant 0 : index
    %c0_94 = arith.constant 0 : index
    %405 = vector.load %arg2[%c1_92, %c0_93, %c0_94] : memref<2x64x256xbf16, #tpu.memory_space<vmem>>, vector<1x64x256xbf16>
    %406 = vector.shape_cast %405 : vector<1x64x256xbf16> to vector<64x256xbf16>
    %c1_95 = arith.constant 1 : index
    %c0_96 = arith.constant 0 : index
    %c0_97 = arith.constant 0 : index
    %407 = vector.load %arg4[%c1_95, %c0_96, %c0_97] : memref<2x1x256xf32, #tpu.memory_space<vmem>>, vector<1x1x256xf32>
    %408 = vector.shape_cast %407 : vector<1x1x256xf32> to vector<1x256xf32>
    %c0_98 = arith.constant 0 : index
    %c0_99 = arith.constant 0 : index
    %409 = vector.load %arg10[%c0_98, %c0_99] : memref<16x64xf32, #tpu.memory_space<vmem>>, vector<16x64xf32>
    %410 = arith.truncf %409 : vector<16x64xf32> to vector<16x64xbf16>
    %cst_100 = arith.constant dense<0.000000e+00> : vector<16x256xf32>
    %411 = tpu.matmul %410, %406, %cst_100 {dimension_numbers = #tpu.dot_dimension_numbers<[1], [0], [0], [1], [0, 0, 1, 1], [], []>} : vector<16x64xbf16>, vector<64x256xbf16>, vector<16x256xf32> -> vector<16x256xf32>
    %412 = vector.broadcast %408 : vector<1x256xf32> to vector<16x256xf32>
    %413 = arith.addf %411, %412 : vector<16x256xf32>
    %c2_101 = arith.constant 2 : index
    %c0_102 = arith.constant 0 : index
    %c0_103 = arith.constant 0 : index
    %414 = vector.load %arg3[%c2_101, %c0_102, %c0_103] : memref<4x32x128xbf16, #tpu.memory_space<vmem>>, vector<1x32x128xbf16>
    %415 = vector.shape_cast %414 : vector<1x32x128xbf16> to vector<32x128xbf16>
    %c3 = arith.constant 3 : index
    %c0_104 = arith.constant 0 : index
    %c0_105 = arith.constant 0 : index
    %416 = vector.load %arg3[%c3, %c0_104, %c0_105] : memref<4x32x128xbf16, #tpu.memory_space<vmem>>, vector<1x32x128xbf16>
    %417 = vector.shape_cast %416 : vector<1x32x128xbf16> to vector<32x128xbf16>
    %c1_106 = arith.constant 1 : index
    %c0_107 = arith.constant 0 : index
    %c0_108 = arith.constant 0 : index
    %418 = vector.load %arg1[%c1_106, %c0_107, %c0_108] : memref<2x2x64xf32, #tpu.memory_space<vmem>>, vector<1x2x64xf32>
    %419 = vector.shape_cast %418 : vector<1x2x64xf32> to vector<2x64xf32>
    %420 = vector.extract_strided_slice %419 {offsets = [0, 0], sizes = [2, 32], strides = [1, 1]} : vector<2x64xf32> to vector<2x32xf32>
    %421 = vector.extract_strided_slice %419 {offsets = [0, 32], sizes = [2, 32], strides = [1, 1]} : vector<2x64xf32> to vector<2x32xf32>
    %422 = vector.extract_strided_slice %413 {offsets = [0, 0], sizes = [2, 128], strides = [1, 1]} : vector<16x256xf32> to vector<2x128xf32>
    %423 = arith.truncf %420 : vector<2x32xf32> to vector<2x32xbf16>
    %cst_109 = arith.constant dense<0.000000e+00> : vector<2x128xf32>
    %424 = tpu.matmul %423, %415, %cst_109 {dimension_numbers = #tpu.dot_dimension_numbers<[1], [0], [0], [1], [0, 0, 1, 1], [], []>} : vector<2x32xbf16>, vector<32x128xbf16>, vector<2x128xf32> -> vector<2x128xf32>
    %425 = arith.addf %422, %424 : vector<2x128xf32>
    %426 = vector.extract_strided_slice %425 {offsets = [0, 0], sizes = [2, 96], strides = [1, 1]} : vector<2x128xf32> to vector<2x96xf32>
    %427 = arith.negf %426 : vector<2x96xf32>
    %428 = math.exp %427 : vector<2x96xf32>
    %cst_110 = arith.constant 1.000000e+00 : f32
    %429 = vector.broadcast %cst_110 : f32 to vector<2x96xf32>
    %430 = arith.addf %429, %428 : vector<2x96xf32>
    %431 = arith.divf %429, %430 : vector<2x96xf32>
    %432 = vector.extract_strided_slice %425 {offsets = [0, 96], sizes = [2, 32], strides = [1, 1]} : vector<2x128xf32> to vector<2x32xf32>
    %433 = math.tanh %432 : vector<2x32xf32>
    %434 = vector.extract_strided_slice %431 {offsets = [0, 0], sizes = [2, 32], strides = [1, 1]} : vector<2x96xf32> to vector<2x32xf32>
    %435 = vector.extract_strided_slice %431 {offsets = [0, 32], sizes = [2, 32], strides = [1, 1]} : vector<2x96xf32> to vector<2x32xf32>
    %436 = vector.extract_strided_slice %431 {offsets = [0, 64], sizes = [2, 32], strides = [1, 1]} : vector<2x96xf32> to vector<2x32xf32>
    %437 = arith.mulf %435, %420 : vector<2x32xf32>
    %438 = arith.mulf %434, %433 : vector<2x32xf32>
    %439 = arith.addf %437, %438 : vector<2x32xf32>
    %440 = math.tanh %439 : vector<2x32xf32>
    %441 = arith.mulf %436, %440 : vector<2x32xf32>
    %442 = vector.extract_strided_slice %413 {offsets = [14, 128], sizes = [2, 128], strides = [1, 1]} : vector<16x256xf32> to vector<2x128xf32>
    %443 = arith.truncf %421 : vector<2x32xf32> to vector<2x32xbf16>
    %cst_111 = arith.constant dense<0.000000e+00> : vector<2x128xf32>
    %444 = tpu.matmul %443, %417, %cst_111 {dimension_numbers = #tpu.dot_dimension_numbers<[1], [0], [0], [1], [0, 0, 1, 1], [], []>} : vector<2x32xbf16>, vector<32x128xbf16>, vector<2x128xf32> -> vector<2x128xf32>
    %445 = arith.addf %442, %444 : vector<2x128xf32>
    %446 = vector.extract_strided_slice %445 {offsets = [0, 0], sizes = [2, 96], strides = [1, 1]} : vector<2x128xf32> to vector<2x96xf32>
    %447 = arith.negf %446 : vector<2x96xf32>
    %448 = math.exp %447 : vector<2x96xf32>
    %cst_112 = arith.constant 1.000000e+00 : f32
    %449 = vector.broadcast %cst_112 : f32 to vector<2x96xf32>
    %450 = arith.addf %449, %448 : vector<2x96xf32>
    %451 = arith.divf %449, %450 : vector<2x96xf32>
    %452 = vector.extract_strided_slice %445 {offsets = [0, 96], sizes = [2, 32], strides = [1, 1]} : vector<2x128xf32> to vector<2x32xf32>
    %453 = math.tanh %452 : vector<2x32xf32>
    %454 = vector.extract_strided_slice %451 {offsets = [0, 0], sizes = [2, 32], strides = [1, 1]} : vector<2x96xf32> to vector<2x32xf32>
    %455 = vector.extract_strided_slice %451 {offsets = [0, 32], sizes = [2, 32], strides = [1, 1]} : vector<2x96xf32> to vector<2x32xf32>
    %456 = vector.extract_strided_slice %451 {offsets = [0, 64], sizes = [2, 32], strides = [1, 1]} : vector<2x96xf32> to vector<2x32xf32>
    %457 = arith.mulf %455, %421 : vector<2x32xf32>
    %458 = arith.mulf %454, %453 : vector<2x32xf32>
    %459 = arith.addf %457, %458 : vector<2x32xf32>
    %460 = math.tanh %459 : vector<2x32xf32>
    %461 = arith.mulf %456, %460 : vector<2x32xf32>
    %462 = vector.extract_strided_slice %413 {offsets = [2, 0], sizes = [2, 128], strides = [1, 1]} : vector<16x256xf32> to vector<2x128xf32>
    %463 = arith.truncf %441 : vector<2x32xf32> to vector<2x32xbf16>
    %cst_113 = arith.constant dense<0.000000e+00> : vector<2x128xf32>
    %464 = tpu.matmul %463, %415, %cst_113 {dimension_numbers = #tpu.dot_dimension_numbers<[1], [0], [0], [1], [0, 0, 1, 1], [], []>} : vector<2x32xbf16>, vector<32x128xbf16>, vector<2x128xf32> -> vector<2x128xf32>
    %465 = arith.addf %462, %464 : vector<2x128xf32>
    %466 = vector.extract_strided_slice %465 {offsets = [0, 0], sizes = [2, 96], strides = [1, 1]} : vector<2x128xf32> to vector<2x96xf32>
    %467 = arith.negf %466 : vector<2x96xf32>
    %468 = math.exp %467 : vector<2x96xf32>
    %cst_114 = arith.constant 1.000000e+00 : f32
    %469 = vector.broadcast %cst_114 : f32 to vector<2x96xf32>
    %470 = arith.addf %469, %468 : vector<2x96xf32>
    %471 = arith.divf %469, %470 : vector<2x96xf32>
    %472 = vector.extract_strided_slice %465 {offsets = [0, 96], sizes = [2, 32], strides = [1, 1]} : vector<2x128xf32> to vector<2x32xf32>
    %473 = math.tanh %472 : vector<2x32xf32>
    %474 = vector.extract_strided_slice %471 {offsets = [0, 0], sizes = [2, 32], strides = [1, 1]} : vector<2x96xf32> to vector<2x32xf32>
    %475 = vector.extract_strided_slice %471 {offsets = [0, 32], sizes = [2, 32], strides = [1, 1]} : vector<2x96xf32> to vector<2x32xf32>
    %476 = vector.extract_strided_slice %471 {offsets = [0, 64], sizes = [2, 32], strides = [1, 1]} : vector<2x96xf32> to vector<2x32xf32>
    %477 = arith.mulf %475, %439 : vector<2x32xf32>
    %478 = arith.mulf %474, %473 : vector<2x32xf32>
    %479 = arith.addf %477, %478 : vector<2x32xf32>
    %480 = math.tanh %479 : vector<2x32xf32>
    %481 = arith.mulf %476, %480 : vector<2x32xf32>
    %482 = vector.extract_strided_slice %413 {offsets = [12, 128], sizes = [2, 128], strides = [1, 1]} : vector<16x256xf32> to vector<2x128xf32>
    %483 = arith.truncf %461 : vector<2x32xf32> to vector<2x32xbf16>
    %cst_115 = arith.constant dense<0.000000e+00> : vector<2x128xf32>
    %484 = tpu.matmul %483, %417, %cst_115 {dimension_numbers = #tpu.dot_dimension_numbers<[1], [0], [0], [1], [0, 0, 1, 1], [], []>} : vector<2x32xbf16>, vector<32x128xbf16>, vector<2x128xf32> -> vector<2x128xf32>
    %485 = arith.addf %482, %484 : vector<2x128xf32>
    %486 = vector.extract_strided_slice %485 {offsets = [0, 0], sizes = [2, 96], strides = [1, 1]} : vector<2x128xf32> to vector<2x96xf32>
    %487 = arith.negf %486 : vector<2x96xf32>
    %488 = math.exp %487 : vector<2x96xf32>
    %cst_116 = arith.constant 1.000000e+00 : f32
    %489 = vector.broadcast %cst_116 : f32 to vector<2x96xf32>
    %490 = arith.addf %489, %488 : vector<2x96xf32>
    %491 = arith.divf %489, %490 : vector<2x96xf32>
    %492 = vector.extract_strided_slice %485 {offsets = [0, 96], sizes = [2, 32], strides = [1, 1]} : vector<2x128xf32> to vector<2x32xf32>
    %493 = math.tanh %492 : vector<2x32xf32>
    %494 = vector.extract_strided_slice %491 {offsets = [0, 0], sizes = [2, 32], strides = [1, 1]} : vector<2x96xf32> to vector<2x32xf32>
    %495 = vector.extract_strided_slice %491 {offsets = [0, 32], sizes = [2, 32], strides = [1, 1]} : vector<2x96xf32> to vector<2x32xf32>
    %496 = vector.extract_strided_slice %491 {offsets = [0, 64], sizes = [2, 32], strides = [1, 1]} : vector<2x96xf32> to vector<2x32xf32>
    %497 = arith.mulf %495, %459 : vector<2x32xf32>
    %498 = arith.mulf %494, %493 : vector<2x32xf32>
    %499 = arith.addf %497, %498 : vector<2x32xf32>
    %500 = math.tanh %499 : vector<2x32xf32>
    %501 = arith.mulf %496, %500 : vector<2x32xf32>
    %502 = vector.extract_strided_slice %413 {offsets = [4, 0], sizes = [2, 128], strides = [1, 1]} : vector<16x256xf32> to vector<2x128xf32>
    %503 = arith.truncf %481 : vector<2x32xf32> to vector<2x32xbf16>
    %cst_117 = arith.constant dense<0.000000e+00> : vector<2x128xf32>
    %504 = tpu.matmul %503, %415, %cst_117 {dimension_numbers = #tpu.dot_dimension_numbers<[1], [0], [0], [1], [0, 0, 1, 1], [], []>} : vector<2x32xbf16>, vector<32x128xbf16>, vector<2x128xf32> -> vector<2x128xf32>
    %505 = arith.addf %502, %504 : vector<2x128xf32>
    %506 = vector.extract_strided_slice %505 {offsets = [0, 0], sizes = [2, 96], strides = [1, 1]} : vector<2x128xf32> to vector<2x96xf32>
    %507 = arith.negf %506 : vector<2x96xf32>
    %508 = math.exp %507 : vector<2x96xf32>
    %cst_118 = arith.constant 1.000000e+00 : f32
    %509 = vector.broadcast %cst_118 : f32 to vector<2x96xf32>
    %510 = arith.addf %509, %508 : vector<2x96xf32>
    %511 = arith.divf %509, %510 : vector<2x96xf32>
    %512 = vector.extract_strided_slice %505 {offsets = [0, 96], sizes = [2, 32], strides = [1, 1]} : vector<2x128xf32> to vector<2x32xf32>
    %513 = math.tanh %512 : vector<2x32xf32>
    %514 = vector.extract_strided_slice %511 {offsets = [0, 0], sizes = [2, 32], strides = [1, 1]} : vector<2x96xf32> to vector<2x32xf32>
    %515 = vector.extract_strided_slice %511 {offsets = [0, 32], sizes = [2, 32], strides = [1, 1]} : vector<2x96xf32> to vector<2x32xf32>
    %516 = vector.extract_strided_slice %511 {offsets = [0, 64], sizes = [2, 32], strides = [1, 1]} : vector<2x96xf32> to vector<2x32xf32>
    %517 = arith.mulf %515, %479 : vector<2x32xf32>
    %518 = arith.mulf %514, %513 : vector<2x32xf32>
    %519 = arith.addf %517, %518 : vector<2x32xf32>
    %520 = math.tanh %519 : vector<2x32xf32>
    %521 = arith.mulf %516, %520 : vector<2x32xf32>
    %522 = vector.extract_strided_slice %413 {offsets = [10, 128], sizes = [2, 128], strides = [1, 1]} : vector<16x256xf32> to vector<2x128xf32>
    %523 = arith.truncf %501 : vector<2x32xf32> to vector<2x32xbf16>
    %cst_119 = arith.constant dense<0.000000e+00> : vector<2x128xf32>
    %524 = tpu.matmul %523, %417, %cst_119 {dimension_numbers = #tpu.dot_dimension_numbers<[1], [0], [0], [1], [0, 0, 1, 1], [], []>} : vector<2x32xbf16>, vector<32x128xbf16>, vector<2x128xf32> -> vector<2x128xf32>
    %525 = arith.addf %522, %524 : vector<2x128xf32>
    %526 = vector.extract_strided_slice %525 {offsets = [0, 0], sizes = [2, 96], strides = [1, 1]} : vector<2x128xf32> to vector<2x96xf32>
    %527 = arith.negf %526 : vector<2x96xf32>
    %528 = math.exp %527 : vector<2x96xf32>
    %cst_120 = arith.constant 1.000000e+00 : f32
    %529 = vector.broadcast %cst_120 : f32 to vector<2x96xf32>
    %530 = arith.addf %529, %528 : vector<2x96xf32>
    %531 = arith.divf %529, %530 : vector<2x96xf32>
    %532 = vector.extract_strided_slice %525 {offsets = [0, 96], sizes = [2, 32], strides = [1, 1]} : vector<2x128xf32> to vector<2x32xf32>
    %533 = math.tanh %532 : vector<2x32xf32>
    %534 = vector.extract_strided_slice %531 {offsets = [0, 0], sizes = [2, 32], strides = [1, 1]} : vector<2x96xf32> to vector<2x32xf32>
    %535 = vector.extract_strided_slice %531 {offsets = [0, 32], sizes = [2, 32], strides = [1, 1]} : vector<2x96xf32> to vector<2x32xf32>
    %536 = vector.extract_strided_slice %531 {offsets = [0, 64], sizes = [2, 32], strides = [1, 1]} : vector<2x96xf32> to vector<2x32xf32>
    %537 = arith.mulf %535, %499 : vector<2x32xf32>
    %538 = arith.mulf %534, %533 : vector<2x32xf32>
    %539 = arith.addf %537, %538 : vector<2x32xf32>
    %540 = math.tanh %539 : vector<2x32xf32>
    %541 = arith.mulf %536, %540 : vector<2x32xf32>
    %542 = vector.extract_strided_slice %413 {offsets = [6, 0], sizes = [2, 128], strides = [1, 1]} : vector<16x256xf32> to vector<2x128xf32>
    %543 = arith.truncf %521 : vector<2x32xf32> to vector<2x32xbf16>
    %cst_121 = arith.constant dense<0.000000e+00> : vector<2x128xf32>
    %544 = tpu.matmul %543, %415, %cst_121 {dimension_numbers = #tpu.dot_dimension_numbers<[1], [0], [0], [1], [0, 0, 1, 1], [], []>} : vector<2x32xbf16>, vector<32x128xbf16>, vector<2x128xf32> -> vector<2x128xf32>
    %545 = arith.addf %542, %544 : vector<2x128xf32>
    %546 = vector.extract_strided_slice %545 {offsets = [0, 0], sizes = [2, 96], strides = [1, 1]} : vector<2x128xf32> to vector<2x96xf32>
    %547 = arith.negf %546 : vector<2x96xf32>
    %548 = math.exp %547 : vector<2x96xf32>
    %cst_122 = arith.constant 1.000000e+00 : f32
    %549 = vector.broadcast %cst_122 : f32 to vector<2x96xf32>
    %550 = arith.addf %549, %548 : vector<2x96xf32>
    %551 = arith.divf %549, %550 : vector<2x96xf32>
    %552 = vector.extract_strided_slice %545 {offsets = [0, 96], sizes = [2, 32], strides = [1, 1]} : vector<2x128xf32> to vector<2x32xf32>
    %553 = math.tanh %552 : vector<2x32xf32>
    %554 = vector.extract_strided_slice %551 {offsets = [0, 0], sizes = [2, 32], strides = [1, 1]} : vector<2x96xf32> to vector<2x32xf32>
    %555 = vector.extract_strided_slice %551 {offsets = [0, 32], sizes = [2, 32], strides = [1, 1]} : vector<2x96xf32> to vector<2x32xf32>
    %556 = vector.extract_strided_slice %551 {offsets = [0, 64], sizes = [2, 32], strides = [1, 1]} : vector<2x96xf32> to vector<2x32xf32>
    %557 = arith.mulf %555, %519 : vector<2x32xf32>
    %558 = arith.mulf %554, %553 : vector<2x32xf32>
    %559 = arith.addf %557, %558 : vector<2x32xf32>
    %560 = math.tanh %559 : vector<2x32xf32>
    %561 = arith.mulf %556, %560 : vector<2x32xf32>
    %562 = vector.extract_strided_slice %413 {offsets = [8, 128], sizes = [2, 128], strides = [1, 1]} : vector<16x256xf32> to vector<2x128xf32>
    %563 = arith.truncf %541 : vector<2x32xf32> to vector<2x32xbf16>
    %cst_123 = arith.constant dense<0.000000e+00> : vector<2x128xf32>
    %564 = tpu.matmul %563, %417, %cst_123 {dimension_numbers = #tpu.dot_dimension_numbers<[1], [0], [0], [1], [0, 0, 1, 1], [], []>} : vector<2x32xbf16>, vector<32x128xbf16>, vector<2x128xf32> -> vector<2x128xf32>
    %565 = arith.addf %562, %564 : vector<2x128xf32>
    %566 = vector.extract_strided_slice %565 {offsets = [0, 0], sizes = [2, 96], strides = [1, 1]} : vector<2x128xf32> to vector<2x96xf32>
    %567 = arith.negf %566 : vector<2x96xf32>
    %568 = math.exp %567 : vector<2x96xf32>
    %cst_124 = arith.constant 1.000000e+00 : f32
    %569 = vector.broadcast %cst_124 : f32 to vector<2x96xf32>
    %570 = arith.addf %569, %568 : vector<2x96xf32>
    %571 = arith.divf %569, %570 : vector<2x96xf32>
    %572 = vector.extract_strided_slice %565 {offsets = [0, 96], sizes = [2, 32], strides = [1, 1]} : vector<2x128xf32> to vector<2x32xf32>
    %573 = math.tanh %572 : vector<2x32xf32>
    %574 = vector.extract_strided_slice %571 {offsets = [0, 0], sizes = [2, 32], strides = [1, 1]} : vector<2x96xf32> to vector<2x32xf32>
    %575 = vector.extract_strided_slice %571 {offsets = [0, 32], sizes = [2, 32], strides = [1, 1]} : vector<2x96xf32> to vector<2x32xf32>
    %576 = vector.extract_strided_slice %571 {offsets = [0, 64], sizes = [2, 32], strides = [1, 1]} : vector<2x96xf32> to vector<2x32xf32>
    %577 = arith.mulf %575, %539 : vector<2x32xf32>
    %578 = arith.mulf %574, %573 : vector<2x32xf32>
    %579 = arith.addf %577, %578 : vector<2x32xf32>
    %580 = math.tanh %579 : vector<2x32xf32>
    %581 = arith.mulf %576, %580 : vector<2x32xf32>
    %582 = vector.extract_strided_slice %413 {offsets = [8, 0], sizes = [2, 128], strides = [1, 1]} : vector<16x256xf32> to vector<2x128xf32>
    %583 = arith.truncf %561 : vector<2x32xf32> to vector<2x32xbf16>
    %cst_125 = arith.constant dense<0.000000e+00> : vector<2x128xf32>
    %584 = tpu.matmul %583, %415, %cst_125 {dimension_numbers = #tpu.dot_dimension_numbers<[1], [0], [0], [1], [0, 0, 1, 1], [], []>} : vector<2x32xbf16>, vector<32x128xbf16>, vector<2x128xf32> -> vector<2x128xf32>
    %585 = arith.addf %582, %584 : vector<2x128xf32>
    %586 = vector.extract_strided_slice %585 {offsets = [0, 0], sizes = [2, 96], strides = [1, 1]} : vector<2x128xf32> to vector<2x96xf32>
    %587 = arith.negf %586 : vector<2x96xf32>
    %588 = math.exp %587 : vector<2x96xf32>
    %cst_126 = arith.constant 1.000000e+00 : f32
    %589 = vector.broadcast %cst_126 : f32 to vector<2x96xf32>
    %590 = arith.addf %589, %588 : vector<2x96xf32>
    %591 = arith.divf %589, %590 : vector<2x96xf32>
    %592 = vector.extract_strided_slice %585 {offsets = [0, 96], sizes = [2, 32], strides = [1, 1]} : vector<2x128xf32> to vector<2x32xf32>
    %593 = math.tanh %592 : vector<2x32xf32>
    %594 = vector.extract_strided_slice %591 {offsets = [0, 0], sizes = [2, 32], strides = [1, 1]} : vector<2x96xf32> to vector<2x32xf32>
    %595 = vector.extract_strided_slice %591 {offsets = [0, 32], sizes = [2, 32], strides = [1, 1]} : vector<2x96xf32> to vector<2x32xf32>
    %596 = vector.extract_strided_slice %591 {offsets = [0, 64], sizes = [2, 32], strides = [1, 1]} : vector<2x96xf32> to vector<2x32xf32>
    %597 = arith.mulf %595, %559 : vector<2x32xf32>
    %598 = arith.mulf %594, %593 : vector<2x32xf32>
    %599 = arith.addf %597, %598 : vector<2x32xf32>
    %600 = math.tanh %599 : vector<2x32xf32>
    %601 = arith.mulf %596, %600 : vector<2x32xf32>
    %602 = vector.extract_strided_slice %413 {offsets = [6, 128], sizes = [2, 128], strides = [1, 1]} : vector<16x256xf32> to vector<2x128xf32>
    %603 = arith.truncf %581 : vector<2x32xf32> to vector<2x32xbf16>
    %cst_127 = arith.constant dense<0.000000e+00> : vector<2x128xf32>
    %604 = tpu.matmul %603, %417, %cst_127 {dimension_numbers = #tpu.dot_dimension_numbers<[1], [0], [0], [1], [0, 0, 1, 1], [], []>} : vector<2x32xbf16>, vector<32x128xbf16>, vector<2x128xf32> -> vector<2x128xf32>
    %605 = arith.addf %602, %604 : vector<2x128xf32>
    %606 = vector.extract_strided_slice %605 {offsets = [0, 0], sizes = [2, 96], strides = [1, 1]} : vector<2x128xf32> to vector<2x96xf32>
    %607 = arith.negf %606 : vector<2x96xf32>
    %608 = math.exp %607 : vector<2x96xf32>
    %cst_128 = arith.constant 1.000000e+00 : f32
    %609 = vector.broadcast %cst_128 : f32 to vector<2x96xf32>
    %610 = arith.addf %609, %608 : vector<2x96xf32>
    %611 = arith.divf %609, %610 : vector<2x96xf32>
    %612 = vector.extract_strided_slice %605 {offsets = [0, 96], sizes = [2, 32], strides = [1, 1]} : vector<2x128xf32> to vector<2x32xf32>
    %613 = math.tanh %612 : vector<2x32xf32>
    %614 = vector.extract_strided_slice %611 {offsets = [0, 0], sizes = [2, 32], strides = [1, 1]} : vector<2x96xf32> to vector<2x32xf32>
    %615 = vector.extract_strided_slice %611 {offsets = [0, 32], sizes = [2, 32], strides = [1, 1]} : vector<2x96xf32> to vector<2x32xf32>
    %616 = vector.extract_strided_slice %611 {offsets = [0, 64], sizes = [2, 32], strides = [1, 1]} : vector<2x96xf32> to vector<2x32xf32>
    %617 = arith.mulf %615, %579 : vector<2x32xf32>
    %618 = arith.mulf %614, %613 : vector<2x32xf32>
    %619 = arith.addf %617, %618 : vector<2x32xf32>
    %620 = math.tanh %619 : vector<2x32xf32>
    %621 = arith.mulf %616, %620 : vector<2x32xf32>
    %622 = vector.extract_strided_slice %413 {offsets = [10, 0], sizes = [2, 128], strides = [1, 1]} : vector<16x256xf32> to vector<2x128xf32>
    %623 = arith.truncf %601 : vector<2x32xf32> to vector<2x32xbf16>
    %cst_129 = arith.constant dense<0.000000e+00> : vector<2x128xf32>
    %624 = tpu.matmul %623, %415, %cst_129 {dimension_numbers = #tpu.dot_dimension_numbers<[1], [0], [0], [1], [0, 0, 1, 1], [], []>} : vector<2x32xbf16>, vector<32x128xbf16>, vector<2x128xf32> -> vector<2x128xf32>
    %625 = arith.addf %622, %624 : vector<2x128xf32>
    %626 = vector.extract_strided_slice %625 {offsets = [0, 0], sizes = [2, 96], strides = [1, 1]} : vector<2x128xf32> to vector<2x96xf32>
    %627 = arith.negf %626 : vector<2x96xf32>
    %628 = math.exp %627 : vector<2x96xf32>
    %cst_130 = arith.constant 1.000000e+00 : f32
    %629 = vector.broadcast %cst_130 : f32 to vector<2x96xf32>
    %630 = arith.addf %629, %628 : vector<2x96xf32>
    %631 = arith.divf %629, %630 : vector<2x96xf32>
    %632 = vector.extract_strided_slice %625 {offsets = [0, 96], sizes = [2, 32], strides = [1, 1]} : vector<2x128xf32> to vector<2x32xf32>
    %633 = math.tanh %632 : vector<2x32xf32>
    %634 = vector.extract_strided_slice %631 {offsets = [0, 0], sizes = [2, 32], strides = [1, 1]} : vector<2x96xf32> to vector<2x32xf32>
    %635 = vector.extract_strided_slice %631 {offsets = [0, 32], sizes = [2, 32], strides = [1, 1]} : vector<2x96xf32> to vector<2x32xf32>
    %636 = vector.extract_strided_slice %631 {offsets = [0, 64], sizes = [2, 32], strides = [1, 1]} : vector<2x96xf32> to vector<2x32xf32>
    %637 = arith.mulf %635, %599 : vector<2x32xf32>
    %638 = arith.mulf %634, %633 : vector<2x32xf32>
    %639 = arith.addf %637, %638 : vector<2x32xf32>
    %640 = math.tanh %639 : vector<2x32xf32>
    %641 = arith.mulf %636, %640 : vector<2x32xf32>
    %642 = vector.extract_strided_slice %413 {offsets = [4, 128], sizes = [2, 128], strides = [1, 1]} : vector<16x256xf32> to vector<2x128xf32>
    %643 = arith.truncf %621 : vector<2x32xf32> to vector<2x32xbf16>
    %cst_131 = arith.constant dense<0.000000e+00> : vector<2x128xf32>
    %644 = tpu.matmul %643, %417, %cst_131 {dimension_numbers = #tpu.dot_dimension_numbers<[1], [0], [0], [1], [0, 0, 1, 1], [], []>} : vector<2x32xbf16>, vector<32x128xbf16>, vector<2x128xf32> -> vector<2x128xf32>
    %645 = arith.addf %642, %644 : vector<2x128xf32>
    %646 = vector.extract_strided_slice %645 {offsets = [0, 0], sizes = [2, 96], strides = [1, 1]} : vector<2x128xf32> to vector<2x96xf32>
    %647 = arith.negf %646 : vector<2x96xf32>
    %648 = math.exp %647 : vector<2x96xf32>
    %cst_132 = arith.constant 1.000000e+00 : f32
    %649 = vector.broadcast %cst_132 : f32 to vector<2x96xf32>
    %650 = arith.addf %649, %648 : vector<2x96xf32>
    %651 = arith.divf %649, %650 : vector<2x96xf32>
    %652 = vector.extract_strided_slice %645 {offsets = [0, 96], sizes = [2, 32], strides = [1, 1]} : vector<2x128xf32> to vector<2x32xf32>
    %653 = math.tanh %652 : vector<2x32xf32>
    %654 = vector.extract_strided_slice %651 {offsets = [0, 0], sizes = [2, 32], strides = [1, 1]} : vector<2x96xf32> to vector<2x32xf32>
    %655 = vector.extract_strided_slice %651 {offsets = [0, 32], sizes = [2, 32], strides = [1, 1]} : vector<2x96xf32> to vector<2x32xf32>
    %656 = vector.extract_strided_slice %651 {offsets = [0, 64], sizes = [2, 32], strides = [1, 1]} : vector<2x96xf32> to vector<2x32xf32>
    %657 = arith.mulf %655, %619 : vector<2x32xf32>
    %658 = arith.mulf %654, %653 : vector<2x32xf32>
    %659 = arith.addf %657, %658 : vector<2x32xf32>
    %660 = math.tanh %659 : vector<2x32xf32>
    %661 = arith.mulf %656, %660 : vector<2x32xf32>
    %662 = vector.extract_strided_slice %413 {offsets = [12, 0], sizes = [2, 128], strides = [1, 1]} : vector<16x256xf32> to vector<2x128xf32>
    %663 = arith.truncf %641 : vector<2x32xf32> to vector<2x32xbf16>
    %cst_133 = arith.constant dense<0.000000e+00> : vector<2x128xf32>
    %664 = tpu.matmul %663, %415, %cst_133 {dimension_numbers = #tpu.dot_dimension_numbers<[1], [0], [0], [1], [0, 0, 1, 1], [], []>} : vector<2x32xbf16>, vector<32x128xbf16>, vector<2x128xf32> -> vector<2x128xf32>
    %665 = arith.addf %662, %664 : vector<2x128xf32>
    %666 = vector.extract_strided_slice %665 {offsets = [0, 0], sizes = [2, 96], strides = [1, 1]} : vector<2x128xf32> to vector<2x96xf32>
    %667 = arith.negf %666 : vector<2x96xf32>
    %668 = math.exp %667 : vector<2x96xf32>
    %cst_134 = arith.constant 1.000000e+00 : f32
    %669 = vector.broadcast %cst_134 : f32 to vector<2x96xf32>
    %670 = arith.addf %669, %668 : vector<2x96xf32>
    %671 = arith.divf %669, %670 : vector<2x96xf32>
    %672 = vector.extract_strided_slice %665 {offsets = [0, 96], sizes = [2, 32], strides = [1, 1]} : vector<2x128xf32> to vector<2x32xf32>
    %673 = math.tanh %672 : vector<2x32xf32>
    %674 = vector.extract_strided_slice %671 {offsets = [0, 0], sizes = [2, 32], strides = [1, 1]} : vector<2x96xf32> to vector<2x32xf32>
    %675 = vector.extract_strided_slice %671 {offsets = [0, 32], sizes = [2, 32], strides = [1, 1]} : vector<2x96xf32> to vector<2x32xf32>
    %676 = vector.extract_strided_slice %671 {offsets = [0, 64], sizes = [2, 32], strides = [1, 1]} : vector<2x96xf32> to vector<2x32xf32>
    %677 = arith.mulf %675, %639 : vector<2x32xf32>
    %678 = arith.mulf %674, %673 : vector<2x32xf32>
    %679 = arith.addf %677, %678 : vector<2x32xf32>
    %680 = math.tanh %679 : vector<2x32xf32>
    %681 = arith.mulf %676, %680 : vector<2x32xf32>
    %682 = vector.extract_strided_slice %413 {offsets = [2, 128], sizes = [2, 128], strides = [1, 1]} : vector<16x256xf32> to vector<2x128xf32>
    %683 = arith.truncf %661 : vector<2x32xf32> to vector<2x32xbf16>
    %cst_135 = arith.constant dense<0.000000e+00> : vector<2x128xf32>
    %684 = tpu.matmul %683, %417, %cst_135 {dimension_numbers = #tpu.dot_dimension_numbers<[1], [0], [0], [1], [0, 0, 1, 1], [], []>} : vector<2x32xbf16>, vector<32x128xbf16>, vector<2x128xf32> -> vector<2x128xf32>
    %685 = arith.addf %682, %684 : vector<2x128xf32>
    %686 = vector.extract_strided_slice %685 {offsets = [0, 0], sizes = [2, 96], strides = [1, 1]} : vector<2x128xf32> to vector<2x96xf32>
    %687 = arith.negf %686 : vector<2x96xf32>
    %688 = math.exp %687 : vector<2x96xf32>
    %cst_136 = arith.constant 1.000000e+00 : f32
    %689 = vector.broadcast %cst_136 : f32 to vector<2x96xf32>
    %690 = arith.addf %689, %688 : vector<2x96xf32>
    %691 = arith.divf %689, %690 : vector<2x96xf32>
    %692 = vector.extract_strided_slice %685 {offsets = [0, 96], sizes = [2, 32], strides = [1, 1]} : vector<2x128xf32> to vector<2x32xf32>
    %693 = math.tanh %692 : vector<2x32xf32>
    %694 = vector.extract_strided_slice %691 {offsets = [0, 0], sizes = [2, 32], strides = [1, 1]} : vector<2x96xf32> to vector<2x32xf32>
    %695 = vector.extract_strided_slice %691 {offsets = [0, 32], sizes = [2, 32], strides = [1, 1]} : vector<2x96xf32> to vector<2x32xf32>
    %696 = vector.extract_strided_slice %691 {offsets = [0, 64], sizes = [2, 32], strides = [1, 1]} : vector<2x96xf32> to vector<2x32xf32>
    %697 = arith.mulf %695, %659 : vector<2x32xf32>
    %698 = arith.mulf %694, %693 : vector<2x32xf32>
    %699 = arith.addf %697, %698 : vector<2x32xf32>
    %700 = math.tanh %699 : vector<2x32xf32>
    %701 = arith.mulf %696, %700 : vector<2x32xf32>
    %702 = vector.extract_strided_slice %413 {offsets = [14, 0], sizes = [2, 128], strides = [1, 1]} : vector<16x256xf32> to vector<2x128xf32>
    %703 = arith.truncf %681 : vector<2x32xf32> to vector<2x32xbf16>
    %cst_137 = arith.constant dense<0.000000e+00> : vector<2x128xf32>
    %704 = tpu.matmul %703, %415, %cst_137 {dimension_numbers = #tpu.dot_dimension_numbers<[1], [0], [0], [1], [0, 0, 1, 1], [], []>} : vector<2x32xbf16>, vector<32x128xbf16>, vector<2x128xf32> -> vector<2x128xf32>
    %705 = arith.addf %702, %704 : vector<2x128xf32>
    %706 = vector.extract_strided_slice %705 {offsets = [0, 0], sizes = [2, 96], strides = [1, 1]} : vector<2x128xf32> to vector<2x96xf32>
    %707 = arith.negf %706 : vector<2x96xf32>
    %708 = math.exp %707 : vector<2x96xf32>
    %cst_138 = arith.constant 1.000000e+00 : f32
    %709 = vector.broadcast %cst_138 : f32 to vector<2x96xf32>
    %710 = arith.addf %709, %708 : vector<2x96xf32>
    %711 = arith.divf %709, %710 : vector<2x96xf32>
    %712 = vector.extract_strided_slice %705 {offsets = [0, 96], sizes = [2, 32], strides = [1, 1]} : vector<2x128xf32> to vector<2x32xf32>
    %713 = math.tanh %712 : vector<2x32xf32>
    %714 = vector.extract_strided_slice %711 {offsets = [0, 0], sizes = [2, 32], strides = [1, 1]} : vector<2x96xf32> to vector<2x32xf32>
    %715 = vector.extract_strided_slice %711 {offsets = [0, 32], sizes = [2, 32], strides = [1, 1]} : vector<2x96xf32> to vector<2x32xf32>
    %716 = vector.extract_strided_slice %711 {offsets = [0, 64], sizes = [2, 32], strides = [1, 1]} : vector<2x96xf32> to vector<2x32xf32>
    %717 = arith.mulf %715, %679 : vector<2x32xf32>
    %718 = arith.mulf %714, %713 : vector<2x32xf32>
    %719 = arith.addf %717, %718 : vector<2x32xf32>
    %720 = math.tanh %719 : vector<2x32xf32>
    %721 = arith.mulf %716, %720 : vector<2x32xf32>
    %722 = vector.extract_strided_slice %413 {offsets = [0, 128], sizes = [2, 128], strides = [1, 1]} : vector<16x256xf32> to vector<2x128xf32>
    %723 = arith.truncf %701 : vector<2x32xf32> to vector<2x32xbf16>
    %cst_139 = arith.constant dense<0.000000e+00> : vector<2x128xf32>
    %724 = tpu.matmul %723, %417, %cst_139 {dimension_numbers = #tpu.dot_dimension_numbers<[1], [0], [0], [1], [0, 0, 1, 1], [], []>} : vector<2x32xbf16>, vector<32x128xbf16>, vector<2x128xf32> -> vector<2x128xf32>
    %725 = arith.addf %722, %724 : vector<2x128xf32>
    %726 = vector.extract_strided_slice %725 {offsets = [0, 0], sizes = [2, 96], strides = [1, 1]} : vector<2x128xf32> to vector<2x96xf32>
    %727 = arith.negf %726 : vector<2x96xf32>
    %728 = math.exp %727 : vector<2x96xf32>
    %cst_140 = arith.constant 1.000000e+00 : f32
    %729 = vector.broadcast %cst_140 : f32 to vector<2x96xf32>
    %730 = arith.addf %729, %728 : vector<2x96xf32>
    %731 = arith.divf %729, %730 : vector<2x96xf32>
    %732 = vector.extract_strided_slice %725 {offsets = [0, 96], sizes = [2, 32], strides = [1, 1]} : vector<2x128xf32> to vector<2x32xf32>
    %733 = math.tanh %732 : vector<2x32xf32>
    %734 = vector.extract_strided_slice %731 {offsets = [0, 0], sizes = [2, 32], strides = [1, 1]} : vector<2x96xf32> to vector<2x32xf32>
    %735 = vector.extract_strided_slice %731 {offsets = [0, 32], sizes = [2, 32], strides = [1, 1]} : vector<2x96xf32> to vector<2x32xf32>
    %736 = vector.extract_strided_slice %731 {offsets = [0, 64], sizes = [2, 32], strides = [1, 1]} : vector<2x96xf32> to vector<2x32xf32>
    %737 = arith.mulf %735, %699 : vector<2x32xf32>
    %738 = arith.mulf %734, %733 : vector<2x32xf32>
    %739 = arith.addf %737, %738 : vector<2x32xf32>
    %740 = math.tanh %739 : vector<2x32xf32>
    %741 = arith.mulf %736, %740 : vector<2x32xf32>
    %742 = arith.truncf %721 : vector<2x32xf32> to vector<2x32xbf16>
    %cst_141 = arith.constant dense<0.000000e+00> : vector<2x32xf32>
    %743 = tpu.matmul %742, %0, %cst_141 {dimension_numbers = #tpu.dot_dimension_numbers<[1], [0], [0], [1], [0, 0, 1, 1], [], []>} : vector<2x32xbf16>, vector<32x32xbf16>, vector<2x32xf32> -> vector<2x32xf32>
    %744 = vector.broadcast %1 : vector<1x32xf32> to vector<2x32xf32>
    %745 = arith.addf %743, %744 : vector<2x32xf32>
    %746 = vector.extract_strided_slice %745 {offsets = [0, 0], sizes = [2, 16], strides = [1, 1]} : vector<2x32xf32> to vector<2x16xf32>
    %747 = vector.extract_strided_slice %745 {offsets = [0, 16], sizes = [2, 16], strides = [1, 1]} : vector<2x32xf32> to vector<2x16xf32>
    %cst_142 = arith.constant 5.000000e-01 : f32
    %748 = vector.broadcast %cst_142 : f32 to vector<2x16xf32>
    %749 = arith.mulf %748, %747 : vector<2x16xf32>
    %750 = math.exp %749 : vector<2x16xf32>
    %751 = vector.extract_strided_slice %2 {offsets = [4, 0], sizes = [2, 16], strides = [1, 1]} : vector<8x16xf32> to vector<2x16xf32>
    %752 = arith.mulf %750, %751 : vector<2x16xf32>
    %753 = arith.addf %746, %752 : vector<2x16xf32>
    %c4_143 = arith.constant 4 : index
    %c0_144 = arith.constant 0 : index
    %754 = vector.load %arg8[%c4_143, %c0_144] : memref<8x16xf32, #tpu.memory_space<vmem>>, vector<2x16xf32>
    tpu.vector_store %arg8[%c4_143, %c0_144], %753 {strides = array<i32>} : memref<8x16xf32, #tpu.memory_space<vmem>>, vector<2x16xf32>,
    %cst_145 = arith.constant 1.000000e+00 : f32
    %755 = vector.broadcast %cst_145 : f32 to vector<2x16xf32>
    %756 = arith.addf %755, %747 : vector<2x16xf32>
    %757 = arith.mulf %746, %746 : vector<2x16xf32>
    %758 = arith.subf %756, %757 : vector<2x16xf32>
    %759 = math.exp %747 : vector<2x16xf32>
    %760 = arith.subf %758, %759 : vector<2x16xf32>
    %cst_146 = arith.constant dense<0.000000e+00> : vector<2xf32>
    %761 = vector.multi_reduction <add>, %760, %cst_146 [1] : vector<2x16xf32> to vector<2xf32>
    %762 = vector.shape_cast %761 : vector<2xf32> to vector<2x1xf32>
    %cst_147 = arith.constant dense<0.000000e+00> : vector<1xf32>
    %763 = vector.multi_reduction <add>, %762, %cst_147 [0] : vector<2x1xf32> to vector<1xf32>
    %764 = vector.shape_cast %763 : vector<1xf32> to vector<1x1xf32>
    %765 = arith.addf %404, %764 : vector<1x1xf32>
    %766 = arith.truncf %741 : vector<2x32xf32> to vector<2x32xbf16>
    %cst_148 = arith.constant dense<0.000000e+00> : vector<2x32xf32>
    %767 = tpu.matmul %766, %0, %cst_148 {dimension_numbers = #tpu.dot_dimension_numbers<[1], [0], [0], [1], [0, 0, 1, 1], [], []>} : vector<2x32xbf16>, vector<32x32xbf16>, vector<2x32xf32> -> vector<2x32xf32>
    %768 = vector.broadcast %1 : vector<1x32xf32> to vector<2x32xf32>
    %769 = arith.addf %767, %768 : vector<2x32xf32>
    %770 = vector.extract_strided_slice %769 {offsets = [0, 0], sizes = [2, 16], strides = [1, 1]} : vector<2x32xf32> to vector<2x16xf32>
    %771 = vector.extract_strided_slice %769 {offsets = [0, 16], sizes = [2, 16], strides = [1, 1]} : vector<2x32xf32> to vector<2x16xf32>
    %cst_149 = arith.constant 5.000000e-01 : f32
    %772 = vector.broadcast %cst_149 : f32 to vector<2x16xf32>
    %773 = arith.mulf %772, %771 : vector<2x16xf32>
    %774 = math.exp %773 : vector<2x16xf32>
    %775 = vector.extract_strided_slice %2 {offsets = [6, 0], sizes = [2, 16], strides = [1, 1]} : vector<8x16xf32> to vector<2x16xf32>
    %776 = arith.mulf %774, %775 : vector<2x16xf32>
    %777 = arith.addf %770, %776 : vector<2x16xf32>
    %c6_150 = arith.constant 6 : index
    %c0_151 = arith.constant 0 : index
    %778 = vector.load %arg8[%c6_150, %c0_151] : memref<8x16xf32, #tpu.memory_space<vmem>>, vector<2x16xf32>
    tpu.vector_store %arg8[%c6_150, %c0_151], %777 {strides = array<i32>} : memref<8x16xf32, #tpu.memory_space<vmem>>, vector<2x16xf32>,
    %cst_152 = arith.constant 1.000000e+00 : f32
    %779 = vector.broadcast %cst_152 : f32 to vector<2x16xf32>
    %780 = arith.addf %779, %771 : vector<2x16xf32>
    %781 = arith.mulf %770, %770 : vector<2x16xf32>
    %782 = arith.subf %780, %781 : vector<2x16xf32>
    %783 = math.exp %771 : vector<2x16xf32>
    %784 = arith.subf %782, %783 : vector<2x16xf32>
    %cst_153 = arith.constant dense<0.000000e+00> : vector<2xf32>
    %785 = vector.multi_reduction <add>, %784, %cst_153 [1] : vector<2x16xf32> to vector<2xf32>
    %786 = vector.shape_cast %785 : vector<2xf32> to vector<2x1xf32>
    %cst_154 = arith.constant dense<0.000000e+00> : vector<1xf32>
    %787 = vector.multi_reduction <add>, %786, %cst_154 [0] : vector<2x1xf32> to vector<1xf32>
    %788 = vector.shape_cast %787 : vector<1xf32> to vector<1x1xf32>
    %789 = arith.addf %765, %788 : vector<1x1xf32>
    %cst_155 = arith.constant -3.906250e-03 : f32
    %790 = vector.broadcast %cst_155 : f32 to vector<1x1xf32>
    %791 = arith.mulf %790, %789 : vector<1x1xf32>
    %c0_156 = arith.constant 0 : index
    %c0_157 = arith.constant 0 : index
    %792 = vector.load %arg9[%c0_156, %c0_157] : memref<1x1xf32, #tpu.memory_space<vmem>>, vector<1x1xf32>
    tpu.vector_store %arg9[%c0_156, %c0_157], %791 {strides = array<i32>} : memref<1x1xf32, #tpu.memory_space<vmem>>, vector<1x1xf32>,
    return
  }
}

</mosaic_0001>

<bundles_post_ra>
// kernel: tpu_custom_call.1
= control target key start
LH: loop header
LB: loop body
LE: loop exit
PB: predicated region body
PF: predicated region fallthrough
CT: control target
= control target key end

     0   :  { %15 = vsyncpa [#allocation5], 0  ;;  %s5245_s0 = inlined_call_operand.hbm [shape: f32[16,64], index: 0, kind: input, shape index: {}]   ;;  %s5246_s1 = inlined_call_operand.hbm [shape: f32[2,2,64], index: 1, kind: input, shape index: {}]   ;;  %s5247_s2 = inlined_call_operand.hbm [shape: bf16[2,64,256], index: 2, kind: input, shape index: {}]   ;;  %s5248_s3 = inlined_call_operand.hbm [shape: bf16[4,32,128], index: 3, kind: input, shape index: {}]   ;;  %s5249_s4 = inlined_call_operand.vmem [shape: f32[2,1,256], index: 4, kind: input, shape index: {}]   ;;  %s5250_s5 = inlined_call_operand.hbm [shape: bf16[32,32], index: 5, kind: input, shape index: {}]   ;;  %s5251_s6 = inlined_call_operand.hbm [shape: f32[1,32], index: 6, kind: input, shape index: {}]   ;;  %s5252_s7 = inlined_call_operand.vmem [shape: f32[8,16], index: 7, kind: input, shape index: {}]   ;;  %s5253_s8 = inlined_call_operand.hbm [shape: f32[8,16], index: 8, kind: output, shape index: {0}]   ;;  %s5254_s9 = inlined_call_operand.hbm [shape: f32[1,1], index: 9, kind: output, shape index: {1}]  }
   0x1   :  { %16 = vsyncpa [#allocation8], 0 }
   0x2   :  { %17 = vsyncpa [#allocation11], 0 }
   0x3   :  { %18 = vsyncpa [#allocation14], 0 }
   0x4   :  { %19 = vsyncpa [#allocation6], 0 }
   0x5   :  { %20 = vsyncpa [#allocation17], 0  ;;  %s4381_s30 = smov [#allocation7]  }
   0x6   :  { %s38_s10 = sshll.u32 %s4381_s30, 4  ;;  %s39_s10 = int_to_ptr.vmem [resolvable:$true] %s38_s10 }
   0x7   :  { %s4217_s11 = scalar_lea.vmem %s39_s10, 64  ;;  %p4222_p1 = scmp.lt.s32.totalorder %s39_s10, %s39_s10 }
   0x8   :  { %p4218_p0 = scmp.ne.s32.totalorder %s39_s10, %s4217_s11  ;;  %p4223_p2 = scmp.lt.s32.totalorder %s4217_s11, %s4217_s11 }
   0xa   :  { %p4224_p3 = por %p4223_p2, %p4222_p1 }
   0xc   :  { %p4225_p4 = pnand %p4224_p3, %p4218_p0 }
   0xe   :  { %4228 = shalt.err (!%p4225_p4)
}
   0xf   :  { %s4382_s12 = smov 32   ;;  %s4383_s13 = smov 2  }
  0x10   :  { %44 = dma.hbm_to_vmem [thread:$0]  %s5246_s1, 64, %s39_s10, [#allocation8], %s4382_s12, %s4382_s12, %s4383_s13  }
  0x11   :  { %s4384_s16 = smov [#allocation10]  }
  0x12   :  { %s62_s17 = sshll.u32 %s4384_s16, 4  ;;  %s63_s17 = int_to_ptr.vmem [resolvable:$true] %s62_s17 }
  0x13   :  { %s4237_s18 = scalar_lea.vmem %s63_s17, 1024  ;;  %p4242_p6 = scmp.lt.s32.totalorder %s63_s17, %s63_s17 }
  0x14   :  { %p4238_p5 = scmp.ne.s32.totalorder %s63_s17, %s4237_s18  ;;  %p4243_p7 = scmp.lt.s32.totalorder %s4237_s18, %s4237_s18 }
  0x16   :  { %p4244_p8 = por %p4243_p7, %p4242_p6 }
  0x18   :  { %p4245_p9 = pnand %p4244_p8, %p4238_p5 }
  0x1a   :  { %4248 = shalt.err (!%p4245_p9)
}
  0x1b   :  { %s4385_s19 = smov 64   ;;  %s4386_s20 = smov 4  }
  0x1c   :  { %68 = dma.hbm_to_vmem [thread:$0]  %s5248_s3, 1024, %s63_s17, [#allocation11], %s4385_s19, %s4385_s19, %s4386_s20  }
  0x1d   :  { %s4387_s1 = smov [#allocation4]  }
  0x1e   :  { %s26_s23 = sshll.u32 %s4387_s1, 4  ;;  %s27_s23 = int_to_ptr.vmem [resolvable:$true] %s26_s23 }
  0x1f   :  { %s4257_s24 = scalar_lea.vmem %s27_s23, 256  ;;  %p4262_p11 = scmp.lt.s32.totalorder %s27_s23, %s27_s23 }
  0x20   :  { %p4258_p10 = scmp.ne.s32.totalorder %s27_s23, %s4257_s24  ;;  %p4263_p12 = scmp.lt.s32.totalorder %s4257_s24, %s4257_s24 }
  0x22   :  { %p4264_p13 = por %p4263_p12, %p4262_p11 }
  0x24   :  { %p4265_p0 = pnand %p4264_p13, %p4258_p10 }
  0x26   :  { %4268 = shalt.err (!%p4265_p0)
}
  0x27   :  { %s4388_s25 = smov 128   ;;  %s4389_s26 = smov 8  }
  0x28   :  { %32 = dma.hbm_to_vmem [thread:$0]  %s5245_s0, 256, %s27_s23, [#allocation5], %s4388_s25, %s4388_s25, %s4389_s26  }
  0x29   :  { %s4390_s29 = smov [#allocation9]   ;;  %s4391_s3 = smov [#allocation12]  }
  0x2a   :  { %s50_s30 = sshll.u32 %s4390_s29, 4  ;;  %s76_s10 = sshll.u32 %s4391_s3, 4  ;;  %s51_s30 = int_to_ptr.vmem [resolvable:$true] %s50_s30  ;;  %s77_s10 = int_to_ptr.vmem [resolvable:$true] %s76_s10 }
  0x2b   :  { %s4277_s11 = scalar_lea.vmem %s51_s30, 2048  ;;  %p4282_p2 = scmp.lt.s32.totalorder %s51_s30, %s51_s30 }
  0x2c   :  { %p4278_p1 = scmp.ne.s32.totalorder %s51_s30, %s4277_s11  ;;  %p4283_p3 = scmp.lt.s32.totalorder %s4277_s11, %s4277_s11 }
  0x2e   :  { %p4284_p4 = por %p4283_p3, %p4282_p2 }
  0x30   :  { %p4285_p5 = pnand %p4284_p4, %p4278_p1 }
  0x32   :  { %4288 = shalt.err (!%p4285_p5)
}
  0x33   :  { %56 = dma.hbm_to_vmem [thread:$0]  %s5247_s2, 2048, %s51_s30, [#allocation8], %s4388_s25, %s4388_s25, %s4389_s26  }
  0x34   :  { %s4297_s15 = scalar_lea.vmem %s77_s10, 256  ;;  %p4302_p7 = scmp.lt.s32.totalorder %s77_s10, %s77_s10 }
  0x35   :  { %p4298_p6 = scmp.ne.s32.totalorder %s77_s10, %s4297_s15  ;;  %p4303_p8 = scmp.lt.s32.totalorder %s4297_s15, %s4297_s15 }
  0x37   :  { %p4304_p9 = por %p4303_p8, %p4302_p7 }
  0x39   :  { %p4305_p10 = pnand %p4304_p9, %p4298_p6 }
  0x3b   :  { %4308 = shalt.err (!%p4305_p10)
}
  0x3c   :  { %82 = dma.hbm_to_vmem [thread:$0]  %s5250_s5, 256, %s77_s10, [#allocation11], %s4385_s19, %s4385_s19, %s4386_s20  }
  0x3d   :  { %s4392_s17 = smov [#allocation13]  }
  0x3e   :  { %s89_s18 = sshll.u32 %s4392_s17, 4  ;;  %s90_s18 = int_to_ptr.vmem [resolvable:$true] %s89_s18 }
  0x3f   :  { %s4317_s21 = scalar_lea.vmem %s90_s18, 16  ;;  %s4321_s2 = scalar_lea.vmem %s90_s18, 32 }
  0x40   :  { %p4318_p11 = scmp.ne.s32.totalorder %s90_s18, %s4317_s21  ;;  %p4322_p12 = scmp.lt.s32.totalorder %s90_s18, %s90_s18 }
  0x41   :  { %p4323_p13 = scmp.lt.s32.totalorder %s4321_s2, %s4317_s21 }
  0x43   :  { %p4324_p0 = por %p4323_p13, %p4322_p12 }
  0x45   :  { %p4325_p1 = pnand %p4324_p0, %p4318_p11 }
  0x47   :  { %4328 = shalt.err (!%p4325_p1)
}
  0x48   :  { %92 = dma.hbm_to_vmem [thread:$0]  %s5251_s6, 16, %s90_s18, [#allocation14]  }
  0x49   :  { %4369 = dma.done.wait [#allocation5], 256  }
  0x4a   :  { %4370 = vsyncadd [#allocation5], 4294967040 }
  0x4b   :  { %4371 = dma.done.wait [#allocation8], 2112  }
  0x4c   :  { %4372 = vsyncadd [#allocation8], 4294965184 }
  0x4d   :  { %4373 = dma.done.wait [#allocation11], 1280  }
  0x4e   :  { %4374 = vsyncadd [#allocation11], 4294966016 }
  0x4f   :  { %4375 = dma.done.wait [#allocation14], 16  }
  0x50   :  { %4376 = vsyncadd [#allocation14], 4294967280  ;;  %v4393_v0 = vmov 0.0   ;;  %v4394_v1 = vmov 0   ;;  %vm4395_vm0 = vmmov 0   ;;  %s4396_s5 = smov 96   ;;  %v133_v20 = vlaneseq }
  0x51   :  { %3593 = vmatprep.subr.bf16.mxu1 %v4393_v0  ;;  %219 = vmatprep.mubr.bf16.mxu0 %v4394_v1  ;;  %v4481_v2 = vld [vmem:[#allocation7] sm:$0x3]  ;;  %v3903_v5 = vld [vmem:[#allocation9 + $0x30] ss:$8 sps:$4 sm:$0xff]   ;;  %v3904_v6 = vld [vmem:[#allocation9 + $0x24] ss:$8 sps:$4 sm:$0xff]  }
  0x52   :  { %3597 = vmatprep.mubr.msk.bf16.mxu1 %vm4395_vm0, %v4393_v0  ;;  %v240_v3 = vpack.c.bf16 %v4481_v2, %v4481_v2  ;;  %v3901_v4 = vld [vmem:[#allocation9 + $0x34] ss:$8 sps:$4 sm:$0xff]   ;;  %v3906_v7 = vld [vmem:[#allocation9 + $0x20] ss:$8 sps:$4 sm:$0xff]   ;;  %v3909_v11 = vld [vmem:[#allocation9 + $0x10] ss:$8 sps:$4 sm:$0xff]  }
  0x53   :  { %195 = vmatprep.subr.bf16.mxu0 %v3901_v4  ;;  %v3907_v8 = vld [vmem:[#allocation9 + $0x14] ss:$8 sps:$4 sm:$0xff]   ;;  %v4486_v9 = vld [vmem:[#allocation10 + $0x8] sm:$0xff]   ;;  %v4489_v10 = vld [vmem:[#allocation10] sm:$0xff]   ;;  %vm253_vm1 = vcmask 261120   ;;  %vm183_vm2 = vcmask 523264  }
  0x54   :  { %333 = vrot.lane.b32.xlu0 %v240_v3, %s4396_s5  ;;  %196 = vmatpush1.bf16.msra.mxu0 %v3903_v5  ;;  %v3911_v12 = vld [vmem:[#allocation9 + $0x4] ss:$8 sps:$4 sm:$0xff]   ;;  %v3913_v13 = vld [vmem:[#allocation9] ss:$8 sps:$4 sm:$0xff]   ;;  %v130_v15 = vld [vmem:[#allocation4 + $0x8] sm:$0xff]  ;;  %v4520_v21 = vshrl.u32 %v133_v20, 7 }
  0x55   :  { %197 = vmatprep.subr.bf16.mxu0 %v3904_v6  ;;  %3594 = vmatpush3.bf16.msra.mxu1 %v4486_v9  ;;  %v129_v14 = vld [vmem:[#allocation4] sm:$0xff]  ;;  %v4492_v16 = vld [vmem:[#allocation10 + $0x18] sm:$0xff]   ;;  %v401_v4 = vrot.slane %v4481_v2, 2  ;;  %vm424_vm3 = vcmask 523526   ;;  %vm593_vm4 = vcmask 521476   ;;  %vm763_vm5 = vcmask 519426  }
  0x56   :  { %3595 = vmatprep.subr.bf16.mxu1 %v4393_v0  ;;  %v4496_v17 = vld [vmem:[#allocation10 + $0x10] sm:$0xff]   ;;  %v131_v18 = vpack.c.bf16 %v130_v15, %v129_v14  ;;  %v135_v22 = vsub.s32 0, %v4520_v21  ;;  %v128_v23 = vld [vmem:[%s5249_s4] sm:$0x3]  ;;  %v139_v25 = vsub.s32 1, %v4520_v21  ;;  %vm930_vm6 = vcmask 517376  }
  0x57   :  { %vm330_vm7 = vcmask 254976   ;;  %vm508_vm8 = vcmask 257026   ;;  %vm678_vm9 = vcmask 259076   ;;  %vm848_vm10 = vcmask 261126  }
  0x58   :  { %198 = vmatpush1.bf16.msra.mxu0 %v3906_v7  ;;  %v136_v26 = vrot.slane %v128_v23, %v135_v22  ;;  %v140_v28 = vrot.slane %v128_v23, %v139_v25  ;;  %vm1675_vm11 = vcmask 123904   ;;  %vm1694_vm12 = vcmask 1041408  }
  0x59   :  { %199 = vmatprep.subr.bf16.mxu0 %v3907_v8  ;;  %3596 = vmatpush3.bf16.msra.mxu1 %v4489_v10 }
  0x5a   :  { %3601 = vmatprep.subr.bf16.mxu1 %v4393_v0 }
  0x5c   :  { %200 = vmatpush1.bf16.msra.mxu0 %v3909_v11  ;;  %3598 = vmatmul.mubr.msk.bf16.vlgmr.msra.gmra.mxu1 %vm253_vm1, %v240_v3 }
  0x5d   :  { %201 = vmatprep.subr.bf16.mxu0 %v3911_v12  ;;  %3602 = vmatpush3.bf16.msra.mxu1 %v4492_v16 }
  0x5e   :  { %3605 = vmatprep.mubr.msk.bf16.mxu1 %vm4395_vm0, %v4393_v0  ;;  %3603 = vmatprep.subr.bf16.mxu1 %v4393_v0 }
  0x60   :  { %202 = vmatpush1.bf16.msra.mxu0 %v3913_v13 }
  0x61   :  { %3609 = vmatprep.subr.bf16.mxu0 %v4393_v0  ;;  %3604 = vmatpush3.bf16.msra.mxu1 %v4496_v17 }
  0x62   :  { %3617 = vmatprep.subr.bf16.mxu1 %v4393_v0 }
  0x63   :  { %3395 = vmatmul.mubr.msk.bf16.vlgmr.msra.gmra.mxu0 %vm183_vm2, %v131_v18 }
  0x64   :  { %3610 = vmatpush3.bf16.msra.mxu0 %v4486_v9  ;;  %3613 = vmatprep.mubr.msk.bf16.mxu0 %vm4395_vm0, %v4393_v0 }
  0x65   :  { %3611 = vmatprep.subr.bf16.mxu0 %v4393_v0 }
  0x68   :  { %3612 = vmatpush3.bf16.msra.mxu0 %v4489_v10 }
  0x69   :  { %3625 = vmatprep.subr.bf16.mxu0 %v4393_v0 }
  0xc6   :  { %v334_v19 = vpop.permute.xlu0 %333 }
  0xc7   :  { %3606 = vmatmul.mubr.msk.bf16.vlgmr.msra.gmra.mxu1 %vm253_vm1, %v334_v19 }
  0xc8   :  { %3618 = vmatpush3.bf16.msra.mxu1 %v4492_v16  ;;  %3621 = vmatprep.mubr.msk.bf16.mxu1 %vm4395_vm0, %v4393_v0 }
  0xc9   :  { %3619 = vmatprep.subr.bf16.mxu1 %v4393_v0 }
  0xcc   :  { %3620 = vmatpush3.bf16.msra.mxu1 %v4496_v17 }
  0xcd   :  { %3633 = vmatprep.subr.bf16.mxu1 %v4393_v0 }
 0x11c   :  { %v291_v24 = vpop.f32.mrf.mxu1 }
 0x11e   :  { %v3599_v27 = vpop.f32.mrf.mxu1 }
 0x120   :  { %v294_v29 = vpop.f32.mrf.mxu1 }
 0x122   :  { %v3600_v32 = vpop.f32.mrf.mxu1 }
 0x123   :  { %v221_v30 = vpop.f32.mrf.mxu0 }
 0x124   :  { %v4531_v31 = vadd.f32 %v221_v30, %v136_v26 }
 0x125   :  { %v223_v33 = vpop.f32.mrf.mxu0 }
 0x126   :  { %v297_v34 = vadd.f32 %v291_v24, %v4531_v31  ;;  %v4534_v35 = vadd.f32 %v223_v33, %v140_v28 }
 0x127   :  { %v225_v36 = vpop.f32.mrf.mxu0 }
 0x128   :  { %3935 = vtanh.f32 %v297_v34  ;;  %v4536_v37 = vadd.f32 %v225_v36, %v136_v26  ;;  %v3399_v39 = vmul.f32 -1.442695, %v297_v34 }
 0x129   :  { %v227_v40 = vpop.f32.mrf.mxu0 }
 0x12a   :  { %3937 = vpow2.f32 %v3399_v39  ;;  %v4539_v42 = vadd.f32 %v227_v40, %v140_v28 }
 0x135   :  { %v3936_v38 = vpop.eup %3935 }
 0x136   :  { %311 = vrot.lane.b32.xlu0 %v3936_v38, %s4382_s12 }
 0x137   :  { %v3938_v48 = vpop.eup %3937 }
 0x138   :  { %v301_v49 = vadd.f32 1.0, %v3938_v48 }
 0x187   :  { %v384_v41 = vpop.f32.mrf.mxu1 }
 0x188   :  { %v391_v43 = vrot.slane %v384_v41, 2 }
 0x189   :  { %v3607_v44 = vpop.f32.mrf.mxu1 }
 0x18a   :  { %v393_v45 = vadd.f32 %v391_v43, %v4539_v42 }
 0x18b   :  { %v387_v46 = vpop.f32.mrf.mxu1 }
 0x18c   :  { %3939 = vtanh.f32 %v393_v45  ;;  %v3403_v54 = vmul.f32 -1.442695, %v393_v45 }
 0x18d   :  { %v3608_v47 = vpop.f32.mrf.mxu1  ;;  %3941 = vrcp.f32 %v301_v49 }
 0x18e   :  { %3943 = vpow2.f32 %v3403_v54 }
 0x199   :  { %v3940_v50 = vpop.eup %3939 }
 0x19a   :  { %405 = vrot.lane.b32.xlu1 %v3940_v50, %s4382_s12  ;;  %v3942_v51 = vpop.eup %3941 }
 0x19b   :  { %v3944_v55 = vpop.eup %3943 }
 0x19c   :  { %v397_v56 = vadd.f32 1.0, %v3944_v55 }
 0x19e   :  { %306 = vrot.lane.b32.xlu1 %v4481_v2, %s4382_s12  ;;  %3945 = vrcp.f32 %v397_v56 }
 0x1a8   :  { %v312_v52 = vpop.permute.xlu0 %311 }
 0x1a9   :  { %v314_v53 = vmul.f32 %v3942_v51, %v312_v52 }
 0x1ab   :  { %316 = vrot.lane.b32.xlu0 %v314_v53, %s4382_s12  ;;  %v3946_v57 = vpop.eup %3945 }
 0x1ac   :  { %v403_v5 = vmul.f32 %v3946_v57, %v401_v4 }
 0x20c   :  { %v406_v58 = vpop.permute.xlu1 %405 }
 0x20d   :  { %v408_v59 = vmul.f32 %v3946_v57, %v406_v58 }
 0x20f   :  { %410 = vrot.lane.b32.xlu1 %v408_v59, %s4382_s12 }
 0x210   :  { %v307_v60 = vpop.permute.xlu1 %306 }
 0x211   :  { %v309_v61 = vmul.f32 %v3942_v51, %v307_v60 }
 0x21d   :  { %v317_v62 = vpop.permute.xlu0 %316 }
 0x21e   :  { %v4547_v63 = vadd.f32 %v317_v62, %v309_v61 }
 0x220   :  { %3947 = vtanh.f32 %v4547_v63  ;;  %v485_v54 = vrot.slane %v4547_v63, 6 }
 0x22d   :  { %v3948_v3 = vpop.eup %3947 }
 0x22e   :  { %322 = vrot.lane.b32.xlu0 %v3948_v3, %s4382_s12 }
 0x281   :  { %v411_v6 = vpop.permute.xlu1 %410 }
 0x282   :  { %v4552_v7 = vadd.f32 %v411_v6, %v403_v5 }
 0x284   :  { %3949 = vtanh.f32 %v4552_v7  ;;  %v570_v59 = vrot.slane %v4552_v7, 2 }
 0x291   :  { %v3950_v8 = vpop.eup %3949 }
 0x292   :  { %416 = vrot.lane.b32.xlu1 %v3950_v8, %s4382_s12 }
 0x2a0   :  { %v323_v11 = vpop.permute.xlu0 %322 }
 0x2a1   :  { %v4556_v12 = vmul.f32 %v3942_v51, %v323_v11 }
 0x2a3   :  { %v426_v13 = vpack.c.bf16 %v4556_v12, %v4556_v12 }
 0x2a5   :  { %428 = vrot.lane.b32.xlu0 %v426_v13, %s4385_s19 }
 0x304   :  { %v417_v14 = vpop.permute.xlu1 %416 }
 0x305   :  { %v4561_v15 = vmul.f32 %v3946_v57, %v417_v14 }
 0x307   :  { %v510_v2 = vpack.c.bf16 %v4561_v15, %v4561_v15 }
 0x309   :  { %v512_v18 = vrot.slane %v510_v2, 3 }
 0x30b   :  { %513 = vrot.lane.b32.xlu1 %v512_v18, %s4385_s19 }
 0x317   :  { %v429_v19 = vpop.permute.xlu0 %428 }
 0x318   :  { %3614 = vmatmul.mubr.msk.bf16.vlgmr.msra.gmra.mxu0 %vm253_vm1, %v429_v19 }
 0x319   :  { %3626 = vmatpush3.bf16.msra.mxu0 %v4486_v9  ;;  %3629 = vmatprep.mubr.msk.bf16.mxu0 %vm4395_vm0, %v4393_v0 }
 0x31a   :  { %3627 = vmatprep.subr.bf16.mxu0 %v4393_v0 }
 0x31d   :  { %3628 = vmatpush3.bf16.msra.mxu0 %v4489_v10 }
 0x31e   :  { %3641 = vmatprep.subr.bf16.mxu0 %v4393_v0 }
 0x37d   :  { %v514_v20 = vpop.permute.xlu1 %513 }
 0x37e   :  { %3622 = vmatmul.mubr.msk.bf16.vlgmr.msra.gmra.mxu1 %vm253_vm1, %v514_v20 }
 0x37f   :  { %3634 = vmatpush3.bf16.msra.mxu1 %v4492_v16  ;;  %3637 = vmatprep.mubr.msk.bf16.mxu1 %vm4395_vm0, %v4393_v0 }
 0x380   :  { %3635 = vmatprep.subr.bf16.mxu1 %v4393_v0 }
 0x383   :  { %3636 = vmatpush3.bf16.msra.mxu1 %v4496_v17 }
 0x384   :  { %3649 = vmatprep.subr.bf16.mxu1 %v4393_v0 }
 0x3d8   :  { %v467_v23 = vpop.f32.mrf.mxu0 }
 0x3d9   :  { %v474_v24 = vrot.slane %v467_v23, 6 }
 0x3da   :  { %v3615_v26 = vpop.f32.mrf.mxu0 }
 0x3db   :  { %v476_v27 = vadd.f32 %v474_v24, %v4531_v31 }
 0x3dc   :  { %v470_v28 = vpop.f32.mrf.mxu0 }
 0x3dd   :  { %3951 = vtanh.f32 %v476_v27  ;;  %v3405_v32 = vmul.f32 -1.442695, %v476_v27 }
 0x3de   :  { %v3616_v29 = vpop.f32.mrf.mxu0 }
 0x3df   :  { %3953 = vpow2.f32 %v3405_v32 }
 0x3ea   :  { %v3952_v30 = vpop.eup %3951 }
 0x3eb   :  { %489 = vrot.lane.b32.xlu0 %v3952_v30, %s4382_s12 }
 0x3ec   :  { %v3954_v41 = vpop.eup %3953 }
 0x3ed   :  { %v480_v43 = vadd.f32 1.0, %v3954_v41 }
 0x43e   :  { %v552_v33 = vpop.f32.mrf.mxu1 }
 0x43f   :  { %v559_v34 = vrot.slane %v552_v33, 4 }
 0x440   :  { %v3623_v36 = vpop.f32.mrf.mxu1 }
 0x441   :  { %v561_v38 = vadd.f32 %v559_v34, %v4539_v42 }
 0x442   :  { %v555_v39 = vpop.f32.mrf.mxu1 }
 0x443   :  { %3955 = vtanh.f32 %v561_v38  ;;  %v3407_v48 = vmul.f32 -1.442695, %v561_v38 }
 0x444   :  { %v3624_v40 = vpop.f32.mrf.mxu1  ;;  %3957 = vrcp.f32 %v480_v43 }
 0x445   :  { %3959 = vpow2.f32 %v3407_v48 }
 0x450   :  { %v3956_v44 = vpop.eup %3955 }
 0x451   :  { %574 = vrot.lane.b32.xlu1 %v3956_v44, %s4382_s12  ;;  %v3958_v45 = vpop.eup %3957 }
 0x452   :  { %v3960_v49 = vpop.eup %3959  ;;  %v487_v55 = vmul.f32 %v3958_v45, %v485_v54 }
 0x453   :  { %v565_v50 = vadd.f32 1.0, %v3960_v49 }
 0x455   :  { %3961 = vrcp.f32 %v565_v50 }
 0x45d   :  { %v490_v46 = vpop.permute.xlu0 %489 }
 0x45e   :  { %v492_v47 = vmul.f32 %v3958_v45, %v490_v46 }
 0x460   :  { %494 = vrot.lane.b32.xlu0 %v492_v47, %s4382_s12 }
 0x462   :  { %v3962_v51 = vpop.eup %3961 }
 0x463   :  { %v572_v60 = vmul.f32 %v3962_v51, %v570_v59 }
 0x4c3   :  { %v575_v52 = vpop.permute.xlu1 %574 }
 0x4c4   :  { %v577_v53 = vmul.f32 %v3962_v51, %v575_v52 }
 0x4c6   :  { %579 = vrot.lane.b32.xlu1 %v577_v53, %s4382_s12 }
 0x4d2   :  { %v495_v56 = vpop.permute.xlu0 %494 }
 0x4d3   :  { %v4587_v57 = vadd.f32 %v495_v56, %v487_v55 }
 0x4d5   :  { %3963 = vtanh.f32 %v4587_v57 }
 0x4e2   :  { %v3964_v58 = vpop.eup %3963 }
 0x4e3   :  { %500 = vrot.lane.b32.xlu0 %v3964_v58, %s4382_s12 }
 0x538   :  { %v580_v61 = vpop.permute.xlu1 %579 }
 0x539   :  { %v4592_v62 = vadd.f32 %v580_v61, %v572_v60 }
 0x53b   :  { %3965 = vtanh.f32 %v4592_v62  ;;  %v740_v56 = vrot.slane %v4592_v62, 2 }
 0x548   :  { %v3966_v3 = vpop.eup %3965 }
 0x549   :  { %585 = vrot.lane.b32.xlu1 %v3966_v3, %s4382_s12 }
 0x555   :  { %v501_v63 = vpop.permute.xlu0 %500 }
 0x556   :  { %v4596_v4 = vmul.f32 %v3958_v45, %v501_v63 }
 0x558   :  { %v595_v5 = vpack.c.bf16 %v4596_v4, %v4596_v4 }
 0x55a   :  { %v597_v6 = vrot.slane %v595_v5, 1 }
 0x55c   :  { %598 = vrot.lane.b32.xlu0 %v597_v6, %s4385_s19 }
 0x5bb   :  { %v586_v8 = vpop.permute.xlu1 %585 }
 0x5bc   :  { %v4601_v7 = vmul.f32 %v3962_v51, %v586_v8  ;;  %v655_v51 = vrot.slane %v4587_v57, 6 }
 0x5be   :  { %v680_v11 = vpack.c.bf16 %v4601_v7, %v4601_v7 }
 0x5c0   :  { %v682_v13 = vrot.slane %v680_v11, 2 }
 0x5c2   :  { %683 = vrot.lane.b32.xlu1 %v682_v13, %s4385_s19 }
 0x5ce   :  { %v599_v14 = vpop.permute.xlu0 %598 }
 0x5cf   :  { %3630 = vmatmul.mubr.msk.bf16.vlgmr.msra.gmra.mxu0 %vm253_vm1, %v599_v14 }
 0x5d0   :  { %3642 = vmatpush3.bf16.msra.mxu0 %v4486_v9  ;;  %3645 = vmatprep.mubr.msk.bf16.mxu0 %vm4395_vm0, %v4393_v0 }
 0x5d1   :  { %3643 = vmatprep.subr.bf16.mxu0 %v4393_v0 }
 0x5d4   :  { %3644 = vmatpush3.bf16.msra.mxu0 %v4489_v10 }
 0x5d5   :  { %3657 = vmatprep.subr.bf16.mxu0 %v4393_v0 }
 0x634   :  { %v684_v2 = vpop.permute.xlu1 %683 }
 0x635   :  { %3638 = vmatmul.mubr.msk.bf16.vlgmr.msra.gmra.mxu1 %vm253_vm1, %v684_v2 }
 0x636   :  { %3650 = vmatpush3.bf16.msra.mxu1 %v4492_v16  ;;  %3653 = vmatprep.mubr.msk.bf16.mxu1 %vm4395_vm0, %v4393_v0 }
 0x637   :  { %3651 = vmatprep.subr.bf16.mxu1 %v4393_v0 }
 0x63a   :  { %3652 = vmatpush3.bf16.msra.mxu1 %v4496_v17 }
 0x63b   :  { %3665 = vmatprep.subr.bf16.mxu1 %v4393_v0 }
 0x68f   :  { %v637_v18 = vpop.f32.mrf.mxu0 }
 0x690   :  { %v644_v19 = vrot.slane %v637_v18, 4 }
 0x691   :  { %v3631_v20 = vpop.f32.mrf.mxu0 }
 0x692   :  { %v646_v23 = vadd.f32 %v644_v19, %v4531_v31 }
 0x693   :  { %v640_v24 = vpop.f32.mrf.mxu0 }
 0x694   :  { %3967 = vtanh.f32 %v646_v23  ;;  %v3409_v28 = vmul.f32 -1.442695, %v646_v23 }
 0x695   :  { %v3632_v26 = vpop.f32.mrf.mxu0 }
 0x696   :  { %3969 = vpow2.f32 %v3409_v28 }
 0x6a1   :  { %v3968_v27 = vpop.eup %3967 }
 0x6a2   :  { %659 = vrot.lane.b32.xlu0 %v3968_v27, %s4382_s12 }
 0x6a3   :  { %v3970_v38 = vpop.eup %3969 }
 0x6a4   :  { %v650_v39 = vadd.f32 1.0, %v3970_v38 }
 0x6f5   :  { %v722_v29 = vpop.f32.mrf.mxu1 }
 0x6f6   :  { %v729_v30 = vrot.slane %v722_v29, 6 }
 0x6f7   :  { %v3639_v32 = vpop.f32.mrf.mxu1 }
 0x6f8   :  { %v731_v33 = vadd.f32 %v729_v30, %v4539_v42 }
 0x6f9   :  { %v725_v34 = vpop.f32.mrf.mxu1 }
 0x6fa   :  { %3971 = vtanh.f32 %v731_v33  ;;  %v3411_v45 = vmul.f32 -1.442695, %v731_v33 }
 0x6fb   :  { %v3640_v36 = vpop.f32.mrf.mxu1  ;;  %3973 = vrcp.f32 %v650_v39 }
 0x6fc   :  { %3975 = vpow2.f32 %v3411_v45 }
 0x707   :  { %v3972_v40 = vpop.eup %3971 }
 0x708   :  { %744 = vrot.lane.b32.xlu1 %v3972_v40, %s4382_s12  ;;  %v3974_v41 = vpop.eup %3973 }
 0x709   :  { %v3976_v46 = vpop.eup %3975  ;;  %v657_v52 = vmul.f32 %v3974_v41, %v655_v51 }
 0x70a   :  { %v735_v47 = vadd.f32 1.0, %v3976_v46 }
 0x70c   :  { %3977 = vrcp.f32 %v735_v47 }
 0x714   :  { %v660_v43 = vpop.permute.xlu0 %659 }
 0x715   :  { %v662_v44 = vmul.f32 %v3974_v41, %v660_v43 }
 0x717   :  { %664 = vrot.lane.b32.xlu0 %v662_v44, %s4382_s12 }
 0x719   :  { %v3978_v48 = vpop.eup %3977 }
 0x71a   :  { %v742_v58 = vmul.f32 %v3978_v48, %v740_v56 }
 0x77a   :  { %v745_v49 = vpop.permute.xlu1 %744 }
 0x77b   :  { %v747_v50 = vmul.f32 %v3978_v48, %v745_v49 }
 0x77d   :  { %749 = vrot.lane.b32.xlu1 %v747_v50, %s4382_s12 }
 0x789   :  { %v665_v53 = vpop.permute.xlu0 %664 }
 0x78a   :  { %v4627_v54 = vadd.f32 %v665_v53, %v657_v52 }
 0x78c   :  { %3979 = vtanh.f32 %v4627_v54  ;;  %v825_v47 = vrot.slane %v4627_v54, 6 }
 0x799   :  { %v3980_v55 = vpop.eup %3979 }
 0x79a   :  { %670 = vrot.lane.b32.xlu0 %v3980_v55, %s4382_s12 }
 0x7ef   :  { %v750_v59 = vpop.permute.xlu1 %749 }
 0x7f0   :  { %v4632_v60 = vadd.f32 %v750_v59, %v742_v58 }
 0x7f2   :  { %3981 = vtanh.f32 %v4632_v60  ;;  %v907_v52 = vrot.slane %v4632_v60, 2 }
 0x7ff   :  { %v3982_v61 = vpop.eup %3981 }
 0x800   :  { %755 = vrot.lane.b32.xlu1 %v3982_v61, %s4382_s12 }
 0x80c   :  { %v671_v57 = vpop.permute.xlu0 %670 }
 0x80d   :  { %v4636_v3 = vmul.f32 %v3974_v41, %v671_v57 }
 0x80f   :  { %v765_v63 = vpack.c.bf16 %v4636_v3, %v4636_v3 }
 0x811   :  { %v767_v5 = vrot.slane %v765_v63, 2 }
 0x813   :  { %768 = vrot.lane.b32.xlu0 %v767_v5, %s4385_s19 }
 0x872   :  { %v756_v6 = vpop.permute.xlu1 %755 }
 0x873   :  { %v4641_v62 = vmul.f32 %v3978_v48, %v756_v6 }
 0x875   :  { %v850_v8 = vpack.c.bf16 %v4641_v62, %v4641_v62 }
 0x877   :  { %v852_v11 = vrot.slane %v850_v8, 1 }
 0x879   :  { %853 = vrot.lane.b32.xlu1 %v852_v11, %s4385_s19 }
 0x885   :  { %v769_v13 = vpop.permute.xlu0 %768 }
 0x886   :  { %3646 = vmatmul.mubr.msk.bf16.vlgmr.msra.gmra.mxu0 %vm253_vm1, %v769_v13 }
 0x887   :  { %3658 = vmatpush3.bf16.msra.mxu0 %v4486_v9  ;;  %3661 = vmatprep.mubr.msk.bf16.mxu0 %vm4395_vm0, %v4393_v0 }
 0x888   :  { %3659 = vmatprep.subr.bf16.mxu0 %v4393_v0 }
 0x88b   :  { %3660 = vmatpush3.bf16.msra.mxu0 %v4489_v10 }
 0x88c   :  { %3673 = vmatprep.subr.bf16.mxu0 %v4393_v0 }
 0x8eb   :  { %v854_v14 = vpop.permute.xlu1 %853 }
 0x8ec   :  { %3654 = vmatmul.mubr.msk.bf16.vlgmr.msra.gmra.mxu1 %vm253_vm1, %v854_v14 }
 0x8ed   :  { %3666 = vmatpush3.bf16.msra.mxu1 %v4492_v16  ;;  %3669 = vmatprep.mubr.msk.bf16.mxu1 %vm4395_vm0, %v4393_v0 }
 0x8ee   :  { %3667 = vmatprep.subr.bf16.mxu1 %v4393_v0 }
 0x8f1   :  { %3668 = vmatpush3.bf16.msra.mxu1 %v4496_v17 }
 0x8f2   :  { %3681 = vmatprep.subr.bf16.mxu1 %v4393_v0 }
 0x946   :  { %v807_v2 = vpop.f32.mrf.mxu0 }
 0x947   :  { %v814_v18 = vrot.slane %v807_v2, 2 }
 0x948   :  { %v3647_v19 = vpop.f32.mrf.mxu0 }
 0x949   :  { %v816_v20 = vadd.f32 %v814_v18, %v4531_v31 }
 0x94a   :  { %v810_v23 = vpop.f32.mrf.mxu0 }
 0x94b   :  { %3983 = vtanh.f32 %v816_v20  ;;  %v3413_v27 = vmul.f32 -1.442695, %v816_v20 }
 0x94c   :  { %v3648_v24 = vpop.f32.mrf.mxu0 }
 0x94d   :  { %3985 = vpow2.f32 %v3413_v27 }
 0x958   :  { %v3984_v26 = vpop.eup %3983 }
 0x959   :  { %829 = vrot.lane.b32.xlu0 %v3984_v26, %s4382_s12 }
 0x95a   :  { %v3986_v34 = vpop.eup %3985 }
 0x95b   :  { %v820_v36 = vadd.f32 1.0, %v3986_v34 }
 0x9ac   :  { %v892_v28 = vpop.f32.mrf.mxu1 }
 0x9ad   :  { %v898_v29 = vadd.f32 %v892_v28, %v4539_v42 }
 0x9ae   :  { %v3655_v30 = vpop.f32.mrf.mxu1 }
 0x9af   :  { %3987 = vtanh.f32 %v898_v29  ;;  %v3415_v41 = vmul.f32 -1.442695, %v898_v29 }
 0x9b0   :  { %v895_v32 = vpop.f32.mrf.mxu1  ;;  %3989 = vrcp.f32 %v820_v36 }
 0x9b1   :  { %3991 = vpow2.f32 %v3415_v41 }
 0x9b2   :  { %v3656_v33 = vpop.f32.mrf.mxu1 }
 0x9bc   :  { %v3988_v38 = vpop.eup %3987 }
 0x9bd   :  { %911 = vrot.lane.b32.xlu1 %v3988_v38, %s4382_s12  ;;  %v3990_v31 = vpop.eup %3989 }
 0x9be   :  { %v3992_v43 = vpop.eup %3991  ;;  %v827_v48 = vmul.f32 %v3990_v31, %v825_v47 }
 0x9bf   :  { %v902_v44 = vadd.f32 1.0, %v3992_v43 }
 0x9c1   :  { %3993 = vrcp.f32 %v902_v44 }
 0x9cb   :  { %v830_v39 = vpop.permute.xlu0 %829 }
 0x9cc   :  { %v832_v40 = vmul.f32 %v3990_v31, %v830_v39 }
 0x9ce   :  { %834 = vrot.lane.b32.xlu0 %v832_v40, %s4382_s12  ;;  %v3994_v42 = vpop.eup %3993 }
 0x9cf   :  { %v909_v53 = vmul.f32 %v3994_v42, %v907_v52 }
 0xa2f   :  { %v912_v45 = vpop.permute.xlu1 %911 }
 0xa30   :  { %v914_v46 = vmul.f32 %v3994_v42, %v912_v45 }
 0xa32   :  { %916 = vrot.lane.b32.xlu1 %v914_v46, %s4382_s12 }
 0xa40   :  { %v835_v49 = vpop.permute.xlu0 %834 }
 0xa41   :  { %v4667_v50 = vadd.f32 %v835_v49, %v827_v48 }
 0xa43   :  { %3995 = vtanh.f32 %v4667_v50 }
 0xa50   :  { %v3996_v51 = vpop.eup %3995 }
 0xa51   :  { %840 = vrot.lane.b32.xlu0 %v3996_v51, %s4382_s12 }
 0xaa4   :  { %v917_v55 = vpop.permute.xlu1 %916 }
 0xaa5   :  { %v4672_v56 = vadd.f32 %v917_v55, %v909_v53 }
 0xaa7   :  { %3997 = vtanh.f32 %v4672_v56  ;;  %v1072_v49 = vrot.slane %v4672_v56, 2 }
 0xab4   :  { %v3998_v58 = vpop.eup %3997 }
 0xab5   :  { %922 = vrot.lane.b32.xlu1 %v3998_v58, %s4382_s12 }
 0xac3   :  { %v841_v54 = vpop.permute.xlu0 %840 }
 0xac4   :  { %v4676_v59 = vmul.f32 %v3990_v31, %v841_v54 }
 0xac6   :  { %v932_v61 = vpack.c.bf16 %v4676_v59, %v4676_v59 }
 0xac8   :  { %v934_v57 = vrot.slane %v932_v61, 3 }
 0xaca   :  { %935 = vrot.lane.b32.xlu0 %v934_v57, %s4385_s19 }
 0xb27   :  { %v923_v63 = vpop.permute.xlu1 %922 }
 0xb28   :  { %v4681_v60 = vmul.f32 %v3994_v42, %v923_v63  ;;  %v989_v42 = vrot.slane %v4667_v50, 6 }
 0xb2a   :  { %v1013_v5 = vpack.c.bf16 %v4681_v60, %v4681_v60 }
 0xb2c   :  { %1015 = vrot.lane.b32.xlu1 %v1013_v5, %s4385_s19 }
 0xb3c   :  { %v936_v6 = vpop.permute.xlu0 %935 }
 0xb3d   :  { %3662 = vmatmul.mubr.msk.bf16.vlgmr.msra.gmra.mxu0 %vm253_vm1, %v936_v6 }
 0xb3e   :  { %3674 = vmatpush3.bf16.msra.mxu0 %v4486_v9  ;;  %3677 = vmatprep.mubr.msk.bf16.mxu0 %vm4395_vm0, %v4393_v0 }
 0xb3f   :  { %3675 = vmatprep.subr.bf16.mxu0 %v4393_v0 }
 0xb42   :  { %3676 = vmatpush3.bf16.msra.mxu0 %v4489_v10 }
 0xb43   :  { %3689 = vmatprep.subr.bf16.mxu0 %v4393_v0 }
 0xb9e   :  { %v1016_v8 = vpop.permute.xlu1 %1015 }
 0xb9f   :  { %3670 = vmatmul.mubr.msk.bf16.vlgmr.msra.gmra.mxu1 %vm253_vm1, %v1016_v8 }
 0xba0   :  { %3682 = vmatpush3.bf16.msra.mxu1 %v4492_v16  ;;  %3685 = vmatprep.mubr.msk.bf16.mxu1 %vm4395_vm0, %v4393_v0 }
 0xba1   :  { %3683 = vmatprep.subr.bf16.mxu1 %v4393_v0 }
 0xba4   :  { %3684 = vmatpush3.bf16.msra.mxu1 %v4496_v17 }
 0xba5   :  { %3697 = vmatprep.subr.bf16.mxu1 %v4393_v0 }
 0xbfd   :  { %v974_v11 = vpop.f32.mrf.mxu0 }
 0xbfe   :  { %v980_v13 = vadd.f32 %v974_v11, %v4536_v37 }
 0xbff   :  { %v3663_v14 = vpop.f32.mrf.mxu0 }
 0xc00   :  { %3999 = vtanh.f32 %v980_v13  ;;  %v3417_v20 = vmul.f32 -1.442695, %v980_v13 }
 0xc01   :  { %v977_v2 = vpop.f32.mrf.mxu0 }
 0xc02   :  { %4001 = vpow2.f32 %v3417_v20 }
 0xc03   :  { %v3664_v18 = vpop.f32.mrf.mxu0 }
 0xc0d   :  { %v4000_v19 = vpop.eup %3999 }
 0xc0e   :  { %993 = vrot.lane.b32.xlu0 %v4000_v19, %s4382_s12 }
 0xc0f   :  { %v4002_v30 = vpop.eup %4001 }
 0xc10   :  { %v984_v32 = vadd.f32 1.0, %v4002_v30 }
 0xc5f   :  { %v1054_v23 = vpop.f32.mrf.mxu1 }
 0xc60   :  { %v1061_v24 = vrot.slane %v1054_v23, 2 }
 0xc61   :  { %v3671_v26 = vpop.f32.mrf.mxu1 }
 0xc62   :  { %v1063_v27 = vadd.f32 %v1061_v24, %v4534_v35 }
 0xc63   :  { %v1057_v28 = vpop.f32.mrf.mxu1 }
 0xc64   :  { %4003 = vtanh.f32 %v1063_v27  ;;  %v3419_v31 = vmul.f32 -1.442695, %v1063_v27 }
 0xc65   :  { %v3672_v29 = vpop.f32.mrf.mxu1  ;;  %4005 = vrcp.f32 %v984_v32 }
 0xc66   :  { %4007 = vpow2.f32 %v3419_v31 }
 0xc71   :  { %v4004_v33 = vpop.eup %4003 }
 0xc72   :  { %1076 = vrot.lane.b32.xlu1 %v4004_v33, %s4382_s12  ;;  %v4006_v34 = vpop.eup %4005 }
 0xc73   :  { %v4008_v39 = vpop.eup %4007  ;;  %v991_v45 = vmul.f32 %v4006_v34, %v989_v42 }
 0xc74   :  { %v1067_v40 = vadd.f32 1.0, %v4008_v39 }
 0xc76   :  { %4009 = vrcp.f32 %v1067_v40 }
 0xc80   :  { %v994_v36 = vpop.permute.xlu0 %993 }
 0xc81   :  { %v996_v38 = vmul.f32 %v4006_v34, %v994_v36 }
 0xc83   :  { %998 = vrot.lane.b32.xlu0 %v996_v38, %s4382_s12  ;;  %v4010_v41 = vpop.eup %4009 }
 0xc84   :  { %v1074_v51 = vmul.f32 %v4010_v41, %v1072_v49 }
 0xce4   :  { %v1077_v43 = vpop.permute.xlu1 %1076 }
 0xce5   :  { %v1079_v44 = vmul.f32 %v4010_v41, %v1077_v43 }
 0xce7   :  { %1081 = vrot.lane.b32.xlu1 %v1079_v44, %s4382_s12 }
 0xcf5   :  { %v999_v46 = vpop.permute.xlu0 %998 }
 0xcf6   :  { %v4707_v47 = vadd.f32 %v999_v46, %v991_v45 }
 0xcf8   :  { %4011 = vtanh.f32 %v4707_v47  ;;  %v1155_v42 = vrot.slane %v4707_v47, 6 }
 0xd05   :  { %v4012_v48 = vpop.eup %4011 }
 0xd06   :  { %1004 = vrot.lane.b32.xlu0 %v4012_v48, %s4382_s12 }
 0xd59   :  { %v1082_v52 = vpop.permute.xlu1 %1081 }
 0xd5a   :  { %v4712_v53 = vadd.f32 %v1082_v52, %v1074_v51 }
 0xd5c   :  { %4013 = vtanh.f32 %v4712_v53  ;;  %v1239_v51 = vrot.slane %v4712_v53, 2 }
 0xd69   :  { %v4014_v55 = vpop.eup %4013 }
 0xd6a   :  { %1087 = vrot.lane.b32.xlu1 %v4014_v55, %s4382_s12 }
 0xd78   :  { %v1005_v50 = vpop.permute.xlu0 %1004 }
 0xd79   :  { %v4716_v58 = vmul.f32 %v4006_v34, %v1005_v50 }
 0xd7b   :  { %v1096_v54 = vpack.c.bf16 %v4716_v58, %v4716_v58 }
 0xd7d   :  { %1098 = vrot.lane.b32.xlu0 %v1096_v54, %s4385_s19 }
 0xddc   :  { %v1088_v61 = vpop.permute.xlu1 %1087 }
 0xddd   :  { %v4721_v57 = vmul.f32 %v4010_v41, %v1088_v61 }
 0xddf   :  { %v1179_v56 = vpack.c.bf16 %v4721_v57, %v4721_v57 }
 0xde1   :  { %v1181_v63 = vrot.slane %v1179_v56, 3 }
 0xde3   :  { %1182 = vrot.lane.b32.xlu1 %v1181_v63, %s4385_s19 }
 0xdef   :  { %v1099_v5 = vpop.permute.xlu0 %1098 }
 0xdf0   :  { %3678 = vmatmul.mubr.msk.bf16.vlgmr.msra.gmra.mxu0 %vm253_vm1, %v1099_v5 }
 0xdf1   :  { %3690 = vmatpush3.bf16.msra.mxu0 %v4486_v9  ;;  %3693 = vmatprep.mubr.msk.bf16.mxu0 %vm4395_vm0, %v4393_v0 }
 0xdf2   :  { %3691 = vmatprep.subr.bf16.mxu0 %v4393_v0 }
 0xdf5   :  { %3692 = vmatpush3.bf16.msra.mxu0 %v4489_v10 }
 0xdf6   :  { %3705 = vmatprep.subr.bf16.mxu0 %v4393_v0 }
 0xe55   :  { %v1183_v6 = vpop.permute.xlu1 %1182 }
 0xe56   :  { %3686 = vmatmul.mubr.msk.bf16.vlgmr.msra.gmra.mxu1 %vm253_vm1, %v1183_v6 }
 0xe57   :  { %3698 = vmatpush3.bf16.msra.mxu1 %v4492_v16  ;;  %3701 = vmatprep.mubr.msk.bf16.mxu1 %vm4395_vm0, %v4393_v0 }
 0xe58   :  { %3699 = vmatprep.subr.bf16.mxu1 %v4393_v0 }
 0xe5b   :  { %3700 = vmatpush3.bf16.msra.mxu1 %v4496_v17 }
 0xe5c   :  { %3713 = vmatprep.subr.bf16.mxu1 %v4393_v0 }
 0xeb0   :  { %v1137_v8 = vpop.f32.mrf.mxu0 }
 0xeb1   :  { %v1144_v11 = vrot.slane %v1137_v8, 6 }
 0xeb2   :  { %v3679_v13 = vpop.f32.mrf.mxu0 }
 0xeb3   :  { %v1146_v14 = vadd.f32 %v1144_v11, %v4536_v37 }
 0xeb4   :  { %v1140_v2 = vpop.f32.mrf.mxu0 }
 0xeb5   :  { %4015 = vtanh.f32 %v1146_v14  ;;  %v3421_v20 = vmul.f32 -1.442695, %v1146_v14 }
 0xeb6   :  { %v3680_v18 = vpop.f32.mrf.mxu0 }
 0xeb7   :  { %4017 = vpow2.f32 %v3421_v20 }
 0xec2   :  { %v4016_v19 = vpop.eup %4015 }
 0xec3   :  { %1159 = vrot.lane.b32.xlu0 %v4016_v19, %s4382_s12 }
 0xec4   :  { %v4018_v30 = vpop.eup %4017 }
 0xec5   :  { %v1150_v32 = vadd.f32 1.0, %v4018_v30 }
 0xf16   :  { %v1221_v23 = vpop.f32.mrf.mxu1 }
 0xf17   :  { %v1228_v24 = vrot.slane %v1221_v23, 4 }
 0xf18   :  { %v3687_v26 = vpop.f32.mrf.mxu1 }
 0xf19   :  { %v1230_v27 = vadd.f32 %v1228_v24, %v4534_v35 }
 0xf1a   :  { %v1224_v28 = vpop.f32.mrf.mxu1 }
 0xf1b   :  { %4019 = vtanh.f32 %v1230_v27  ;;  %v3423_v31 = vmul.f32 -1.442695, %v1230_v27 }
 0xf1c   :  { %v3688_v29 = vpop.f32.mrf.mxu1  ;;  %4021 = vrcp.f32 %v1150_v32 }
 0xf1d   :  { %4023 = vpow2.f32 %v3423_v31 }
 0xf28   :  { %v4020_v33 = vpop.eup %4019 }
 0xf29   :  { %1243 = vrot.lane.b32.xlu1 %v4020_v33, %s4382_s12  ;;  %v4022_v34 = vpop.eup %4021 }
 0xf2a   :  { %v4024_v39 = vpop.eup %4023  ;;  %v1157_v45 = vmul.f32 %v4022_v34, %v1155_v42 }
 0xf2b   :  { %v1234_v40 = vadd.f32 1.0, %v4024_v39 }
 0xf2d   :  { %4025 = vrcp.f32 %v1234_v40 }
 0xf35   :  { %v1160_v36 = vpop.permute.xlu0 %1159 }
 0xf36   :  { %v1162_v38 = vmul.f32 %v4022_v34, %v1160_v36 }
 0xf38   :  { %1164 = vrot.lane.b32.xlu0 %v1162_v38, %s4382_s12 }
 0xf3a   :  { %v4026_v41 = vpop.eup %4025 }
 0xf3b   :  { %v1241_v52 = vmul.f32 %v4026_v41, %v1239_v51 }
 0xf9b   :  { %v1244_v43 = vpop.permute.xlu1 %1243 }
 0xf9c   :  { %v1246_v44 = vmul.f32 %v4026_v41, %v1244_v43 }
 0xf9e   :  { %1248 = vrot.lane.b32.xlu1 %v1246_v44, %s4382_s12 }
 0xfaa   :  { %v1165_v46 = vpop.permute.xlu0 %1164 }
 0xfab   :  { %v4747_v48 = vadd.f32 %v1165_v46, %v1157_v45 }
 0xfad   :  { %4027 = vtanh.f32 %v4747_v48  ;;  %v1323_v44 = vrot.slane %v4747_v48, 6 }
 0xfba   :  { %v4028_v49 = vpop.eup %4027 }
 0xfbb   :  { %1170 = vrot.lane.b32.xlu0 %v4028_v49, %s4382_s12 }
0x1010   :  { %v1249_v55 = vpop.permute.xlu1 %1248 }
0x1011   :  { %v4752_v50 = vadd.f32 %v1249_v55, %v1241_v52 }
0x1013   :  { %4029 = vtanh.f32 %v4752_v50  ;;  %v1407_v51 = vrot.slane %v4752_v50, 2 }
0x1020   :  { %v4030_v54 = vpop.eup %4029 }
0x1021   :  { %1254 = vrot.lane.b32.xlu1 %v4030_v54, %s4382_s12 }
0x102d   :  { %v1171_v47 = vpop.permute.xlu0 %1170 }
0x102e   :  { %v4756_v61 = vmul.f32 %v4022_v34, %v1171_v47 }
0x1030   :  { %v1263_v56 = vpack.c.bf16 %v4756_v61, %v4756_v61 }
0x1032   :  { %v1265_v63 = vrot.slane %v1263_v56, 1 }
0x1034   :  { %1266 = vrot.lane.b32.xlu0 %v1265_v63, %s4385_s19 }
0x1093   :  { %v1255_v5 = vpop.permute.xlu1 %1254 }
0x1094   :  { %v4761_v53 = vmul.f32 %v4026_v41, %v1255_v5 }
0x1096   :  { %v1347_v6 = vpack.c.bf16 %v4761_v53, %v4761_v53 }
0x1098   :  { %v1349_v8 = vrot.slane %v1347_v6, 2 }
0x109a   :  { %1350 = vrot.lane.b32.xlu1 %v1349_v8, %s4385_s19 }
0x10a6   :  { %v1267_v11 = vpop.permute.xlu0 %1266 }
0x10a7   :  { %3694 = vmatmul.mubr.msk.bf16.vlgmr.msra.gmra.mxu0 %vm253_vm1, %v1267_v11 }
0x10a8   :  { %3706 = vmatpush3.bf16.msra.mxu0 %v4486_v9  ;;  %3709 = vmatprep.mubr.msk.bf16.mxu0 %vm4395_vm0, %v4393_v0 }
0x10a9   :  { %3707 = vmatprep.subr.bf16.mxu0 %v4393_v0 }
0x10ac   :  { %3708 = vmatpush3.bf16.msra.mxu0 %v4489_v10 }
0x10ad   :  { %3721 = vmatprep.subr.bf16.mxu0 %v4393_v0 }
0x110c   :  { %v1351_v13 = vpop.permute.xlu1 %1350 }
0x110d   :  { %3702 = vmatmul.mubr.msk.bf16.vlgmr.msra.gmra.mxu1 %vm253_vm1, %v1351_v13 }
0x110e   :  { %3714 = vmatpush3.bf16.msra.mxu1 %v4492_v16  ;;  %3717 = vmatprep.mubr.msk.bf16.mxu1 %vm4395_vm0, %v4393_v0 }
0x110f   :  { %3715 = vmatprep.subr.bf16.mxu1 %v4393_v0 }
0x1112   :  { %3716 = vmatpush3.bf16.msra.mxu1 %v4496_v17 }
0x1113   :  { %3729 = vmatprep.subr.bf16.mxu1 %v4393_v0 }
0x1167   :  { %v1305_v9 = vpop.f32.mrf.mxu0 }
0x1168   :  { %v1312_v14 = vrot.slane %v1305_v9, 4 }
0x1169   :  { %v3695_v2 = vpop.f32.mrf.mxu0 }
0x116a   :  { %v1314_v10 = vadd.f32 %v1312_v14, %v4536_v37 }
0x116b   :  { %v1308_v18 = vpop.f32.mrf.mxu0 }
0x116c   :  { %4031 = vtanh.f32 %v1314_v10  ;;  %v3425_v16 = vmul.f32 -1.442695, %v1314_v10 }
0x116d   :  { %v3696_v19 = vpop.f32.mrf.mxu0 }
0x116e   :  { %4033 = vpow2.f32 %v3425_v16 }
0x1179   :  { %v4032_v20 = vpop.eup %4031 }
0x117a   :  { %1327 = vrot.lane.b32.xlu0 %v4032_v20, %s4382_s12 }
0x117b   :  { %v4034_v29 = vpop.eup %4033 }
0x117c   :  { %v1318_v30 = vadd.f32 1.0, %v4034_v29 }
0x11cd   :  { %v1389_v23 = vpop.f32.mrf.mxu1 }
0x11ce   :  { %v1396_v24 = vrot.slane %v1389_v23, 6 }
0x11cf   :  { %v3703_v26 = vpop.f32.mrf.mxu1 }
0x11d0   :  { %v1398_v17 = vadd.f32 %v1396_v24, %v4534_v35 }
0x11d1   :  { %v1392_v27 = vpop.f32.mrf.mxu1 }
0x11d2   :  { %4035 = vtanh.f32 %v1398_v17  ;;  %v3427_v38 = vmul.f32 -1.442695, %v1398_v17 }
0x11d3   :  { %v3704_v28 = vpop.f32.mrf.mxu1  ;;  %4037 = vrcp.f32 %v1318_v30 }
0x11d4   :  { %4039 = vpow2.f32 %v3427_v38 }
0x11df   :  { %v4036_v32 = vpop.eup %4035 }
0x11e0   :  { %1411 = vrot.lane.b32.xlu1 %v4036_v32, %s4382_s12  ;;  %v4038_v33 = vpop.eup %4037 }
0x11e1   :  { %v4040_v31 = vpop.eup %4039  ;;  %v1325_v42 = vmul.f32 %v4038_v33, %v1323_v44 }
0x11e2   :  { %v1402_v39 = vadd.f32 1.0, %v4040_v31 }
0x11e4   :  { %4041 = vrcp.f32 %v1402_v39 }
0x11ec   :  { %v1328_v34 = vpop.permute.xlu0 %1327 }
0x11ed   :  { %v1330_v36 = vmul.f32 %v4038_v33, %v1328_v34 }
0x11ef   :  { %1332 = vrot.lane.b32.xlu0 %v1330_v36, %s4382_s12 }
0x11f1   :  { %v4042_v40 = vpop.eup %4041 }
0x11f2   :  { %v1409_v52 = vmul.f32 %v4042_v40, %v1407_v51 }
0x1252   :  { %v1412_v41 = vpop.permute.xlu1 %1411 }
0x1253   :  { %v1414_v43 = vmul.f32 %v4042_v40, %v1412_v41 }
0x1255   :  { %1416 = vrot.lane.b32.xlu1 %v1414_v43, %s4382_s12 }
0x1261   :  { %v1333_v45 = vpop.permute.xlu0 %1332 }
0x1262   :  { %v4787_v46 = vadd.f32 %v1333_v45, %v1325_v42 }
0x1264   :  { %4043 = vtanh.f32 %v4787_v46  ;;  %v1491_v41 = vrot.slane %v4787_v46, 6 }
0x1271   :  { %v4044_v49 = vpop.eup %4043 }
0x1272   :  { %1338 = vrot.lane.b32.xlu0 %v4044_v49, %s4382_s12 }
0x12c7   :  { %v1417_v55 = vpop.permute.xlu1 %1416 }
0x12c8   :  { %v4792_v54 = vadd.f32 %v1417_v55, %v1409_v52 }
0x12ca   :  { %4045 = vtanh.f32 %v4792_v54  ;;  %v1572_v46 = vrot.slane %v4792_v54, 2 }
0x12d7   :  { %v4046_v47 = vpop.eup %4045 }
0x12d8   :  { %1422 = vrot.lane.b32.xlu1 %v4046_v47, %s4382_s12  ;;  %v4863_v47 = vld [vmem:[#allocation7 + $0x2] sm:$0x3] }
0x12e4   :  { %v1339_v48 = vpop.permute.xlu0 %1338 }
0x12e5   :  { %v4796_v56 = vmul.f32 %v4038_v33, %v1339_v48 }
0x12e7   :  { %v1431_v63 = vpack.c.bf16 %v4796_v56, %v4796_v56 }
0x12e9   :  { %v1433_v5 = vrot.slane %v1431_v63, 2  ;;  %v1912_v63 = vpack.c.bf16 %v4863_v47, %v4863_v47 }
0x12eb   :  { %1434 = vrot.lane.b32.xlu0 %v1433_v5, %s4385_s19 }
0x134a   :  { %v1423_v6 = vpop.permute.xlu1 %1422 }
0x134b   :  { %v4801_v50 = vmul.f32 %v4042_v40, %v1423_v6 }
0x134d   :  { %v1515_v8 = vpack.c.bf16 %v4801_v50, %v4801_v50 }
0x134f   :  { %v1517_v11 = vrot.slane %v1515_v8, 1 }
0x1351   :  { %1518 = vrot.lane.b32.xlu1 %v1517_v11, %s4385_s19 }
0x135d   :  { %v1435_v13 = vpop.permute.xlu0 %1434 }
0x135e   :  { %3710 = vmatmul.mubr.msk.bf16.vlgmr.msra.gmra.mxu0 %vm253_vm1, %v1435_v13 }
0x135f   :  { %3725 = vmatprep.mubr.msk.bf16.mxu0 %vm4395_vm0, %v4393_v0 }
0x13c3   :  { %v1519_v9 = vpop.permute.xlu1 %1518 }
0x13c4   :  { %3718 = vmatmul.mubr.msk.bf16.vlgmr.msra.gmra.mxu1 %vm253_vm1, %v1519_v9  ;;  %v3919_v9 = vld [vmem:[#allocation9 + $0x70] ss:$8 sps:$4 sm:$0xff]  }
0x13c5   :  { %3733 = vmatprep.mubr.msk.bf16.mxu1 %vm4395_vm0, %v4393_v0 }
0x141e   :  { %v1473_v14 = vpop.f32.mrf.mxu0 }
0x141f   :  { %v1480_v2 = vrot.slane %v1473_v14, 2  ;;  %v3924_v14 = vld [vmem:[#allocation9 + $0x64] ss:$8 sps:$4 sm:$0xff]  }
0x1420   :  { %v3711_v10 = vpop.f32.mrf.mxu0 }
0x1421   :  { %v1482_v18 = vadd.f32 %v1480_v2, %v4536_v37 }
0x1422   :  { %v1476_v19 = vpop.f32.mrf.mxu0 }
0x1423   :  { %4047 = vtanh.f32 %v1482_v18  ;;  %v3429_v23 = vmul.f32 -1.442695, %v1482_v18  ;;  %v3922_v18 = vld [vmem:[#allocation9 + $0x60] ss:$8 sps:$4 sm:$0xff]   ;;  %v3927_v19 = vld [vmem:[#allocation9 + $0x54] ss:$8 sps:$4 sm:$0xff]  }
0x1424   :  { %v3712_v20 = vpop.f32.mrf.mxu0 }
0x1425   :  { %4049 = vpow2.f32 %v3429_v23  ;;  %v3925_v23 = vld [vmem:[#allocation9 + $0x50] ss:$8 sps:$4 sm:$0xff]  }
0x1430   :  { %v4048_v16 = vpop.eup %4047 }
0x1431   :  { %1495 = vrot.lane.b32.xlu0 %v4048_v16, %s4382_s12 }
0x1432   :  { %v4050_v29 = vpop.eup %4049 }
0x1433   :  { %v1486_v30 = vadd.f32 1.0, %v4050_v29  ;;  %v4890_v29 = vld [vmem:[#allocation10 + $0x20] sm:$0xff]  }
0x1484   :  { %v1557_v24 = vpop.f32.mrf.mxu1 }
0x1485   :  { %v1563_v26 = vadd.f32 %v1557_v24, %v4534_v35  ;;  %v3931_v24 = vld [vmem:[#allocation9 + $0x44] ss:$8 sps:$4 sm:$0xff]  }
0x1486   :  { %v3719_v17 = vpop.f32.mrf.mxu1 }
0x1487   :  { %4051 = vtanh.f32 %v1563_v26  ;;  %v3431_v36 = vmul.f32 -1.442695, %v1563_v26  ;;  %v3929_v17 = vld [vmem:[#allocation9 + $0x40] ss:$8 sps:$4 sm:$0xff]  }
0x1488   :  { %v1560_v27 = vpop.f32.mrf.mxu1  ;;  %4053 = vrcp.f32 %v1486_v30 }
0x1489   :  { %4055 = vpow2.f32 %v3431_v36  ;;  %v4885_v27 = vld [vmem:[#allocation10 + $0x28] sm:$0xff]  }
0x148a   :  { %v3720_v28 = vpop.f32.mrf.mxu1 }
0x1494   :  { %v4052_v32 = vpop.eup %4051 }
0x1495   :  { %1576 = vrot.lane.b32.xlu1 %v4052_v32, %s4382_s12  ;;  %v4054_v37 = vpop.eup %4053 }
0x1496   :  { %v4056_v38 = vpop.eup %4055  ;;  %v1493_v43 = vmul.f32 %v4054_v37, %v1491_v41 }
0x1497   :  { %v1567_v31 = vadd.f32 1.0, %v4056_v38 }
0x1499   :  { %4057 = vrcp.f32 %v1567_v31 }
0x14a3   :  { %v1496_v33 = vpop.permute.xlu0 %1495 }
0x14a4   :  { %v1498_v34 = vmul.f32 %v4054_v37, %v1496_v33 }
0x14a6   :  { %1500 = vrot.lane.b32.xlu0 %v1498_v34, %s4382_s12  ;;  %v4817_v35 = vpop.eup %4057  ;;  %v4902_v34 = vld [vmem:[#allocation10 + $0x30] sm:$0xff]  }
0x14a7   :  { %v1574_v49 = vmul.f32 %v4817_v35, %v1572_v46 }
0x1507   :  { %v1577_v39 = vpop.permute.xlu1 %1576 }
0x1508   :  { %v1579_v40 = vmul.f32 %v4817_v35, %v1577_v39 }
0x150a   :  { %1581 = vrot.lane.b32.xlu1 %v1579_v40, %s4382_s12 }
0x1518   :  { %v1501_v44 = vpop.permute.xlu0 %1500 }
0x1519   :  { %v1503_v42 = vadd.f32 %v1501_v44, %v1493_v43  ;;  %v3437_v43 = vld [vmem:[%s5249_s4 + $0x2] sm:$0x3]  ;;  %s4397_s4 = smov 16  }
0x151a   :  { %v1811_v46 = vrot.slane %v3437_v43, %v139_v25 }
0x151b   :  { %4059 = vtanh.f32 %v1503_v42  ;;  %v1807_v42 = vrot.slane %v3437_v43, %v135_v22 }
0x1528   :  { %v4060_v45 = vpop.eup %4059 }
0x1529   :  { %1506 = vrot.lane.b32.xlu0 %v4060_v45, %s4382_s12 }
0x152d   :  { %421 = vrot.lane.b32.xlu0 %v4561_v15, %s4396_s5 }
0x1531   :  { %590 = vrot.lane.b32.xlu0 %v4601_v7, %s4396_s5 }
0x1535   :  { %760 = vrot.lane.b32.xlu0 %v4641_v62, %s4396_s5  ;;  %v3917_v62 = vld [vmem:[#allocation12 + $0x8] sm:$0xff]  }
0x1536   :  { %3722 = vmatpush3.bf16.msra.mxu0 %v3917_v62  ;;  %3730 = vmatpush3.bf16.msra.mxu1 %v3917_v62 }
0x1537   :  { %3723 = vmatprep.subr.bf16.mxu0 %v4393_v0  ;;  %3731 = vmatprep.subr.bf16.mxu1 %v4393_v0 }
0x1539   :  { %927 = vrot.lane.b32.xlu0 %v4681_v60, %s4396_s5  ;;  %v3918_v60 = vld [vmem:[#allocation12] sm:$0xff]  }
0x153a   :  { %3724 = vmatpush3.bf16.msra.mxu0 %v3918_v60  ;;  %3732 = vmatpush3.bf16.msra.mxu1 %v3918_v60 }
0x153b   :  { %3737 = vmatprep.subr.bf16.mxu1 %v4393_v0 }
0x153d   :  { %1092 = vrot.lane.b32.xlu0 %v4721_v57, %s4396_s5 }
0x1541   :  { %1259 = vrot.lane.b32.xlu0 %v4761_v53, %s4396_s5 }
0x157c   :  { %v1582_v15 = vpop.permute.xlu1 %1581 }
0x157d   :  { %v1584_v51 = vadd.f32 %v1582_v15, %v1574_v49 }
0x157f   :  { %4061 = vtanh.f32 %v1584_v51 }
0x158c   :  { %v4062_v7 = vpop.eup %4061 }
0x158d   :  { %1587 = vrot.lane.b32.xlu1 %v4062_v7, %s4382_s12 }
0x1591   :  { %327 = vrot.lane.b32.xlu1 %v4556_v12, %s4385_s19  ;;  %v3921_v12 = vld [vmem:[#allocation9 + $0x74] ss:$8 sps:$4 sm:$0xff]  }
0x1592   :  { %1865 = vmatprep.subr.bf16.mxu0 %v3921_v12 }
0x1595   :  { %505 = vrot.lane.b32.xlu1 %v4596_v4, %s4385_s19 }
0x1599   :  { %675 = vrot.lane.b32.xlu1 %v4636_v3, %s4385_s19 }
0x159b   :  { %v1507_v57 = vpop.permute.xlu0 %1506 }
0x159c   :  { %v1509_v53 = vmul.f32 %v4054_v37, %v1507_v57  ;;  %v4896_v37 = vld [vmem:[#allocation10 + $0x38] sm:$0xff]  }
0x159d   :  { %845 = vrot.lane.b32.xlu1 %v4676_v59, %s4385_s19 }
0x159e   :  { %v1596_v52 = vpack.c.bf16 %v1509_v53, %v1509_v53 }
0x159f   :  { %v422_v55 = vpop.permute.xlu0 %421 }
0x15a0   :  { %425 = vst.msk [vmem:[#allocation2 + $0x8] sm:$0xc0] %vm424_vm3, %v422_v55  ;;  %v1604_v54 = vrot.slane %v1596_v52, 3 }
0x15a1   :  { %1009 = vrot.lane.b32.xlu1 %v4716_v58, %s4385_s19 }
0x15a2   :  { %1605 = vrot.lane.b32.xlu0 %v1604_v54, %s4385_s19 }
0x15a3   :  { %v591_v4 = vpop.permute.xlu0 %590 }
0x15a4   :  { %594 = vst.msk [vmem:[#allocation2 + $0x8] sm:$0x30] %vm593_vm4, %v591_v4 }
0x15a5   :  { %1175 = vrot.lane.b32.xlu1 %v4756_v61, %s4385_s19 }
0x15a6   :  { %1427 = vrot.lane.b32.xlu0 %v4801_v50, %s4396_s5 }
0x15a7   :  { %v761_v3 = vpop.permute.xlu0 %760 }
0x15a8   :  { %764 = vst.msk [vmem:[#allocation2 + $0x8] sm:$0xc] %vm763_vm5, %v761_v3 }
0x15a9   :  { %1343 = vrot.lane.b32.xlu1 %v4796_v56, %s4385_s19 }
0x15ab   :  { %v928_v59 = vpop.permute.xlu0 %927 }
0x15ac   :  { %931 = vst.msk [vmem:[#allocation2 + $0x8] sm:$0x3] %vm930_vm6, %v928_v59 }
0x15ad   :  { %1511 = vrot.lane.b32.xlu1 %v1509_v53, %s4385_s19 }
0x15af   :  { %v1093_v56 = vpop.permute.xlu0 %1092 }
0x15b3   :  { %v1260_v8 = vpop.permute.xlu0 %1259 }
0x15ff   :  { %v1588_v58 = vpop.permute.xlu1 %1587 }
0x1600   :  { %v1590_v61 = vmul.f32 %v4817_v35, %v1588_v58 }
0x1602   :  { %1592 = vrot.lane.b32.xlu0 %v1590_v61, %s4396_s5  ;;  %v1703_v48 = vpack.c.bf16 %v1590_v61, %v1590_v61 }
0x1603   :  { %v328_v5 = vpop.permute.xlu1 %327 }
0x1604   :  { %331 = vst.msk [vmem:[#allocation2] sm:$0x3] %vm330_vm7, %v328_v5  ;;  %1705 = vrot.lane.b32.xlu1 %v1703_v48, %s4385_s19 }
0x1606   :  { %1998 = vrot.lane.b32.xlu0 %v1912_v63, %s4396_s5 }
0x1607   :  { %v506_v6 = vpop.permute.xlu1 %505 }
0x1608   :  { %509 = vst.msk [vmem:[#allocation2] sm:$0xc] %vm508_vm8, %v506_v6 }
0x160b   :  { %v676_v50 = vpop.permute.xlu1 %675 }
0x160c   :  { %679 = vst.msk [vmem:[#allocation2] sm:$0x30] %vm678_vm9, %v676_v50 }
0x160d   :  { %1262 = vst.msk [vmem:[#allocation2] sm:$0x30] %vm593_vm4, %v1260_v8 }
0x160f   :  { %v846_v11 = vpop.permute.xlu1 %845 }
0x1610   :  { %849 = vst.msk [vmem:[#allocation2] sm:$0xc0] %vm848_vm10, %v846_v11 }
0x1611   :  { %1095 = vst.msk [vmem:[#allocation2] sm:$0xc0] %vm424_vm3, %v1093_v56 }
0x1613   :  { %v1010_v13 = vpop.permute.xlu1 %1009 }
0x1614   :  { %1012 = vst.msk [vmem:[#allocation2 + $0x8] sm:$0x3] %vm330_vm7, %v1010_v13  ;;  %v1606_v2 = vpop.permute.xlu0 %1605 }
0x1615   :  { %3726 = vmatmul.mubr.msk.bf16.vlgmr.msra.gmra.mxu0 %vm253_vm1, %v1606_v2 }
0x1616   :  { %1866 = vmatpush1.bf16.msra.mxu0 %v3919_v9  ;;  %1889 = vmatprep.mubr.bf16.mxu0 %v4394_v1 }
0x1617   :  { %v1176_v10 = vpop.permute.xlu1 %1175  ;;  %1867 = vmatprep.subr.bf16.mxu0 %v3924_v14 }
0x1618   :  { %1178 = vst.msk [vmem:[#allocation2 + $0x8] sm:$0xc] %vm508_vm8, %v1176_v10  ;;  %v1428_v20 = vpop.permute.xlu0 %1427 }
0x1619   :  { %1430 = vst.msk [vmem:[#allocation2] sm:$0xc] %vm763_vm5, %v1428_v20 }
0x161a   :  { %1868 = vmatpush1.bf16.msra.mxu0 %v3922_v18 }
0x161b   :  { %v1344_v16 = vpop.permute.xlu1 %1343  ;;  %1869 = vmatprep.subr.bf16.mxu0 %v3927_v19 }
0x161c   :  { %1346 = vst.msk [vmem:[#allocation2 + $0x8] sm:$0x30] %vm678_vm9, %v1344_v16 }
0x161e   :  { %1870 = vmatpush1.bf16.msra.mxu0 %v3925_v23  ;;  %v2066_v23 = vrot.slane %v4863_v47, 2 }
0x161f   :  { %v1512_v26 = vpop.permute.xlu1 %1511  ;;  %1871 = vmatprep.subr.bf16.mxu0 %v3931_v24 }
0x1620   :  { %1514 = vst.msk [vmem:[#allocation2 + $0x8] sm:$0xc0] %vm848_vm10, %v1512_v26 }
0x1622   :  { %1872 = vmatpush1.bf16.msra.mxu0 %v3929_v17 }
0x1623   :  { %3753 = vmatprep.subr.bf16.mxu0 %v4393_v0 }
0x1627   :  { %v1801_v32 = vld [vmem:[#allocation2 + $0x8] sm:$0xff] }
0x1674   :  { %v1593_v1 = vpop.permute.xlu0 %1592 }
0x1675   :  { %1595 = vst.msk [vmem:[#allocation2] sm:$0x3] %vm930_vm6, %v1593_v1 }
0x1676   :  { %v1706_v28 = vpop.permute.xlu1 %1705 }
0x1677   :  { %3734 = vmatmul.mubr.msk.bf16.vlgmr.msra.gmra.mxu1 %vm253_vm1, %v1706_v28 }
0x1678   :  { %3738 = vmatpush3.bf16.msra.mxu1 %v4885_v27  ;;  %3741 = vmatprep.mubr.msk.bf16.mxu1 %vm4395_vm0, %v4393_v0  ;;  %v1999_v36 = vpop.permute.xlu0 %1998 }
0x1679   :  { %3739 = vmatprep.subr.bf16.mxu1 %v4393_v0 }
0x167c   :  { %3740 = vmatpush3.bf16.msra.mxu1 %v4890_v29  ;;  %v1800_v30 = vld [vmem:[#allocation2] sm:$0xff] }
0x167d   :  { %v1802_v33 = vpack.c.bf16 %v1801_v32, %v1800_v30  ;;  %3745 = vmatprep.subr.bf16.mxu1 %v4393_v0 }
0x167f   :  { %3446 = vmatmul.mubr.msk.bf16.vlgmr.msra.gmra.mxu0 %vm183_vm2, %v1802_v33  ;;  %3742 = vmatmul.mubr.msk.bf16.vlgmr.msra.gmra.mxu1 %vm253_vm1, %v1912_v63 }
0x1680   :  { %3746 = vmatpush3.bf16.msra.mxu1 %v4896_v37  ;;  %3749 = vmatprep.mubr.msk.bf16.mxu1 %vm4395_vm0, %v4393_v0 }
0x1681   :  { %3747 = vmatprep.subr.bf16.mxu1 %v4393_v0  ;;  %3754 = vmatpush3.bf16.msra.mxu0 %v4885_v27 }
0x1682   :  { %3755 = vmatprep.subr.bf16.mxu0 %v4393_v0  ;;  %3757 = vmatprep.mubr.msk.bf16.mxu0 %vm4395_vm0, %v4393_v0 }
0x1684   :  { %3748 = vmatpush3.bf16.msra.mxu1 %v4902_v34 }
0x1685   :  { %3756 = vmatpush3.bf16.msra.mxu0 %v4890_v29  ;;  %3761 = vmatprep.subr.bf16.mxu1 %v4393_v0 }
0x1686   :  { %3769 = vmatprep.subr.bf16.mxu0 %v4393_v0 }
0x1687   :  { %3750 = vmatmul.mubr.msk.bf16.vlgmr.msra.gmra.mxu1 %vm253_vm1, %v1999_v36 }
0x1688   :  { %3762 = vmatpush3.bf16.msra.mxu1 %v4896_v37  ;;  %3765 = vmatprep.mubr.msk.bf16.mxu1 %vm4395_vm0, %v4393_v0 }
0x1689   :  { %3763 = vmatprep.subr.bf16.mxu1 %v4393_v0 }
0x168c   :  { %3764 = vmatpush3.bf16.msra.mxu1 %v4902_v34 }
0x168d   :  { %3777 = vmatprep.subr.bf16.mxu1 %v4393_v0 }
0x16d5   :  { %v4922_v38 = vpop.f32.mrf.mxu0 }
0x16d7   :  { %v3727_v31 = vpop.f32.mrf.mxu0 }
0x16d9   :  { %v1659_v35 = vpop.f32.mrf.mxu0 }
0x16db   :  { %v3728_v39 = vpop.f32.mrf.mxu0 }
0x1737   :  { %v4924_v40 = vpop.f32.mrf.mxu1 }
0x1739   :  { %v3735_v41 = vpop.f32.mrf.mxu1 }
0x173b   :  { %v1747_v44 = vpop.f32.mrf.mxu1 }
0x173d   :  { %v3736_v45 = vpop.f32.mrf.mxu1 }
0x173f   :  { %v1891_v49 = vpop.f32.mrf.mxu0  ;;  %v1962_v15 = vpop.f32.mrf.mxu1 }
0x1740   :  { %v4933_v51 = vadd.f32 %v1891_v49, %v1807_v42 }
0x1741   :  { %v1893_v7 = vpop.f32.mrf.mxu0  ;;  %v3743_v62 = vpop.f32.mrf.mxu1 }
0x1742   :  { %v1968_v60 = vadd.f32 %v1962_v15, %v4933_v51  ;;  %v4936_v57 = vadd.f32 %v1893_v7, %v1811_v46 }
0x1743   :  { %v1895_v53 = vpop.f32.mrf.mxu0  ;;  %v1965_v52 = vpop.f32.mrf.mxu1 }
0x1744   :  { %4063 = vtanh.f32 %v1968_v60  ;;  %v4938_v55 = vadd.f32 %v1895_v53, %v1807_v42  ;;  %v3450_v63 = vmul.f32 -1.442695, %v1968_v60 }
0x1745   :  { %v1897_v22 = vpop.f32.mrf.mxu0  ;;  %v3744_v12 = vpop.f32.mrf.mxu1 }
0x1746   :  { %v4940_v21 = vadd.f32 %v1897_v22, %v1811_v46 }
0x1747   :  { %v2049_v54 = vpop.f32.mrf.mxu1 }
0x1748   :  { %v2056_v25 = vrot.slane %v2049_v54, 2 }
0x1749   :  { %v3751_v4 = vpop.f32.mrf.mxu1 }
0x174a   :  { %v2058_v3 = vadd.f32 %v2056_v25, %v4940_v21 }
0x174b   :  { %v2052_v59 = vpop.f32.mrf.mxu1 }
0x174c   :  { %4065 = vtanh.f32 %v2058_v3  ;;  %v3454_v5 = vmul.f32 -1.442695, %v2058_v3 }
0x174d   :  { %v3752_v58 = vpop.f32.mrf.mxu1  ;;  %4067 = vpow2.f32 %v3450_v63 }
0x174e   :  { %4069 = vpow2.f32 %v3454_v5 }
0x1751   :  { %v4064_v61 = vpop.eup %4063 }
0x1752   :  { %1982 = vrot.lane.b32.xlu1 %v4064_v61, %s4382_s12 }
0x1756   :  { %1977 = vrot.lane.b32.xlu1 %v4863_v47, %s4382_s12 }
0x1759   :  { %v4066_v48 = vpop.eup %4065 }
0x175a   :  { %2070 = vrot.lane.b32.xlu0 %v4066_v48, %s4382_s12  ;;  %v4068_v56 = vpop.eup %4067 }
0x175b   :  { %v1972_v6 = vadd.f32 1.0, %v4068_v56  ;;  %v4070_v50 = vpop.eup %4069 }
0x175c   :  { %v2062_v8 = vadd.f32 1.0, %v4070_v50 }
0x175d   :  { %4071 = vrcp.f32 %v1972_v6 }
0x175e   :  { %4073 = vrcp.f32 %v2062_v8 }
0x176a   :  { %v4072_v11 = vpop.eup %4071 }
0x176b   :  { %v4074_v14 = vpop.eup %4073 }
0x176c   :  { %v2068_v24 = vmul.f32 %v4074_v14, %v2066_v23 }
0x17c4   :  { %v1983_v13 = vpop.permute.xlu1 %1982 }
0x17c5   :  { %v1985_v9 = vmul.f32 %v4072_v11, %v1983_v13 }
0x17c7   :  { %1987 = vrot.lane.b32.xlu0 %v1985_v9, %s4382_s12 }
0x17c8   :  { %v1978_v18 = vpop.permute.xlu1 %1977 }
0x17c9   :  { %v1980_v19 = vmul.f32 %v4072_v11, %v1978_v18 }
0x17cc   :  { %v2071_v2 = vpop.permute.xlu0 %2070 }
0x17cd   :  { %v2073_v10 = vmul.f32 %v4074_v14, %v2071_v2 }
0x17cf   :  { %2075 = vrot.lane.b32.xlu1 %v2073_v10, %s4382_s12 }
0x1839   :  { %v1988_v20 = vpop.permute.xlu0 %1987 }
0x183a   :  { %v4949_v16 = vadd.f32 %v1988_v20, %v1980_v19 }
0x183c   :  { %4075 = vtanh.f32 %v4949_v16  ;;  %v2144_v50 = vrot.slane %v4949_v16, 6 }
0x1841   :  { %v2076_v26 = vpop.permute.xlu1 %2075 }
0x1842   :  { %v4953_v17 = vadd.f32 %v2076_v26, %v2068_v24 }
0x1844   :  { %4077 = vtanh.f32 %v4953_v17  ;;  %v2223_v9 = vrot.slane %v4953_v17, 2 }
0x1849   :  { %v4076_v1 = vpop.eup %4075 }
0x184a   :  { %1993 = vrot.lane.b32.xlu0 %v4076_v1, %s4382_s12 }
0x1851   :  { %v4078_v28 = vpop.eup %4077 }
0x1852   :  { %2081 = vrot.lane.b32.xlu1 %v4078_v28, %s4382_s12 }
0x18bc   :  { %v1994_v30 = vpop.permute.xlu0 %1993 }
0x18bd   :  { %v1996_v32 = vmul.f32 %v4072_v11, %v1994_v30 }
0x18bf   :  { %v2085_v33 = vpack.c.bf16 %v1996_v32, %v1996_v32 }
0x18c1   :  { %2087 = vrot.lane.b32.xlu0 %v2085_v33, %s4385_s19 }
0x18c4   :  { %v2082_v36 = vpop.permute.xlu1 %2081 }
0x18c5   :  { %v2084_v31 = vmul.f32 %v4074_v14, %v2082_v36 }
0x18c7   :  { %v2163_v47 = vpack.c.bf16 %v2084_v31, %v2084_v31 }
0x18c9   :  { %v2165_v35 = vrot.slane %v2163_v47, 3 }
0x18cb   :  { %2166 = vrot.lane.b32.xlu1 %v2165_v35, %s4385_s19 }
0x1933   :  { %v2088_v39 = vpop.permute.xlu0 %2087 }
0x1934   :  { %3758 = vmatmul.mubr.msk.bf16.vlgmr.msra.gmra.mxu0 %vm253_vm1, %v2088_v39 }
0x1935   :  { %3770 = vmatpush3.bf16.msra.mxu0 %v4885_v27  ;;  %3773 = vmatprep.mubr.msk.bf16.mxu0 %vm4395_vm0, %v4393_v0 }
0x1936   :  { %3771 = vmatprep.subr.bf16.mxu0 %v4393_v0 }
0x1939   :  { %3772 = vmatpush3.bf16.msra.mxu0 %v4890_v29 }
0x193a   :  { %3785 = vmatprep.subr.bf16.mxu0 %v4393_v0 }
0x193d   :  { %v2167_v41 = vpop.permute.xlu1 %2166 }
0x193e   :  { %3766 = vmatmul.mubr.msk.bf16.vlgmr.msra.gmra.mxu1 %vm253_vm1, %v2167_v41 }
0x193f   :  { %3778 = vmatpush3.bf16.msra.mxu1 %v4896_v37  ;;  %3781 = vmatprep.mubr.msk.bf16.mxu1 %vm4395_vm0, %v4393_v0 }
0x1940   :  { %3779 = vmatprep.subr.bf16.mxu1 %v4393_v0 }
0x1943   :  { %3780 = vmatpush3.bf16.msra.mxu1 %v4902_v34 }
0x1944   :  { %3793 = vmatprep.subr.bf16.mxu1 %v4393_v0 }
0x19f4   :  { %v2126_v43 = vpop.f32.mrf.mxu0 }
0x19f5   :  { %v2133_v44 = vrot.slane %v2126_v43, 6 }
0x19f6   :  { %v3759_v42 = vpop.f32.mrf.mxu0 }
0x19f7   :  { %v2135_v45 = vadd.f32 %v2133_v44, %v4933_v51 }
0x19f8   :  { %v2129_v46 = vpop.f32.mrf.mxu0 }
0x19f9   :  { %4079 = vtanh.f32 %v2135_v45  ;;  %v3456_v54 = vmul.f32 -1.442695, %v2135_v45 }
0x19fa   :  { %v3760_v49 = vpop.f32.mrf.mxu0 }
0x19fe   :  { %v2205_v15 = vpop.f32.mrf.mxu1 }
0x19ff   :  { %v2212_v7 = vrot.slane %v2205_v15, 4 }
0x1a00   :  { %v3767_v62 = vpop.f32.mrf.mxu1 }
0x1a01   :  { %v2214_v60 = vadd.f32 %v2212_v7, %v4940_v21 }
0x1a02   :  { %v2208_v53 = vpop.f32.mrf.mxu1 }
0x1a03   :  { %4081 = vtanh.f32 %v2214_v60  ;;  %v3458_v25 = vmul.f32 -1.442695, %v2214_v60 }
0x1a04   :  { %v3768_v52 = vpop.f32.mrf.mxu1  ;;  %4083 = vpow2.f32 %v3456_v54 }
0x1a05   :  { %4085 = vpow2.f32 %v3458_v25 }
0x1a06   :  { %v4080_v22 = vpop.eup %4079 }
0x1a07   :  { %2148 = vrot.lane.b32.xlu0 %v4080_v22, %s4382_s12 }
0x1a10   :  { %v4082_v12 = vpop.eup %4081 }
0x1a11   :  { %2227 = vrot.lane.b32.xlu1 %v4082_v12, %s4382_s12  ;;  %v4084_v4 = vpop.eup %4083 }
0x1a12   :  { %v2139_v3 = vadd.f32 1.0, %v4084_v4  ;;  %v4086_v59 = vpop.eup %4085 }
0x1a13   :  { %v2218_v58 = vadd.f32 1.0, %v4086_v59 }
0x1a14   :  { %4087 = vrcp.f32 %v2139_v3 }
0x1a15   :  { %4089 = vrcp.f32 %v2218_v58 }
0x1a21   :  { %v4088_v61 = vpop.eup %4087 }
0x1a22   :  { %v4090_v5 = vpop.eup %4089  ;;  %v2146_v8 = vmul.f32 %v4088_v61, %v2144_v50 }
0x1a23   :  { %v2225_v14 = vmul.f32 %v4090_v5, %v2223_v9 }
0x1a79   :  { %v2149_v48 = vpop.permute.xlu0 %2148 }
0x1a7a   :  { %v2151_v63 = vmul.f32 %v4088_v61, %v2149_v48 }
0x1a7c   :  { %2153 = vrot.lane.b32.xlu0 %v2151_v63, %s4382_s12 }
0x1a83   :  { %v2228_v56 = vpop.permute.xlu1 %2227 }
0x1a84   :  { %v2230_v6 = vmul.f32 %v4090_v5, %v2228_v56 }
0x1a86   :  { %2232 = vrot.lane.b32.xlu1 %v2230_v6, %s4382_s12 }
0x1aee   :  { %v2154_v11 = vpop.permute.xlu0 %2153 }
0x1aef   :  { %v4981_v13 = vadd.f32 %v2154_v11, %v2146_v8 }
0x1af1   :  { %4091 = vtanh.f32 %v4981_v13  ;;  %v2302_v58 = vrot.slane %v4981_v13, 6 }
0x1af8   :  { %v2233_v2 = vpop.permute.xlu1 %2232 }
0x1af9   :  { %v4985_v10 = vadd.f32 %v2233_v2, %v2225_v14 }
0x1afb   :  { %4093 = vtanh.f32 %v4985_v10 }
0x1afe   :  { %v4092_v18 = vpop.eup %4091 }
0x1aff   :  { %2159 = vrot.lane.b32.xlu0 %v4092_v18, %s4382_s12 }
0x1b08   :  { %v4094_v19 = vpop.eup %4093 }
0x1b09   :  { %2238 = vrot.lane.b32.xlu1 %v4094_v19, %s4382_s12 }
0x1b71   :  { %v2160_v20 = vpop.permute.xlu0 %2159 }
0x1b72   :  { %v2162_v16 = vmul.f32 %v4088_v61, %v2160_v20 }
0x1b74   :  { %v2242_v23 = vpack.c.bf16 %v2162_v16, %v2162_v16 }
0x1b76   :  { %v2244_v24 = vrot.slane %v2242_v23, 1 }
0x1b78   :  { %2245 = vrot.lane.b32.xlu0 %v2244_v24, %s4385_s19 }
0x1b7b   :  { %v2239_v26 = vpop.permute.xlu1 %2238 }
0x1b7c   :  { %v2241_v17 = vmul.f32 %v4090_v5, %v2239_v26  ;;  %v2381_v5 = vrot.slane %v4985_v10, 2 }
0x1b7e   :  { %v2321_v1 = vpack.c.bf16 %v2241_v17, %v2241_v17 }
0x1b80   :  { %v2323_v28 = vrot.slane %v2321_v1, 2 }
0x1b82   :  { %2324 = vrot.lane.b32.xlu1 %v2323_v28, %s4385_s19 }
0x1bea   :  { %v2246_v30 = vpop.permute.xlu0 %2245 }
0x1beb   :  { %3774 = vmatmul.mubr.msk.bf16.vlgmr.msra.gmra.mxu0 %vm253_vm1, %v2246_v30 }
0x1bec   :  { %3786 = vmatpush3.bf16.msra.mxu0 %v4885_v27  ;;  %3789 = vmatprep.mubr.msk.bf16.mxu0 %vm4395_vm0, %v4393_v0 }
0x1bed   :  { %3787 = vmatprep.subr.bf16.mxu0 %v4393_v0 }
0x1bf0   :  { %3788 = vmatpush3.bf16.msra.mxu0 %v4890_v29 }
0x1bf1   :  { %3801 = vmatprep.subr.bf16.mxu0 %v4393_v0 }
0x1bf4   :  { %v2325_v32 = vpop.permute.xlu1 %2324 }
0x1bf5   :  { %3782 = vmatmul.mubr.msk.bf16.vlgmr.msra.gmra.mxu1 %vm253_vm1, %v2325_v32 }
0x1bf6   :  { %3794 = vmatpush3.bf16.msra.mxu1 %v4896_v37  ;;  %3797 = vmatprep.mubr.msk.bf16.mxu1 %vm4395_vm0, %v4393_v0 }
0x1bf7   :  { %3795 = vmatprep.subr.bf16.mxu1 %v4393_v0 }
0x1bfa   :  { %3796 = vmatpush3.bf16.msra.mxu1 %v4902_v34 }
0x1bfb   :  { %3809 = vmatprep.subr.bf16.mxu1 %v4393_v0 }
0x1cab   :  { %v2284_v33 = vpop.f32.mrf.mxu0 }
0x1cac   :  { %v2291_v36 = vrot.slane %v2284_v33, 4 }
0x1cad   :  { %v3775_v31 = vpop.f32.mrf.mxu0 }
0x1cae   :  { %v2293_v47 = vadd.f32 %v2291_v36, %v4933_v51 }
0x1caf   :  { %v2287_v35 = vpop.f32.mrf.mxu0 }
0x1cb0   :  { %4095 = vtanh.f32 %v2293_v47  ;;  %v3460_v7 = vmul.f32 -1.442695, %v2293_v47 }
0x1cb1   :  { %v3776_v39 = vpop.f32.mrf.mxu0 }
0x1cb5   :  { %v2363_v41 = vpop.f32.mrf.mxu1 }
0x1cb6   :  { %v2370_v43 = vrot.slane %v2363_v41, 6 }
0x1cb7   :  { %v3783_v44 = vpop.f32.mrf.mxu1 }
0x1cb8   :  { %v2372_v42 = vadd.f32 %v2370_v43, %v4940_v21 }
0x1cb9   :  { %v2366_v45 = vpop.f32.mrf.mxu1 }
0x1cba   :  { %4097 = vtanh.f32 %v2372_v42  ;;  %v3462_v62 = vmul.f32 -1.442695, %v2372_v42 }
0x1cbb   :  { %v3784_v46 = vpop.f32.mrf.mxu1  ;;  %4099 = vpow2.f32 %v3460_v7 }
0x1cbc   :  { %4101 = vpow2.f32 %v3462_v62 }
0x1cbd   :  { %v4096_v49 = vpop.eup %4095 }
0x1cbe   :  { %2306 = vrot.lane.b32.xlu0 %v4096_v49, %s4382_s12 }
0x1cc7   :  { %v4098_v15 = vpop.eup %4097 }
0x1cc8   :  { %2385 = vrot.lane.b32.xlu1 %v4098_v15, %s4382_s12  ;;  %v4100_v60 = vpop.eup %4099 }
0x1cc9   :  { %v2297_v53 = vadd.f32 1.0, %v4100_v60  ;;  %v4102_v52 = vpop.eup %4101 }
0x1cca   :  { %v2376_v22 = vadd.f32 1.0, %v4102_v52 }
0x1ccb   :  { %4103 = vrcp.f32 %v2297_v53 }
0x1ccc   :  { %4105 = vrcp.f32 %v2376_v22 }
0x1cd8   :  { %v4104_v12 = vpop.eup %4103 }
0x1cd9   :  { %v4106_v4 = vpop.eup %4105  ;;  %v2304_v61 = vmul.f32 %v4104_v12, %v2302_v58 }
0x1cda   :  { %v2383_v56 = vmul.f32 %v4106_v4, %v2381_v5 }
0x1d30   :  { %v2307_v54 = vpop.permute.xlu0 %2306 }
0x1d31   :  { %v2309_v25 = vmul.f32 %v4104_v12, %v2307_v54 }
0x1d33   :  { %2311 = vrot.lane.b32.xlu0 %v2309_v25, %s4382_s12 }
0x1d3a   :  { %v2386_v3 = vpop.permute.xlu1 %2385 }
0x1d3b   :  { %v2388_v59 = vmul.f32 %v4106_v4, %v2386_v3 }
0x1d3d   :  { %2390 = vrot.lane.b32.xlu1 %v2388_v59, %s4382_s12 }
0x1da5   :  { %v2312_v48 = vpop.permute.xlu0 %2311 }
0x1da6   :  { %v5013_v63 = vadd.f32 %v2312_v48, %v2304_v61 }
0x1da8   :  { %4107 = vtanh.f32 %v5013_v63  ;;  %v2460_v60 = vrot.slane %v5013_v63, 6 }
0x1daf   :  { %v2391_v6 = vpop.permute.xlu1 %2390 }
0x1db0   :  { %v5017_v50 = vadd.f32 %v2391_v6, %v2383_v56 }
0x1db2   :  { %4109 = vtanh.f32 %v5017_v50 }
0x1db5   :  { %v4108_v8 = vpop.eup %4107 }
0x1db6   :  { %2317 = vrot.lane.b32.xlu0 %v4108_v8, %s4382_s12 }
0x1dbf   :  { %v4110_v11 = vpop.eup %4109 }
0x1dc0   :  { %2396 = vrot.lane.b32.xlu1 %v4110_v11, %s4382_s12 }
0x1e28   :  { %v2318_v13 = vpop.permute.xlu0 %2317 }
0x1e29   :  { %v2320_v9 = vmul.f32 %v4104_v12, %v2318_v13  ;;  %v2536_v12 = vrot.slane %v5017_v50, 2 }
0x1e2b   :  { %v2400_v14 = vpack.c.bf16 %v2320_v9, %v2320_v9 }
0x1e2d   :  { %v2402_v2 = vrot.slane %v2400_v14, 2 }
0x1e2f   :  { %2403 = vrot.lane.b32.xlu0 %v2402_v2, %s4385_s19 }
0x1e32   :  { %v2397_v18 = vpop.permute.xlu1 %2396 }
0x1e33   :  { %v2399_v10 = vmul.f32 %v4106_v4, %v2397_v18 }
0x1e35   :  { %v2479_v19 = vpack.c.bf16 %v2399_v10, %v2399_v10 }
0x1e37   :  { %v2481_v20 = vrot.slane %v2479_v19, 1 }
0x1e39   :  { %2482 = vrot.lane.b32.xlu1 %v2481_v20, %s4385_s19 }
0x1ea1   :  { %v2404_v16 = vpop.permute.xlu0 %2403 }
0x1ea2   :  { %3790 = vmatmul.mubr.msk.bf16.vlgmr.msra.gmra.mxu0 %vm253_vm1, %v2404_v16 }
0x1ea3   :  { %3802 = vmatpush3.bf16.msra.mxu0 %v4885_v27  ;;  %3805 = vmatprep.mubr.msk.bf16.mxu0 %vm4395_vm0, %v4393_v0 }
0x1ea4   :  { %3803 = vmatprep.subr.bf16.mxu0 %v4393_v0 }
0x1ea7   :  { %3804 = vmatpush3.bf16.msra.mxu0 %v4890_v29 }
0x1ea8   :  { %3817 = vmatprep.subr.bf16.mxu0 %v4393_v0 }
0x1eab   :  { %v2483_v23 = vpop.permute.xlu1 %2482 }
0x1eac   :  { %3798 = vmatmul.mubr.msk.bf16.vlgmr.msra.gmra.mxu1 %vm253_vm1, %v2483_v23 }
0x1ead   :  { %3810 = vmatpush3.bf16.msra.mxu1 %v4896_v37  ;;  %3813 = vmatprep.mubr.msk.bf16.mxu1 %vm4395_vm0, %v4393_v0 }
0x1eae   :  { %3811 = vmatprep.subr.bf16.mxu1 %v4393_v0 }
0x1eb1   :  { %3812 = vmatpush3.bf16.msra.mxu1 %v4902_v34 }
0x1eb2   :  { %3825 = vmatprep.subr.bf16.mxu1 %v4393_v0 }
0x1f62   :  { %v2442_v24 = vpop.f32.mrf.mxu0 }
0x1f63   :  { %v2449_v26 = vrot.slane %v2442_v24, 2 }
0x1f64   :  { %v3791_v17 = vpop.f32.mrf.mxu0 }
0x1f65   :  { %v2451_v1 = vadd.f32 %v2449_v26, %v4933_v51 }
0x1f66   :  { %v2445_v28 = vpop.f32.mrf.mxu0 }
0x1f67   :  { %4111 = vtanh.f32 %v2451_v1  ;;  %v3464_v41 = vmul.f32 -1.442695, %v2451_v1 }
0x1f68   :  { %v3792_v30 = vpop.f32.mrf.mxu0 }
0x1f6c   :  { %v2521_v32 = vpop.f32.mrf.mxu1 }
0x1f6d   :  { %v2527_v33 = vadd.f32 %v2521_v32, %v4940_v21 }
0x1f6e   :  { %v3799_v36 = vpop.f32.mrf.mxu1 }
0x1f6f   :  { %4113 = vtanh.f32 %v2527_v33  ;;  %v3466_v43 = vmul.f32 -1.442695, %v2527_v33 }
0x1f70   :  { %v2524_v31 = vpop.f32.mrf.mxu1  ;;  %4115 = vpow2.f32 %v3464_v41 }
0x1f71   :  { %4117 = vpow2.f32 %v3466_v43 }
0x1f72   :  { %v3800_v47 = vpop.f32.mrf.mxu1 }
0x1f74   :  { %v4112_v35 = vpop.eup %4111 }
0x1f75   :  { %2464 = vrot.lane.b32.xlu0 %v4112_v35, %s4382_s12 }
0x1f7c   :  { %v4114_v39 = vpop.eup %4113 }
0x1f7d   :  { %2540 = vrot.lane.b32.xlu1 %v4114_v39, %s4382_s12  ;;  %v4116_v51 = vpop.eup %4115 }
0x1f7e   :  { %v2455_v44 = vadd.f32 1.0, %v4116_v51  ;;  %v4118_v42 = vpop.eup %4117 }
0x1f7f   :  { %v2531_v45 = vadd.f32 1.0, %v4118_v42 }
0x1f80   :  { %4119 = vrcp.f32 %v2455_v44 }
0x1f81   :  { %4121 = vrcp.f32 %v2531_v45 }
0x1f8d   :  { %v4120_v21 = vpop.eup %4119 }
0x1f8e   :  { %v4122_v15 = vpop.eup %4121  ;;  %v2462_v53 = vmul.f32 %v4120_v21, %v2460_v60 }
0x1f8f   :  { %v2538_v54 = vmul.f32 %v4122_v15, %v2536_v12 }
0x1fe7   :  { %v2465_v46 = vpop.permute.xlu0 %2464 }
0x1fe8   :  { %v2467_v49 = vmul.f32 %v4120_v21, %v2465_v46 }
0x1fea   :  { %2469 = vrot.lane.b32.xlu0 %v2467_v49, %s4382_s12 }
0x1fef   :  { %v2541_v7 = vpop.permute.xlu1 %2540 }
0x1ff0   :  { %v2543_v62 = vmul.f32 %v4122_v15, %v2541_v7 }
0x1ff2   :  { %2545 = vrot.lane.b32.xlu1 %v2543_v62, %s4382_s12 }
0x205c   :  { %v2470_v52 = vpop.permute.xlu0 %2469 }
0x205d   :  { %v5045_v22 = vadd.f32 %v2470_v52, %v2462_v53 }
0x205f   :  { %4123 = vtanh.f32 %v5045_v22  ;;  %v2612_v43 = vrot.slane %v5045_v22, 6 }
0x2064   :  { %v2546_v25 = vpop.permute.xlu1 %2545 }
0x2065   :  { %v5049_v4 = vadd.f32 %v2546_v25, %v2538_v54 }
0x2067   :  { %4125 = vtanh.f32 %v5049_v4  ;;  %v2690_v45 = vrot.slane %v5049_v4, 2 }
0x206c   :  { %v4124_v3 = vpop.eup %4123 }
0x206d   :  { %2475 = vrot.lane.b32.xlu0 %v4124_v3, %s4382_s12 }
0x2074   :  { %v4126_v59 = vpop.eup %4125 }
0x2075   :  { %2551 = vrot.lane.b32.xlu1 %v4126_v59, %s4382_s12 }
0x20df   :  { %v2476_v58 = vpop.permute.xlu0 %2475 }
0x20e0   :  { %v2478_v61 = vmul.f32 %v4120_v21, %v2476_v58 }
0x20e2   :  { %v2555_v48 = vpack.c.bf16 %v2478_v61, %v2478_v61 }
0x20e4   :  { %v2557_v63 = vrot.slane %v2555_v48, 3 }
0x20e6   :  { %2558 = vrot.lane.b32.xlu0 %v2557_v63, %s4385_s19 }
0x20e7   :  { %v2552_v5 = vpop.permute.xlu1 %2551 }
0x20e8   :  { %v2554_v56 = vmul.f32 %v4122_v15, %v2552_v5 }
0x20ea   :  { %v2631_v6 = vpack.c.bf16 %v2554_v56, %v2554_v56 }
0x20ec   :  { %2633 = vrot.lane.b32.xlu1 %v2631_v6, %s4385_s19 }
0x2158   :  { %v2559_v50 = vpop.permute.xlu0 %2558 }
0x2159   :  { %3806 = vmatmul.mubr.msk.bf16.vlgmr.msra.gmra.mxu0 %vm253_vm1, %v2559_v50 }
0x215a   :  { %3818 = vmatpush3.bf16.msra.mxu0 %v4885_v27  ;;  %3821 = vmatprep.mubr.msk.bf16.mxu0 %vm4395_vm0, %v4393_v0 }
0x215b   :  { %3819 = vmatprep.subr.bf16.mxu0 %v4393_v0 }
0x215e   :  { %v2634_v8 = vpop.permute.xlu1 %2633  ;;  %3820 = vmatpush3.bf16.msra.mxu0 %v4890_v29 }
0x215f   :  { %3814 = vmatmul.mubr.msk.bf16.vlgmr.msra.gmra.mxu1 %vm253_vm1, %v2634_v8  ;;  %3833 = vmatprep.subr.bf16.mxu0 %v4393_v0 }
0x2160   :  { %3826 = vmatpush3.bf16.msra.mxu1 %v4896_v37  ;;  %3829 = vmatprep.mubr.msk.bf16.mxu1 %vm4395_vm0, %v4393_v0 }
0x2161   :  { %3827 = vmatprep.subr.bf16.mxu1 %v4393_v0 }
0x2164   :  { %3828 = vmatpush3.bf16.msra.mxu1 %v4902_v34 }
0x2165   :  { %3841 = vmatprep.subr.bf16.mxu1 %v4393_v0 }
0x2219   :  { %v2597_v11 = vpop.f32.mrf.mxu0 }
0x221a   :  { %v2603_v13 = vadd.f32 %v2597_v11, %v4938_v55 }
0x221b   :  { %v3807_v9 = vpop.f32.mrf.mxu0 }
0x221c   :  { %4127 = vtanh.f32 %v2603_v13  ;;  %v3468_v17 = vmul.f32 -1.442695, %v2603_v13 }
0x221d   :  { %v2600_v14 = vpop.f32.mrf.mxu0 }
0x221f   :  { %v3808_v2 = vpop.f32.mrf.mxu0  ;;  %v2672_v18 = vpop.f32.mrf.mxu1 }
0x2220   :  { %v2679_v10 = vrot.slane %v2672_v18, 2 }
0x2221   :  { %v3815_v19 = vpop.f32.mrf.mxu1 }
0x2222   :  { %v2681_v20 = vadd.f32 %v2679_v10, %v4936_v57 }
0x2223   :  { %v2675_v16 = vpop.f32.mrf.mxu1 }
0x2224   :  { %4129 = vtanh.f32 %v2681_v20  ;;  %v3470_v1 = vmul.f32 -1.442695, %v2681_v20 }
0x2225   :  { %v3816_v23 = vpop.f32.mrf.mxu1  ;;  %4131 = vpow2.f32 %v3468_v17 }
0x2226   :  { %4133 = vpow2.f32 %v3470_v1 }
0x2229   :  { %v4128_v24 = vpop.eup %4127 }
0x222a   :  { %2616 = vrot.lane.b32.xlu0 %v4128_v24, %s4382_s12 }
0x2231   :  { %v4130_v26 = vpop.eup %4129 }
0x2232   :  { %2694 = vrot.lane.b32.xlu1 %v4130_v26, %s4382_s12  ;;  %v4132_v28 = vpop.eup %4131 }
0x2233   :  { %v2607_v30 = vadd.f32 1.0, %v4132_v28  ;;  %v4134_v32 = vpop.eup %4133 }
0x2234   :  { %v2685_v33 = vadd.f32 1.0, %v4134_v32 }
0x2235   :  { %4135 = vrcp.f32 %v2607_v30 }
0x2236   :  { %4137 = vrcp.f32 %v2685_v33 }
0x2242   :  { %v4136_v36 = vpop.eup %4135 }
0x2243   :  { %v4138_v35 = vpop.eup %4137  ;;  %v2614_v51 = vmul.f32 %v4136_v36, %v2612_v43 }
0x2244   :  { %v2692_v21 = vmul.f32 %v4138_v35, %v2690_v45 }
0x229c   :  { %v2617_v31 = vpop.permute.xlu0 %2616 }
0x229d   :  { %v2619_v47 = vmul.f32 %v4136_v36, %v2617_v31 }
0x229f   :  { %2621 = vrot.lane.b32.xlu0 %v2619_v47, %s4382_s12 }
0x22a4   :  { %v2695_v39 = vpop.permute.xlu1 %2694 }
0x22a5   :  { %v2697_v41 = vmul.f32 %v4138_v35, %v2695_v39 }
0x22a7   :  { %2699 = vrot.lane.b32.xlu1 %v2697_v41, %s4382_s12 }
0x2311   :  { %v2622_v44 = vpop.permute.xlu0 %2621 }
0x2312   :  { %v5077_v42 = vadd.f32 %v2622_v44, %v2614_v51 }
0x2314   :  { %4139 = vtanh.f32 %v5077_v42  ;;  %v2768_v28 = vrot.slane %v5077_v42, 6 }
0x2319   :  { %v2700_v46 = vpop.permute.xlu1 %2699 }
0x231a   :  { %v5081_v49 = vadd.f32 %v2700_v46, %v2692_v21 }
0x231c   :  { %4141 = vtanh.f32 %v5081_v49 }
0x2321   :  { %v4140_v15 = vpop.eup %4139 }
0x2322   :  { %2627 = vrot.lane.b32.xlu0 %v4140_v15, %s4382_s12 }
0x2329   :  { %v4142_v7 = vpop.eup %4141 }
0x232a   :  { %2705 = vrot.lane.b32.xlu1 %v4142_v7, %s4382_s12 }
0x2394   :  { %v2628_v62 = vpop.permute.xlu0 %2627 }
0x2395   :  { %v2630_v60 = vmul.f32 %v4136_v36, %v2628_v62  ;;  %v2847_v36 = vrot.slane %v5081_v49, 2 }
0x2397   :  { %v2709_v53 = vpack.c.bf16 %v2630_v60, %v2630_v60 }
0x2399   :  { %2711 = vrot.lane.b32.xlu0 %v2709_v53, %s4385_s19 }
0x239c   :  { %v2706_v52 = vpop.permute.xlu1 %2705 }
0x239d   :  { %v2708_v22 = vmul.f32 %v4138_v35, %v2706_v52 }
0x239f   :  { %v2787_v12 = vpack.c.bf16 %v2708_v22, %v2708_v22 }
0x23a1   :  { %v2789_v54 = vrot.slane %v2787_v12, 3 }
0x23a3   :  { %2790 = vrot.lane.b32.xlu1 %v2789_v54, %s4385_s19 }
0x240b   :  { %v2712_v25 = vpop.permute.xlu0 %2711 }
0x240c   :  { %3822 = vmatmul.mubr.msk.bf16.vlgmr.msra.gmra.mxu0 %vm253_vm1, %v2712_v25 }
0x240d   :  { %3834 = vmatpush3.bf16.msra.mxu0 %v4885_v27  ;;  %3837 = vmatprep.mubr.msk.bf16.mxu0 %vm4395_vm0, %v4393_v0 }
0x240e   :  { %3835 = vmatprep.subr.bf16.mxu0 %v4393_v0 }
0x2411   :  { %3836 = vmatpush3.bf16.msra.mxu0 %v4890_v29 }
0x2412   :  { %3849 = vmatprep.subr.bf16.mxu0 %v4393_v0 }
0x2415   :  { %v2791_v4 = vpop.permute.xlu1 %2790 }
0x2416   :  { %3830 = vmatmul.mubr.msk.bf16.vlgmr.msra.gmra.mxu1 %vm253_vm1, %v2791_v4 }
0x2417   :  { %3842 = vmatpush3.bf16.msra.mxu1 %v4896_v37  ;;  %3845 = vmatprep.mubr.msk.bf16.mxu1 %vm4395_vm0, %v4393_v0 }
0x2418   :  { %3843 = vmatprep.subr.bf16.mxu1 %v4393_v0 }
0x241b   :  { %3844 = vmatpush3.bf16.msra.mxu1 %v4902_v34 }
0x241c   :  { %3857 = vmatprep.subr.bf16.mxu1 %v4393_v0 }
0x24cc   :  { %v2750_v3 = vpop.f32.mrf.mxu0 }
0x24cd   :  { %v2757_v59 = vrot.slane %v2750_v3, 6 }
0x24ce   :  { %v3823_v58 = vpop.f32.mrf.mxu0 }
0x24cf   :  { %v2759_v61 = vadd.f32 %v2757_v59, %v4938_v55 }
0x24d0   :  { %v2753_v48 = vpop.f32.mrf.mxu0 }
0x24d1   :  { %4143 = vtanh.f32 %v2759_v61  ;;  %v3472_v14 = vmul.f32 -1.442695, %v2759_v61 }
0x24d2   :  { %v3824_v63 = vpop.f32.mrf.mxu0 }
0x24d6   :  { %v2829_v5 = vpop.f32.mrf.mxu1 }
0x24d7   :  { %v2836_v56 = vrot.slane %v2829_v5, 4 }
0x24d8   :  { %v3831_v6 = vpop.f32.mrf.mxu1 }
0x24d9   :  { %v2838_v50 = vadd.f32 %v2836_v56, %v4936_v57 }
0x24da   :  { %v2832_v8 = vpop.f32.mrf.mxu1 }
0x24db   :  { %4145 = vtanh.f32 %v2838_v50  ;;  %v3474_v2 = vmul.f32 -1.442695, %v2838_v50 }
0x24dc   :  { %v3832_v11 = vpop.f32.mrf.mxu1  ;;  %4147 = vpow2.f32 %v3472_v14 }
0x24dd   :  { %4149 = vpow2.f32 %v3474_v2 }
0x24de   :  { %v4144_v13 = vpop.eup %4143 }
0x24df   :  { %2772 = vrot.lane.b32.xlu0 %v4144_v13, %s4382_s12 }
0x24e8   :  { %v4146_v9 = vpop.eup %4145 }
0x24e9   :  { %2851 = vrot.lane.b32.xlu1 %v4146_v9, %s4382_s12  ;;  %v4148_v18 = vpop.eup %4147 }
0x24ea   :  { %v2763_v10 = vadd.f32 1.0, %v4148_v18  ;;  %v4150_v19 = vpop.eup %4149 }
0x24eb   :  { %v2842_v20 = vadd.f32 1.0, %v4150_v19 }
0x24ec   :  { %4151 = vrcp.f32 %v2763_v10 }
0x24ed   :  { %4153 = vrcp.f32 %v2842_v20 }
0x24f9   :  { %v4152_v16 = vpop.eup %4151 }
0x24fa   :  { %v4154_v26 = vpop.eup %4153  ;;  %v2770_v30 = vmul.f32 %v4152_v16, %v2768_v28 }
0x24fb   :  { %v2849_v31 = vmul.f32 %v4154_v26, %v2847_v36 }
0x2551   :  { %v2773_v23 = vpop.permute.xlu0 %2772 }
0x2552   :  { %v2775_v24 = vmul.f32 %v4152_v16, %v2773_v23 }
0x2554   :  { %2777 = vrot.lane.b32.xlu0 %v2775_v24, %s4382_s12 }
0x255b   :  { %v2852_v17 = vpop.permute.xlu1 %2851 }
0x255c   :  { %v2854_v1 = vmul.f32 %v4154_v26, %v2852_v17 }
0x255e   :  { %2856 = vrot.lane.b32.xlu1 %v2854_v1, %s4382_s12 }
0x25c6   :  { %v2778_v32 = vpop.permute.xlu0 %2777 }
0x25c7   :  { %v5109_v33 = vadd.f32 %v2778_v32, %v2770_v30 }
0x25c9   :  { %4155 = vtanh.f32 %v5109_v33  ;;  %v2926_v9 = vrot.slane %v5109_v33, 6 }
0x25d0   :  { %v2857_v47 = vpop.permute.xlu1 %2856 }
0x25d1   :  { %v5113_v35 = vadd.f32 %v2857_v47, %v2849_v31  ;;  %v4207_v47 = vld [vmem:[#allocation12 + $0x8] sm:$0xff]  }
0x25d3   :  { %4157 = vtanh.f32 %v5113_v35  ;;  %v3005_v10 = vrot.slane %v5113_v35, 2  ;;  %v4208_v35 = vld [vmem:[#allocation12] sm:$0xff]  }
0x25d6   :  { %v4156_v39 = vpop.eup %4155 }
0x25d7   :  { %2783 = vrot.lane.b32.xlu0 %v4156_v39, %s4382_s12 }
0x25e0   :  { %v4158_v41 = vpop.eup %4157 }
0x25e1   :  { %2862 = vrot.lane.b32.xlu1 %v4158_v41, %s4382_s12 }
0x2649   :  { %v2784_v43 = vpop.permute.xlu0 %2783 }
0x264a   :  { %v2786_v51 = vmul.f32 %v4152_v16, %v2784_v43 }
0x264c   :  { %v2866_v44 = vpack.c.bf16 %v2786_v51, %v2786_v51 }
0x264e   :  { %v2868_v42 = vrot.slane %v2866_v44, 1 }
0x2650   :  { %2869 = vrot.lane.b32.xlu0 %v2868_v42, %s4385_s19 }
0x2653   :  { %v2863_v45 = vpop.permute.xlu1 %2862 }
0x2654   :  { %v2865_v21 = vmul.f32 %v4154_v26, %v2863_v45 }
0x2656   :  { %v2945_v46 = vpack.c.bf16 %v2865_v21, %v2865_v21 }
0x2658   :  { %v2947_v49 = vrot.slane %v2945_v46, 2 }
0x265a   :  { %2948 = vrot.lane.b32.xlu1 %v2947_v49, %s4385_s19 }
0x26c2   :  { %v2870_v15 = vpop.permute.xlu0 %2869 }
0x26c3   :  { %3838 = vmatmul.mubr.msk.bf16.vlgmr.msra.gmra.mxu0 %vm253_vm1, %v2870_v15 }
0x26c4   :  { %3850 = vmatpush3.bf16.msra.mxu0 %v4885_v27  ;;  %3853 = vmatprep.mubr.msk.bf16.mxu0 %vm4395_vm0, %v4393_v0 }
0x26c5   :  { %3851 = vmatprep.subr.bf16.mxu0 %v4393_v0 }
0x26c8   :  { %3852 = vmatpush3.bf16.msra.mxu0 %v4890_v29 }
0x26c9   :  { %3865 = vmatprep.subr.bf16.mxu0 %v4393_v0 }
0x26cc   :  { %v2949_v7 = vpop.permute.xlu1 %2948 }
0x26cd   :  { %3846 = vmatmul.mubr.msk.bf16.vlgmr.msra.gmra.mxu1 %vm253_vm1, %v2949_v7 }
0x26ce   :  { %3858 = vmatpush3.bf16.msra.mxu1 %v4896_v37  ;;  %3861 = vmatprep.mubr.msk.bf16.mxu1 %vm4395_vm0, %v4393_v0 }
0x26cf   :  { %3859 = vmatprep.subr.bf16.mxu1 %v4393_v0 }
0x26d2   :  { %3860 = vmatpush3.bf16.msra.mxu1 %v4902_v34 }
0x26d3   :  { %3873 = vmatprep.subr.bf16.mxu1 %v4393_v0 }
0x2783   :  { %v2908_v27 = vpop.f32.mrf.mxu0 }
0x2784   :  { %v2915_v62 = vrot.slane %v2908_v27, 4 }
0x2785   :  { %v3839_v60 = vpop.f32.mrf.mxu0 }
0x2786   :  { %v2917_v29 = vadd.f32 %v2915_v62, %v4938_v55 }
0x2787   :  { %v2911_v53 = vpop.f32.mrf.mxu0 }
0x2788   :  { %4159 = vtanh.f32 %v2917_v29  ;;  %v3476_v59 = vmul.f32 -1.442695, %v2917_v29 }
0x2789   :  { %v3840_v52 = vpop.f32.mrf.mxu0 }
0x278d   :  { %v2987_v22 = vpop.f32.mrf.mxu1 }
0x278e   :  { %v2994_v12 = vrot.slane %v2987_v22, 6 }
0x278f   :  { %v3847_v37 = vpop.f32.mrf.mxu1 }
0x2790   :  { %v2996_v54 = vadd.f32 %v2994_v12, %v4936_v57 }
0x2791   :  { %v2990_v25 = vpop.f32.mrf.mxu1 }
0x2792   :  { %4161 = vtanh.f32 %v2996_v54  ;;  %v3478_v58 = vmul.f32 -1.442695, %v2996_v54 }
0x2793   :  { %v3848_v4 = vpop.f32.mrf.mxu1  ;;  %4163 = vpow2.f32 %v3476_v59 }
0x2794   :  { %4165 = vpow2.f32 %v3478_v58 }
0x2795   :  { %v4160_v3 = vpop.eup %4159 }
0x2796   :  { %2930 = vrot.lane.b32.xlu0 %v4160_v3, %s4382_s12 }
0x279f   :  { %v4162_v34 = vpop.eup %4161 }
0x27a0   :  { %3009 = vrot.lane.b32.xlu1 %v4162_v34, %s4382_s12  ;;  %v4164_v61 = vpop.eup %4163 }
0x27a1   :  { %v2921_v48 = vadd.f32 1.0, %v4164_v61  ;;  %v4166_v63 = vpop.eup %4165 }
0x27a2   :  { %v3000_v5 = vadd.f32 1.0, %v4166_v63 }
0x27a3   :  { %4167 = vrcp.f32 %v2921_v48 }
0x27a4   :  { %4169 = vrcp.f32 %v3000_v5 }
0x27b0   :  { %v4168_v56 = vpop.eup %4167 }
0x27b1   :  { %v4170_v8 = vpop.eup %4169  ;;  %v2928_v14 = vmul.f32 %v4168_v56, %v2926_v9 }
0x27b2   :  { %v3007_v19 = vmul.f32 %v4170_v8, %v3005_v10 }
0x2808   :  { %v2931_v6 = vpop.permute.xlu0 %2930 }
0x2809   :  { %v2933_v50 = vmul.f32 %v4168_v56, %v2931_v6 }
0x280b   :  { %2935 = vrot.lane.b32.xlu0 %v2933_v50, %s4382_s12 }
0x2812   :  { %v3010_v11 = vpop.permute.xlu1 %3009 }
0x2813   :  { %v3012_v13 = vmul.f32 %v4170_v8, %v3010_v11 }
0x2815   :  { %3014 = vrot.lane.b32.xlu1 %v3012_v13, %s4382_s12 }
0x287d   :  { %v2936_v2 = vpop.permute.xlu0 %2935 }
0x287e   :  { %v5141_v18 = vadd.f32 %v2936_v2, %v2928_v14 }
0x2880   :  { %4171 = vtanh.f32 %v5141_v18  ;;  %v3084_v4 = vrot.slane %v5141_v18, 6 }
0x2887   :  { %v3015_v20 = vpop.permute.xlu1 %3014 }
0x2888   :  { %v5145_v16 = vadd.f32 %v3015_v20, %v3007_v19 }
0x288a   :  { %4173 = vtanh.f32 %v5145_v16  ;;  %v3160_v58 = vrot.slane %v5145_v16, 2 }
0x288d   :  { %v4172_v23 = vpop.eup %4171 }
0x288e   :  { %2941 = vrot.lane.b32.xlu0 %v4172_v23, %s4382_s12 }
0x2897   :  { %v4174_v24 = vpop.eup %4173 }
0x2898   :  { %3020 = vrot.lane.b32.xlu1 %v4174_v24, %s4382_s12 }
0x2900   :  { %v2942_v26 = vpop.permute.xlu0 %2941 }
0x2901   :  { %v2944_v17 = vmul.f32 %v4168_v56, %v2942_v26 }
0x2903   :  { %v3024_v1 = vpack.c.bf16 %v2944_v17, %v2944_v17 }
0x2905   :  { %v3026_v28 = vrot.slane %v3024_v1, 2 }
0x2907   :  { %3027 = vrot.lane.b32.xlu0 %v3026_v28, %s4385_s19 }
0x290a   :  { %v3021_v30 = vpop.permute.xlu1 %3020 }
0x290b   :  { %v3023_v32 = vmul.f32 %v4170_v8, %v3021_v30  ;;  %v3432_v8 = vld [vmem:[#allocation13] ss:$0 sm:$0xff] }
0x290c   :  { %v5171_v13 = vadd.f32 %v3432_v8, %v4922_v38  ;;  %v5177_v10 = vadd.f32 %v3432_v8, %v4924_v40 }
0x290d   :  { %v3103_v33 = vpack.c.bf16 %v3023_v32, %v3023_v32 }
0x290e   :  { %v1678_v18 = vmul.f32 %v5171_v13, %v5171_v13  ;;  %v1765_v38 = vmul.f32 %v5177_v10, %v5177_v10  ;;  %v1684_v40 = vmul.f32 1.442695, %v5171_v13  ;;  %v1771_v23 = vmul.f32 1.442695, %v5177_v10 }
0x290f   :  { %v3105_v36 = vrot.slane %v3103_v33, 1  ;;  %v1677_v17 = vadd.f32 1.0, %v5171_v13 }
0x2911   :  { %3106 = vrot.lane.b32.xlu1 %v3105_v36, %s4385_s19 }
0x2979   :  { %v3028_v31 = vpop.permute.xlu0 %3027 }
0x297a   :  { %3854 = vmatmul.mubr.msk.bf16.vlgmr.msra.gmra.mxu0 %vm253_vm1, %v3028_v31 }
0x297b   :  { %3866 = vmatpush3.bf16.msra.mxu0 %v4207_v47  ;;  %3869 = vmatprep.mubr.msk.bf16.mxu0 %vm4395_vm0, %v4393_v0 }
0x297c   :  { %3867 = vmatprep.subr.bf16.mxu0 %v4393_v0 }
0x297f   :  { %3868 = vmatpush3.bf16.msra.mxu0 %v4208_v35 }
0x2983   :  { %v3107_v39 = vpop.permute.xlu1 %3106 }
0x2984   :  { %3862 = vmatmul.mubr.msk.bf16.vlgmr.msra.gmra.mxu1 %vm253_vm1, %v3107_v39 }
0x2985   :  { %3874 = vmatpush3.bf16.msra.mxu1 %v4207_v47  ;;  %3877 = vmatprep.mubr.msk.bf16.mxu1 %vm4395_vm0, %v4393_v0 }
0x2986   :  { %3875 = vmatprep.subr.bf16.mxu1 %v4393_v0 }
0x2989   :  { %3876 = vmatpush3.bf16.msra.mxu1 %v4208_v35 }
0x2a3a   :  { %v3066_v41 = vpop.f32.mrf.mxu0 }
0x2a3b   :  { %v3073_v43 = vrot.slane %v3066_v41, 2  ;;  %v1764_v41 = vadd.f32 1.0, %v5177_v10 }
0x2a3c   :  { %v3855_v51 = vpop.f32.mrf.mxu0 }
0x2a3d   :  { %v3075_v44 = vadd.f32 %v3073_v43, %v4938_v55 }
0x2a3e   :  { %v3069_v42 = vpop.f32.mrf.mxu0 }
0x2a3f   :  { %4175 = vtanh.f32 %v3075_v44  ;;  %v3480_v62 = vmul.f32 -1.442695, %v3075_v44 }
0x2a40   :  { %v3856_v45 = vpop.f32.mrf.mxu0 }
0x2a44   :  { %v3145_v21 = vpop.f32.mrf.mxu1 }
0x2a45   :  { %v3151_v46 = vadd.f32 %v3145_v21, %v4936_v57 }
0x2a46   :  { %v3863_v49 = vpop.f32.mrf.mxu1 }
0x2a47   :  { %4177 = vtanh.f32 %v3151_v46  ;;  %v3482_v60 = vmul.f32 -1.442695, %v3151_v46  ;;  %v119_v49 = vld [vmem:[%s5252_s7] sm:$0xff]  ;;  %s4399_s7 = smov [#allocation15]  }
0x2a48   :  { %v3148_v15 = vpop.f32.mrf.mxu1  ;;  %4179 = vpow2.f32 %v3480_v62  ;;  %s3361_s26 = sshll.u32 %s4399_s7, 4  ;;  %s3362_s26 = int_to_ptr.vmem [resolvable:$true] %s3361_s26 }
0x2a49   :  { %4181 = vpow2.f32 %v3482_v60  ;;  %s4329_s27 = scalar_lea.vmem %s3362_s26, 128  ;;  %p4334_p3 = scmp.lt.s32.totalorder %s3362_s26, %s3362_s26 }
0x2a4a   :  { %v3864_v7 = vpop.f32.mrf.mxu1  ;;  %p4330_p2 = scmp.ne.s32.totalorder %s3362_s26, %s4329_s27  ;;  %p4335_p4 = scmp.lt.s32.totalorder %s4329_s27, %s4329_s27 }
0x2a4b   :  { %v1753_v7 = vrot.slane %v119_v49, 2 }
0x2a4c   :  { %v4176_v27 = vpop.eup %4175  ;;  %p4336_p5 = por %p4335_p4, %p4334_p3 }
0x2a4d   :  { %3088 = vrot.lane.b32.xlu0 %v4176_v27, %s4382_s12  ;;  %v3316_v27 = vrot.slane %v119_v49, 6 }
0x2a4e   :  { %p4337_p6 = pnand %p4336_p5, %p4330_p2 }
0x2a54   :  { %v4178_v0 = vpop.eup %4177 }
0x2a55   :  { %3164 = vrot.lane.b32.xlu1 %v4178_v0, %s4382_s12  ;;  %v4180_v55 = vpop.eup %4179 }
0x2a56   :  { %v3079_v29 = vadd.f32 1.0, %v4180_v55  ;;  %v4182_v53 = vpop.eup %4181 }
0x2a57   :  { %v3155_v52 = vadd.f32 1.0, %v4182_v53 }
0x2a58   :  { %4183 = vrcp.f32 %v3079_v29 }
0x2a59   :  { %4185 = vrcp.f32 %v3155_v52 }
0x2a65   :  { %v4184_v57 = vpop.eup %4183 }
0x2a66   :  { %v4186_v37 = vpop.eup %4185  ;;  %v3086_v3 = vmul.f32 %v4184_v57, %v3084_v4 }
0x2a67   :  { %v3162_v61 = vmul.f32 %v4186_v37, %v3160_v58 }
0x2abf   :  { %v3089_v22 = vpop.permute.xlu0 %3088 }
0x2ac0   :  { %v3091_v12 = vmul.f32 %v4184_v57, %v3089_v22 }
0x2ac2   :  { %3093 = vrot.lane.b32.xlu0 %v3091_v12, %s4382_s12 }
0x2ac7   :  { %v3165_v54 = vpop.permute.xlu1 %3164 }
0x2ac8   :  { %v3167_v25 = vmul.f32 %v4186_v37, %v3165_v54 }
0x2aca   :  { %3169 = vrot.lane.b32.xlu1 %v3167_v25, %s4382_s12  ;;  %v3230_v25 = vrot.slane %v119_v49, 4 }
0x2b34   :  { %v3094_v34 = vpop.permute.xlu0 %3093 }
0x2b35   :  { %v3096_v59 = vadd.f32 %v3094_v34, %v3086_v3  ;;  %v1662_v34 = vmul.f32 0.5, %v5171_v13 }
0x2b37   :  { %4187 = vtanh.f32 %v3096_v59  ;;  %v1663_v59 = vmul.f32 1.442695, %v1662_v34 }
0x2b3c   :  { %v3170_v48 = vpop.permute.xlu1 %3169 }
0x2b3d   :  { %v3172_v63 = vadd.f32 %v3170_v48, %v3162_v61 }
0x2b3f   :  { %4189 = vtanh.f32 %v3172_v63 }
0x2b40   :  { %4191 = vpow2.f32 %v1684_v40 }
0x2b41   :  { %4193 = vpow2.f32 %v1771_v23 }
0x2b44   :  { %v4188_v5 = vpop.eup %4187 }
0x2b45   :  { %3099 = vrot.lane.b32.xlu0 %v4188_v5, %s4382_s12 }
0x2b4c   :  { %v4190_v56 = vpop.eup %4189 }
0x2b4d   :  { %3175 = vrot.lane.b32.xlu1 %v4190_v56, %s4382_s12  ;;  %v4192_v31 = vpop.eup %4191  ;;  %s4398_s12 = smov 112  }
0x2b4e   :  { %v4194_v21 = vpop.eup %4193 }
0x2bb7   :  { %v3100_v6 = vpop.permute.xlu0 %3099 }
0x2bb8   :  { %v3102_v50 = vmul.f32 %v4184_v57, %v3100_v6 }
0x2bba   :  { %v3179_v11 = vpack.c.bf16 %v3102_v50, %v3102_v50 }
0x2bbc   :  { %v3181_v9 = vrot.slane %v3179_v11, 3 }
0x2bbe   :  { %3182 = vrot.lane.b32.xlu0 %v3181_v9, %s4385_s19 }
0x2bbf   :  { %v3176_v14 = vpop.permute.xlu1 %3175 }
0x2bc0   :  { %v3178_v2 = vmul.f32 %v4186_v37, %v3176_v14 }
0x2bc2   :  { %v3266_v19 = vpack.c.bf16 %v3178_v2, %v3178_v2  ;;  %1680 = vrot.lane.b32.xlu0 %v1678_v18, %s4397_s4  ;;  %v1750_v2 = vmul.f32 0.5, %v5177_v10 }
0x2bc4   :  { %3268 = vrot.lane.b32.xlu1 %v3266_v19, %s4385_s19 }
0x2bc8   :  { %1767 = vrot.lane.b32.xlu1 %v1765_v38, %s4397_s4 }
0x2c30   :  { %v3183_v20 = vpop.permute.xlu0 %3182 }
0x2c31   :  { %3870 = vmatmul.mubr.msk.bf16.vlgmr.msra.gmra.mxu0 %vm253_vm1, %v3183_v20  ;;  %v1751_v20 = vmul.f32 1.442695, %v1750_v2 }
0x2c34   :  { %v1681_v24 = vpop.permute.xlu0 %1680 }
0x2c35   :  { %v1683_v30 = vsub.f32 %v1677_v17, %v1681_v24 }
0x2c36   :  { %v3269_v16 = vpop.permute.xlu1 %3268 }
0x2c37   :  { %3878 = vmatmul.mubr.msk.bf16.vlgmr.msra.gmra.mxu1 %vm253_vm1, %v3269_v16  ;;  %v1686_v39 = vsub.f32 %v1683_v30, %v4192_v31 }
0x2c3a   :  { %v1768_v36 = vpop.permute.xlu1 %1767 }
0x2c3b   :  { %v1770_v44 = vsub.f32 %v1764_v41, %v1768_v36 }
0x2c3d   :  { %v1773_v15 = vsub.f32 %v1770_v44, %v4194_v21 }
0x2cf1   :  { %v3221_v26 = vpop.f32.mrf.mxu0 }
0x2cf2   :  { %v5189_v1 = vadd.f32 %v3432_v8, %v3221_v26 }
0x2cf3   :  { %v3871_v28 = vpop.f32.mrf.mxu0 }
0x2cf4   :  { %v3242_v32 = vmul.f32 %v5189_v1, %v5189_v1  ;;  %v3248_v0 = vmul.f32 1.442695, %v5189_v1  ;;  %v3241_v60 = vadd.f32 1.0, %v5189_v1  ;;  %v3227_v58 = vmul.f32 0.5, %v5189_v1 }
0x2cf5   :  { %v3224_v33 = vpop.f32.mrf.mxu0 }
0x2cf6   :  { %3244 = vrot.lane.b32.xlu0 %v3242_v32, %s4397_s4  ;;  %4195 = vpow2.f32 %v3248_v0  ;;  %v3228_v61 = vmul.f32 1.442695, %v3227_v58 }
0x2cf7   :  { %v3872_v47 = vpop.f32.mrf.mxu0  ;;  %v3307_v35 = vpop.f32.mrf.mxu1 }
0x2cf8   :  { %v5195_v43 = vadd.f32 %v3432_v8, %v3307_v35 }
0x2cf9   :  { %v3879_v51 = vpop.f32.mrf.mxu1 }
0x2cfa   :  { %1688 = vrot.lane.b32.xlu0 %v1686_v39, %s4398_s12  ;;  %v3328_v42 = vmul.f32 %v5195_v43, %v5195_v43  ;;  %v3334_v62 = vmul.f32 1.442695, %v5195_v43  ;;  %v3327_v57 = vadd.f32 1.0, %v5195_v43  ;;  %v3313_v19 = vmul.f32 0.5, %v5195_v43 }
0x2cfb   :  { %v3310_v45 = vpop.f32.mrf.mxu1 }
0x2cfc   :  { %3330 = vrot.lane.b32.xlu1 %v3328_v42, %s4397_s4  ;;  %4197 = vpow2.f32 %v3334_v62  ;;  %v3314_v40 = vmul.f32 1.442695, %v3313_v19 }
0x2cfd   :  { %v3880_v46 = vpop.f32.mrf.mxu1  ;;  %4199 = vpow2.f32 %v1663_v59 }
0x2cfe   :  { %4201 = vpow2.f32 %v3228_v61 }
0x2cff   :  { %4203 = vpow2.f32 %v1751_v20 }
0x2d00   :  { %1775 = vrot.lane.b32.xlu1 %v1773_v15, %s4398_s12  ;;  %4205 = vpow2.f32 %v3314_v40 }
0x2d03   :  { %v4196_v53 = vpop.eup %4195 }
0x2d04   :  { %1754 = vrot.lane.b32.xlu1 %v1753_v7, %s4397_s4 }
0x2d08   :  { %3317 = vrot.lane.b32.xlu1 %v3316_v27, %s4397_s4 }
0x2d09   :  { %v4198_v37 = vpop.eup %4197 }
0x2d0a   :  { %v4200_v63 = vpop.eup %4199 }
0x2d0b   :  { %v4202_v6 = vpop.eup %4201 }
0x2d0c   :  { %v4204_v24 = vpop.eup %4203 }
0x2d0d   :  { %v4206_v26 = vpop.eup %4205 }
0x2d68   :  { %v3245_v55 = vpop.permute.xlu0 %3244 }
0x2d69   :  { %v3247_v29 = vsub.f32 %v3241_v60, %v3245_v55 }
0x2d6b   :  { %v3250_v52 = vsub.f32 %v3247_v29, %v4196_v53 }
0x2d6c   :  { %v1689_v4 = vpop.permute.xlu0 %1688 }
0x2d6d   :  { %3252 = vrot.lane.b32.xlu0 %v3250_v52, %s4398_s12  ;;  %v1691_v3 = vsel %vm1675_vm11, %v1689_v4, 0.0 }
0x2d6e   :  { %v3331_v22 = vpop.permute.xlu1 %3330 }
0x2d6f   :  { %v3333_v12 = vsub.f32 %v3327_v57, %v3331_v22 }
0x2d71   :  { %v3336_v54 = vsub.f32 %v3333_v12, %v4198_v37  ;;  %1666 = vrot.lane.b32.xlu0 %v119_v49, %s4397_s4 }
0x2d72   :  { %v1776_v11 = vpop.permute.xlu1 %1775 }
0x2d73   :  { %3338 = vrot.lane.b32.xlu1 %v3336_v54, %s4398_s12  ;;  %v1778_v14 = vsel %vm1675_vm11, %v1776_v11, 0.0 }
0x2d75   :  { %3231 = vrot.lane.b32.xlu0 %v3230_v25, %s4397_s4 }
0x2d76   :  { %v1755_v9 = vpop.permute.xlu1 %1754 }
0x2d77   :  { %v1757_v17 = vmul.f32 %v4204_v24, %v1755_v9 }
0x2d7a   :  { %v3318_v18 = vpop.permute.xlu1 %3317 }
0x2d7b   :  { %v3320_v28 = vmul.f32 %v4206_v26, %v3318_v18 }
0x2d97   :  { %1692 = vadd.xlane.f32.xlu1 %v1691_v3 }
0x2ddf   :  { %v3253_v48 = vpop.permute.xlu0 %3252 }
0x2de0   :  { %v3255_v38 = vsel %vm1675_vm11, %v3253_v48, 0.0 }
0x2de3   :  { %v1667_v5 = vpop.permute.xlu0 %1666 }
0x2de4   :  { %v1669_v56 = vmul.f32 %v4200_v63, %v1667_v5 }
0x2de5   :  { %v3339_v16 = vpop.permute.xlu1 %3338 }
0x2de6   :  { %1671 = vrot.lane.b32.xlu0 %v1669_v56, %s4398_s12  ;;  %v3341_v23 = vsel %vm1675_vm11, %v3339_v16, 0.0 }
0x2de7   :  { %v3232_v50 = vpop.permute.xlu0 %3231 }
0x2de8   :  { %v3234_v8 = vmul.f32 %v4202_v6, %v3232_v50 }
0x2dea   :  { %3236 = vrot.lane.b32.xlu1 %v3234_v8, %s4398_s12 }
0x2e05   :  { %1779 = vadd.xlane.f32.xlu0 %v1778_v14 }
0x2e09   :  { %3256 = vadd.xlane.f32.xlu0 %v3255_v38 }
0x2e0e   :  { %3342 = vadd.xlane.f32.xlu1 %v3341_v23 }
0x2e1f   :  { %1759 = vrot.lane.b32.xlu0 %v1757_v17, %s4398_s12  ;;  %3322 = vrot.lane.b32.xlu1 %v3320_v28, %s4398_s12 }
0x2e20   :  { %v1693_v30 = vpop.xlane.xlu1 %1692 }
0x2e21   :  { %v1695_v47 = vsel %vm1694_vm12, %v1693_v30, 0.0 }
0x2e22   :  { %v1696_v35 = vrot.slane %v1695_v47, 4 }
0x2e24   :  { %v1697_v41 = vadd.f32 %v1696_v35, %v1695_v47 }
0x2e26   :  { %v1698_v21 = vrot.slane %v1697_v41, 2 }
0x2e28   :  { %v1699_v27 = vadd.f32 %v1698_v21, %v1697_v41 }
0x2e2a   :  { %v1700_v57 = vrot.slane %v1699_v27, 1 }
0x2e2c   :  { %v1701_v4 = vadd.f32 %v1700_v57, %v1699_v27 }
0x2e58   :  { %v1672_v32 = vpop.permute.xlu0 %1671 }
0x2e59   :  { %v1674_v33 = vadd.f32 %v1672_v32, %v5171_v13 }
0x2e5b   :  { %1676 = vst.msk [vmem:[#allocation15] sm:$0x3] %vm1675_vm11, %v1674_v33 }
0x2e5c   :  { %v3237_v36 = vpop.permute.xlu1 %3236 }
0x2e5d   :  { %v3239_v31 = vadd.f32 %v3237_v36, %v5189_v1 }
0x2e5f   :  { %3240 = vst.msk [vmem:[#allocation15 + $0x4] sm:$0x3] %vm1675_vm11, %v3239_v31 }
0x2e8e   :  { %v1780_v39 = vpop.xlane.xlu0 %1779 }
0x2e8f   :  { %v1781_v51 = vsel %vm1694_vm12, %v1780_v39, 0.0 }
0x2e90   :  { %v1782_v44 = vrot.slane %v1781_v51, 4 }
0x2e92   :  { %v1783_v42 = vadd.f32 %v1782_v44, %v1781_v51  ;;  %v3257_v45 = vpop.xlane.xlu0 %3256 }
0x2e93   :  { %v3258_v13 = vsel %vm1694_vm12, %v3257_v45, 0.0 }
0x2e94   :  { %v1784_v46 = vrot.slane %v1783_v42, 2  ;;  %v3259_v49 = vrot.slane %v3258_v13, 4 }
0x2e96   :  { %v1785_v15 = vadd.f32 %v1784_v46, %v1783_v42  ;;  %v3260_v1 = vadd.f32 %v3259_v49, %v3258_v13  ;;  %v1760_v7 = vpop.permute.xlu0 %1759 }
0x2e97   :  { %v1762_v0 = vadd.f32 %v1760_v7, %v5177_v10  ;;  %v3343_v62 = vpop.xlane.xlu1 %3342 }
0x2e98   :  { %v3261_v60 = vrot.slane %v3260_v1, 2  ;;  %v3344_v55 = vsel %vm1694_vm12, %v3343_v62, 0.0  ;;  %v1786_v29 = vrot.slane %v1785_v15, 1 }
0x2e99   :  { %1763 = vst.msk [vmem:[#allocation15 + $0x2] sm:$0x3] %vm1675_vm11, %v1762_v0  ;;  %v3345_v53 = vrot.slane %v3344_v55, 4 }
0x2e9a   :  { %v3262_v52 = vadd.f32 %v3261_v60, %v3260_v1  ;;  %v1787_v25 = vadd.f32 %v1786_v29, %v1785_v15 }
0x2e9b   :  { %v3346_v22 = vadd.f32 %v3345_v53, %v3344_v55  ;;  %v3323_v12 = vpop.permute.xlu1 %3322 }
0x2e9c   :  { %v3263_v37 = vrot.slane %v3262_v52, 1  ;;  %v3325_v54 = vadd.f32 %v3323_v12, %v5195_v43 }
0x2e9d   :  { %v3347_v10 = vrot.slane %v3346_v22, 2 }
0x2e9e   :  { %3326 = vst.msk [vmem:[#allocation15 + $0x6] sm:$0x3] %vm1675_vm11, %v3325_v54  ;;  %v3264_v3 = vadd.f32 %v3263_v37, %v3262_v52 }
0x2e9f   :  { %v3348_v34 = vadd.f32 %v3347_v10, %v3346_v22 }
0x2ea0   :  { %4340 = shalt.err (!%p4337_p6)
}
0x2ea1   :  { %3364 = dma.vmem_to_hbm [thread:$0]  %s3362_s26, 128, %s5253_s8, [#allocation6]   ;;  %v1788_v43 = vadd.f32 %v1787_v25, %v1701_v4  ;;  %v3349_v59 = vrot.slane %v3348_v34, 1  ;;  %vm3353_vm13 = vcmask 0  }
0x2ea2   :  { %s4400_s30 = smov [#allocation16]  }
0x2ea3   :  { %v3265_v58 = vadd.f32 %v3264_v3, %v1788_v43  ;;  %v3350_v61 = vadd.f32 %v3349_v59, %v3348_v34  ;;  %s3371_s3 = sshll.u32 %s4400_s30, 4  ;;  %s3372_s3 = int_to_ptr.vmem [resolvable:$true] %s3371_s3 }
0x2ea4   :  { %s4349_s10 = scalar_lea.vmem %s3372_s3, 16  ;;  %s4353_s11 = scalar_lea.vmem %s3372_s3, 32 }
0x2ea5   :  { %v3351_v48 = vadd.f32 %v3350_v61, %v3265_v58  ;;  %p4350_p7 = scmp.ne.s32.totalorder %s3372_s3, %s4349_s10  ;;  %p4354_p8 = scmp.lt.s32.totalorder %s3372_s3, %s3372_s3 }
0x2ea6   :  { %p4355_p9 = scmp.lt.s32.totalorder %s4353_s11, %s4349_s10 }
0x2ea7   :  { %v3352_v63 = vmul.f32 -0.00390625, %v3351_v48 }
0x2ea8   :  { %p4356_p10 = por %p4355_p9, %p4354_p8 }
0x2ea9   :  { %3354 = vst.msk [vmem:[#allocation16] sm:$0x1] %vm3353_vm13, %v3352_v63 }
0x2eaa   :  { %p4357_p11 = pnand %p4356_p10, %p4350_p7 }
0x2eac   :  { %4360 = shalt.err (!%p4357_p11)
}
0x2ead   :  { %3374 = dma.vmem_to_hbm [thread:$0]  %s3372_s3, 16, %s5254_s9, [#allocation17]  }
0x2eae   :  { %4377 = dma.done.wait [#allocation6], 128  }
0x2eaf   :  { %4378 = vsyncadd [#allocation6], 4294967168 }
0x2eb0   :  { %4379 = dma.done.wait [#allocation17], 16  }
0x2eb1   :  { %4380 = vsyncadd [#allocation17], 4294967280 }
0x2eb2   :  { %3381 = vsyncpa [#allocation5], 1 }
0x2eb3   :  { %3382 = vsyncpa [#allocation8], 1 }
0x2eb4   :  { %3383 = vsyncpa [#allocation11], 1 }
0x2eb5   :  { %3384 = vsyncpa [#allocation14], 1 }
0x2eb6   :  { %3385 = vsyncpa [#allocation6], 1 }
0x2eb7   :  { %3386 = vsyncpa [#allocation17], 1 }

</bundles_post_ra>
